<compile_context>
chip_gen: v6e
topology: v6e:2x2x1
jax: 0.10.0
libtpu: 0.0.40
codegen_flags: <defaults>
</compile_context>

<pallas_src>
import jax
import jax.numpy as jnp
from jax.experimental import pallas as pl
from jax.experimental.pallas import tpu as pltpu

IN_DIM, H1, H2, OUT_DIM = 2103, 256, 128, 2
K_PAD = 2176   # 17 * 128  — lane-aligned K for the fc1 matmul
N_PAD = 128    # lane-dense final output width (extra columns are zeros)


def _round_up(n, m):
    return ((n + m - 1) // m) * m


def mlp_kernel(x_ref, w1_ref, b1_ref, w2_ref, b2_ref, w3_ref, b3_ref, o_ref):
    # fc1 + relu  (K padded to 2176; pad rows of w1 are zero so result is exact)
    h = jnp.dot(x_ref[...], w1_ref[...], preferred_element_type=jnp.float32)
    h = jnp.maximum(h + b1_ref[...], 0.0)
    # fc2 + relu
    h = jnp.dot(h, w2_ref[...], preferred_element_type=jnp.float32)
    h = jnp.maximum(h + b2_ref[...], 0.0)
    # fc3 (output padded to 128 lanes; pad columns of w3/b3 are zero)
    h = jnp.dot(h, w3_ref[...], preferred_element_type=jnp.float32)
    o_ref[...] = (h + b3_ref[...]).astype(o_ref.dtype)


def mlp_forward(x, params, *, tb=512, compute_dtype=jnp.float32):
    """x: (B, 2103) float32. params: dict of w1,b1,w2,b2,w3,b3 (PyTorch-equivalent)."""
    B = x.shape[0]
    # Batch tile: multiple of 128 (MXU M dim on all generations), capped so tiny
    # batches don't over-pad. VMEM budget at tb=512 (f32): x double-buffer ~8.9 MiB
    # + resident weights ~2.5 MiB + out tiles ~0.5 MiB — fits every chip's scoped
    # default, including v7x.
    tb = min(tb, max(128, _round_up(B, 128)))
    grid_b = pl.cdiv(B, tb)
    Bp = grid_b * tb

    w1, b1 = params["w1"], params["b1"]
    w2, b2 = params["w2"], params["b2"]
    w3, b3 = params["w3"], params["b3"]

    # Zero-pad: batch -> Bp rows, K -> 2176, fc3 out -> 128 lanes.
    xp = jnp.zeros((Bp, K_PAD), x.dtype).at[:B, :IN_DIM].set(x)
    w1p = jnp.zeros((K_PAD, H1), w1.dtype).at[:IN_DIM, :].set(w1)
    w3p = jnp.zeros((H2, N_PAD), w3.dtype).at[:, :OUT_DIM].set(w3)
    b3p = jnp.zeros((1, N_PAD), b3.dtype).at[:, :OUT_DIM].set(b3)

    if compute_dtype != jnp.float32:
        # bf16 fc1 operands (accumulation stays f32 via preferred_element_type).
        xp = xp.astype(compute_dtype)
        w1p = w1p.astype(compute_dtype)

    # Weights & biases: whole-array resident in VMEM (no per-step double-buffering).
    resident = pl.BlockSpec(memory_space=pltpu.MemorySpace.VMEM)

    out = pl.pallas_call(
        mlp_kernel,
        out_shape=jax.ShapeDtypeStruct((Bp, N_PAD), jnp.float32),
        grid_spec=pltpu.PrefetchScalarGridSpec(
            num_scalar_prefetch=0,
            grid=(grid_b,),
            in_specs=[
                pl.BlockSpec((tb, K_PAD), lambda i: (i, 0)),   # x tile (pipelined)
                resident,                                       # w1 (padded K)
                resident,                                       # b1
                resident,                                       # w2
                resident,                                       # b2
                resident,                                       # w3 (padded N)
                resident,                                       # b3 (padded N)
            ],
            out_specs=pl.BlockSpec((tb, N_PAD), lambda i: (i, 0)),
        ),
        compiler_params=pltpu.CompilerParams(
            dimension_semantics=("parallel",),
        ),
    )(xp, w1p, b1, w2, b2, w3p, b3p)

    return out[:B, :OUT_DIM]


def init_params(key):
    """Deterministic init mimicking nn.Linear's uniform(-1/sqrt(fan_in), ...)."""
    ks = jax.random.split(key, 6)

    def linear(kw, kb, fan_in, fan_out):
        bound = 1.0 / jnp.sqrt(fan_in)
        # stored as (in, out) so kernel does x @ W
        w = jax.random.uniform(kw, (fan_in, fan_out), jnp.float32, -bound, bound)
        b = jax.random.uniform(kb, (1, fan_out), jnp.float32, -bound, bound)
        return w, b

    w1, b1 = linear(ks[0], ks[1], IN_DIM, H1)
    w2, b2 = linear(ks[2], ks[3], H1, H2)
    w3, b3 = linear(ks[4], ks[5], H2, OUT_DIM)
    return {"w1": w1, "b1": b1, "w2": w2, "b2": b2, "w3": w3, "b3": b3}


def mlp_reference(x, p):
    h = jnp.maximum(x @ p["w1"] + p["b1"], 0.0)
    h = jnp.maximum(h @ p["w2"] + p["b2"], 0.0)
    return h @ p["w3"] + p["b3"]


if __name__ == "__main__":
    key = jax.random.PRNGKey(0)
    kx, kp = jax.random.split(key)
    B = 8  # small, deliberately not a multiple of the tile -> exercises padding path
    x = jax.random.normal(kx, (B, IN_DIM), jnp.float32)
    params = init_params(kp)

    out = mlp_forward(x, params)
    out = jax.block_until_ready(out)

    ref = mlp_reference(x, params)
    assert out.shape == (B, OUT_DIM)
    assert jnp.allclose(out, ref, atol=1e-4, rtol=1e-4)
    print("KERNEL_OK")
</pallas_src>

<mosaic_0001>
module attributes {stable_mosaic.version = 11 : i64} {
  func.func @mlp_kernel(%arg0: i32, %arg1: memref<128x2176xf32, #tpu.memory_space<vmem>>, %arg2: memref<2176x256xf32, #tpu.memory_space<vmem>>, %arg3: memref<1x256xf32, #tpu.memory_space<vmem>>, %arg4: memref<256x128xf32, #tpu.memory_space<vmem>>, %arg5: memref<1x128xf32, #tpu.memory_space<vmem>>, %arg6: memref<128x128xf32, #tpu.memory_space<vmem>>, %arg7: memref<1x128xf32, #tpu.memory_space<vmem>>, %arg8: memref<128x128xf32, #tpu.memory_space<vmem>>) attributes {dimension_semantics = [#tpu.dimension_semantics<parallel>], iteration_bounds = array<i64: 1>, scalar_prefetch = 0 : i64, scratch_operands = 0 : i64, tpu.core_type = #tpu.core_type<tc>, window_params = [{transform_indices = @transform_0, window_bounds = array<i64: 128, 2176>}, {pipeline_mode = #tpu.pipeline_mode<synchronous>, transform_indices = @transform_1, window_bounds = array<i64: 2176, 256>}, {pipeline_mode = #tpu.pipeline_mode<synchronous>, transform_indices = @transform_2, window_bounds = array<i64: 1, 256>}, {pipeline_mode = #tpu.pipeline_mode<synchronous>, transform_indices = @transform_3, window_bounds = array<i64: 256, 128>}, {pipeline_mode = #tpu.pipeline_mode<synchronous>, transform_indices = @transform_4, window_bounds = array<i64: 1, 128>}, {pipeline_mode = #tpu.pipeline_mode<synchronous>, transform_indices = @transform_5, window_bounds = array<i64: 128, 128>}, {pipeline_mode = #tpu.pipeline_mode<synchronous>, transform_indices = @transform_6, window_bounds = array<i64: 1, 128>}, {transform_indices = @transform_7, window_bounds = array<i64: 128, 128>}]} {
    %c0 = arith.constant 0 : index
    %c0_0 = arith.constant 0 : index
    %0 = vector.load %arg1[%c0, %c0_0] : memref<128x2176xf32, #tpu.memory_space<vmem>>, vector<128x2176xf32>
    %c0_1 = arith.constant 0 : index
    %c0_2 = arith.constant 0 : index
    %1 = vector.load %arg2[%c0_1, %c0_2] : memref<2176x256xf32, #tpu.memory_space<vmem>>, vector<2176x256xf32>
    %cst = arith.constant dense<0.000000e+00> : vector<128x256xf32>
    %2 = tpu.matmul %0, %1, %cst {dimension_numbers = #tpu.dot_dimension_numbers<[1], [0], [0], [1], [0, 0, 1, 1], [], []>} : vector<128x2176xf32>, vector<2176x256xf32>, vector<128x256xf32> -> vector<128x256xf32>
    %c0_3 = arith.constant 0 : index
    %c0_4 = arith.constant 0 : index
    %3 = vector.load %arg3[%c0_3, %c0_4] : memref<1x256xf32, #tpu.memory_space<vmem>>, vector<1x256xf32>
    %4 = vector.broadcast %3 : vector<1x256xf32> to vector<128x256xf32>
    %5 = arith.addf %2, %4 : vector<128x256xf32>
    %cst_5 = arith.constant 0.000000e+00 : f32
    %6 = vector.broadcast %cst_5 : f32 to vector<128x256xf32>
    %7 = arith.maximumf %5, %6 : vector<128x256xf32>
    %c0_6 = arith.constant 0 : index
    %c0_7 = arith.constant 0 : index
    %8 = vector.load %arg4[%c0_6, %c0_7] : memref<256x128xf32, #tpu.memory_space<vmem>>, vector<256x128xf32>
    %cst_8 = arith.constant dense<0.000000e+00> : vector<128x128xf32>
    %9 = tpu.matmul %7, %8, %cst_8 {dimension_numbers = #tpu.dot_dimension_numbers<[1], [0], [0], [1], [0, 0, 1, 1], [], []>} : vector<128x256xf32>, vector<256x128xf32>, vector<128x128xf32> -> vector<128x128xf32>
    %c0_9 = arith.constant 0 : index
    %c0_10 = arith.constant 0 : index
    %10 = vector.load %arg5[%c0_9, %c0_10] : memref<1x128xf32, #tpu.memory_space<vmem>>, vector<1x128xf32>
    %11 = vector.broadcast %10 : vector<1x128xf32> to vector<128x128xf32>
    %12 = arith.addf %9, %11 : vector<128x128xf32>
    %cst_11 = arith.constant 0.000000e+00 : f32
    %13 = vector.broadcast %cst_11 : f32 to vector<128x128xf32>
    %14 = arith.maximumf %12, %13 : vector<128x128xf32>
    %c0_12 = arith.constant 0 : index
    %c0_13 = arith.constant 0 : index
    %15 = vector.load %arg6[%c0_12, %c0_13] : memref<128x128xf32, #tpu.memory_space<vmem>>, vector<128x128xf32>
    %cst_14 = arith.constant dense<0.000000e+00> : vector<128x128xf32>
    %16 = tpu.matmul %14, %15, %cst_14 {dimension_numbers = #tpu.dot_dimension_numbers<[1], [0], [0], [1], [0, 0, 1, 1], [], []>} : vector<128x128xf32>, vector<128x128xf32>, vector<128x128xf32> -> vector<128x128xf32>
    %c0_15 = arith.constant 0 : index
    %c0_16 = arith.constant 0 : index
    %17 = vector.load %arg7[%c0_15, %c0_16] : memref<1x128xf32, #tpu.memory_space<vmem>>, vector<1x128xf32>
    %18 = vector.broadcast %17 : vector<1x128xf32> to vector<128x128xf32>
    %19 = arith.addf %16, %18 : vector<128x128xf32>
    %c0_17 = arith.constant 0 : index
    %c0_18 = arith.constant 0 : index
    %20 = vector.load %arg8[%c0_17, %c0_18] : memref<128x128xf32, #tpu.memory_space<vmem>>, vector<128x128xf32>
    tpu.vector_store %arg8[%c0_17, %c0_18], %19 {strides = array<i32>} : memref<128x128xf32, #tpu.memory_space<vmem>>, vector<128x128xf32>,
    return
  }
  func.func @transform_0(%arg0: i32) -> (i32, i32) {
    %c0_i32 = arith.constant 0 : i32
    %c0_i32_0 = arith.constant 0 : i32
    return %arg0, %c0_i32 : i32, i32
  }
  func.func @transform_1(%arg0: i32) -> (i32, i32) {
    %c0_i32 = arith.constant 0 : i32
    %c0_i32_0 = arith.constant 0 : i32
    %c0_i32_1 = arith.constant 0 : i32
    return %c0_i32, %c0_i32_0 : i32, i32
  }
  func.func @transform_2(%arg0: i32) -> (i32, i32) {
    %c0_i32 = arith.constant 0 : i32
    %c0_i32_0 = arith.constant 0 : i32
    %c0_i32_1 = arith.constant 0 : i32
    return %c0_i32, %c0_i32_0 : i32, i32
  }
  func.func @transform_3(%arg0: i32) -> (i32, i32) {
    %c0_i32 = arith.constant 0 : i32
    %c0_i32_0 = arith.constant 0 : i32
    %c0_i32_1 = arith.constant 0 : i32
    return %c0_i32, %c0_i32_0 : i32, i32
  }
  func.func @transform_4(%arg0: i32) -> (i32, i32) {
    %c0_i32 = arith.constant 0 : i32
    %c0_i32_0 = arith.constant 0 : i32
    %c0_i32_1 = arith.constant 0 : i32
    return %c0_i32, %c0_i32_0 : i32, i32
  }
  func.func @transform_5(%arg0: i32) -> (i32, i32) {
    %c0_i32 = arith.constant 0 : i32
    %c0_i32_0 = arith.constant 0 : i32
    %c0_i32_1 = arith.constant 0 : i32
    return %c0_i32, %c0_i32_0 : i32, i32
  }
  func.func @transform_6(%arg0: i32) -> (i32, i32) {
    %c0_i32 = arith.constant 0 : i32
    %c0_i32_0 = arith.constant 0 : i32
    %c0_i32_1 = arith.constant 0 : i32
    return %c0_i32, %c0_i32_0 : i32, i32
  }
  func.func @transform_7(%arg0: i32) -> (i32, i32) {
    %c0_i32 = arith.constant 0 : i32
    %c0_i32_0 = arith.constant 0 : i32
    return %arg0, %c0_i32 : i32, i32
  }
}

</mosaic_0001>

<bundles_post_ra>
// kernel: tpu_custom_call.1
= control target key start
LH: loop header
LB: loop body
LE: loop exit
PB: predicated region body
PF: predicated region fallthrough
CT: control target
= control target key end

     0   :  { %12 = vsyncpa [#allocation3], 0  ;;  %s4081_s0 = inlined_call_operand.hbm [shape: f32[128,2176], index: 0, kind: input, shape index: {}]   ;;  %s4082_s1 = inlined_call_operand.hbm [shape: f32[2176,256], index: 1, kind: input, shape index: {}]   ;;  %s4083_s2 = inlined_call_operand.hbm [shape: f32[1,256], index: 2, kind: input, shape index: {}]   ;;  %s4084_s3 = inlined_call_operand.hbm [shape: f32[256,128], index: 3, kind: input, shape index: {}]   ;;  %s4085_s4 = inlined_call_operand.hbm [shape: f32[1,128], index: 4, kind: input, shape index: {}]   ;;  %s4086_s5 = inlined_call_operand.hbm [shape: f32[128,128], index: 5, kind: input, shape index: {}]   ;;  %s4087_s6 = inlined_call_operand.hbm [shape: f32[1,128], index: 6, kind: input, shape index: {}]   ;;  %s4088_s7 = inlined_call_operand.hbm [shape: f32[128,128], index: 7, kind: output, shape index: {}]  }
   0x1   :  { %13 = vsyncpa [#allocation6], 0 }
   0x2   :  { %14 = vsyncpa [#allocation9], 0 }
   0x3   :  { %15 = vsyncpa [#allocation12], 0 }
   0x4   :  { %16 = vsyncpa [#allocation4], 0  ;;  %s3217_s24 = smov [#allocation5]  }
   0x5   :  { %s34_s25 = sshll.u32 %s3217_s24, 4  ;;  %s35_s25 = int_to_ptr.vmem [resolvable:$true] %s34_s25 }
   0x6   :  { %s3055_s26 = scalar_lea.vmem %s35_s25, 69632  ;;  %p3060_p1 = scmp.lt.s32.totalorder %s35_s25, %s35_s25 }
   0x7   :  { %p3056_p0 = scmp.ne.s32.totalorder %s35_s25, %s3055_s26  ;;  %p3061_p2 = scmp.lt.s32.totalorder %s3055_s26, %s3055_s26 }
   0x9   :  { %p3062_p3 = por %p3061_p2, %p3060_p1 }
   0xb   :  { %p3063_p4 = pnand %p3062_p3, %p3056_p0 }
   0xd   :  { %3066 = shalt.err (!%p3063_p4)
}
   0xe   :  { %s3218_s27 = smov 256   ;;  %s3219_s28 = smov 16  }
   0xf   :  { %40 = dma.hbm_to_vmem [thread:$0]  %s4082_s1, 69632, %s35_s25, [#allocation6], %s3218_s27, %s3218_s27, %s3219_s28  }
  0x10   :  { %s3220_s8 = smov [#allocation8]  }
  0x11   :  { %s56_s9 = sshll.u32 %s3220_s8, 4  ;;  %s57_s9 = int_to_ptr.vmem [resolvable:$true] %s56_s9 }
  0x12   :  { %s3075_s10 = scalar_lea.vmem %s57_s9, 4096  ;;  %p3080_p6 = scmp.lt.s32.totalorder %s57_s9, %s57_s9 }
  0x13   :  { %p3076_p5 = scmp.ne.s32.totalorder %s57_s9, %s3075_s10  ;;  %p3081_p7 = scmp.lt.s32.totalorder %s3075_s10, %s3075_s10 }
  0x15   :  { %p3082_p8 = por %p3081_p7, %p3080_p6 }
  0x17   :  { %p3083_p9 = pnand %p3082_p8, %p3076_p5 }
  0x19   :  { %3086 = shalt.err (!%p3083_p9)
}
  0x1a   :  { %s3221_s11 = smov 128   ;;  %s3222_s12 = smov 8  }
  0x1b   :  { %62 = dma.hbm_to_vmem [thread:$0]  %s4084_s3, 4096, %s57_s9, [#allocation9], %s3221_s11, %s3221_s11, %s3222_s12  }
  0x1c   :  { %s3223_s1 = smov [#allocation11]   ;;  %s3224_s16 = smov [#allocation2]  }
  0x1d   :  { %s78_s15 = sshll.u32 %s3223_s1, 4  ;;  %s22_s17 = sshll.u32 %s3224_s16, 4  ;;  %s79_s15 = int_to_ptr.vmem [resolvable:$true] %s78_s15  ;;  %s23_s17 = int_to_ptr.vmem [resolvable:$true] %s22_s17 }
  0x1e   :  { %s3095_s18 = scalar_lea.vmem %s79_s15, 2048  ;;  %p3100_p11 = scmp.lt.s32.totalorder %s79_s15, %s79_s15 }
  0x1f   :  { %p3096_p10 = scmp.ne.s32.totalorder %s79_s15, %s3095_s18  ;;  %p3101_p12 = scmp.lt.s32.totalorder %s3095_s18, %s3095_s18 }
  0x21   :  { %p3102_p13 = por %p3101_p12, %p3100_p11 }
  0x23   :  { %p3103_p0 = pnand %p3102_p13, %p3096_p10 }
  0x25   :  { %3106 = shalt.err (!%p3103_p0)
}
  0x26   :  { %84 = dma.hbm_to_vmem [thread:$0]  %s4086_s5, 2048, %s79_s15, [#allocation12], %s3221_s11, %s3221_s11, %s3222_s12  }
  0x27   :  { %s3115_s3 = scalar_lea.vmem %s23_s17, 34816  ;;  %p3120_p2 = scmp.lt.s32.totalorder %s23_s17, %s23_s17 }
  0x28   :  { %p3116_p1 = scmp.ne.s32.totalorder %s23_s17, %s3115_s3  ;;  %p3121_p3 = scmp.lt.s32.totalorder %s3115_s3, %s3115_s3 }
  0x2a   :  { %p3122_p4 = por %p3121_p3, %p3120_p2 }
  0x2c   :  { %p3123_p5 = pnand %p3122_p4, %p3116_p1 }
  0x2e   :  { %3126 = shalt.err (!%p3123_p5)
}
  0x2f   :  { %s3225_s21 = smov 2176   ;;  %s3226_s22 = smov 136  }
  0x30   :  { %28 = dma.hbm_to_vmem [thread:$0]  %s4081_s0, 34816, %s23_s17, [#allocation3], %s3225_s21, %s3225_s21, %s3226_s22  }
  0x31   :  { %s3227_s25 = smov [#allocation7]   ;;  %s3228_s27 = smov [#allocation10]  }
  0x32   :  { %s47_s26 = sshll.u32 %s3227_s25, 4  ;;  %s69_s28 = sshll.u32 %s3228_s27, 4  ;;  %s48_s26 = int_to_ptr.vmem [resolvable:$true] %s47_s26  ;;  %s70_s28 = int_to_ptr.vmem [resolvable:$true] %s69_s28 }
  0x33   :  { %s3135_s5 = scalar_lea.vmem %s48_s26, 32  ;;  %p3140_p7 = scmp.lt.s32.totalorder %s48_s26, %s48_s26 }
  0x34   :  { %p3136_p6 = scmp.ne.s32.totalorder %s48_s26, %s3135_s5  ;;  %p3141_p8 = scmp.lt.s32.totalorder %s3135_s5, %s3135_s5 }
  0x36   :  { %p3142_p9 = por %p3141_p8, %p3140_p7 }
  0x38   :  { %p3143_p10 = pnand %p3142_p9, %p3136_p6 }
  0x3a   :  { %3146 = shalt.err (!%p3143_p10)
}
  0x3b   :  { %50 = dma.hbm_to_vmem [thread:$0]  %s4083_s2, 32, %s48_s26, [#allocation6]  }
  0x3c   :  { %s3155_s8 = scalar_lea.vmem %s70_s28, 16  ;;  %s3159_s0 = scalar_lea.vmem %s70_s28, 32 }
  0x3d   :  { %p3156_p11 = scmp.ne.s32.totalorder %s70_s28, %s3155_s8  ;;  %p3160_p12 = scmp.lt.s32.totalorder %s70_s28, %s70_s28 }
  0x3e   :  { %p3161_p13 = scmp.lt.s32.totalorder %s3159_s0, %s3155_s8 }
  0x40   :  { %p3162_p0 = por %p3161_p13, %p3160_p12 }
  0x42   :  { %p3163_p1 = pnand %p3162_p0, %p3156_p11 }
  0x44   :  { %3166 = shalt.err (!%p3163_p1)
}
  0x45   :  { %72 = dma.hbm_to_vmem [thread:$0]  %s4085_s4, 16, %s70_s28, [#allocation9]  }
  0x46   :  { %s3229_s13 = smov [#allocation13]  }
  0x47   :  { %s91_s14 = sshll.u32 %s3229_s13, 4  ;;  %s92_s14 = int_to_ptr.vmem [resolvable:$true] %s91_s14 }
  0x48   :  { %s3175_s1 = scalar_lea.vmem %s92_s14, 16  ;;  %s3179_s15 = scalar_lea.vmem %s92_s14, 32 }
  0x49   :  { %p3176_p2 = scmp.ne.s32.totalorder %s92_s14, %s3175_s1  ;;  %p3180_p3 = scmp.lt.s32.totalorder %s92_s14, %s92_s14 }
  0x4a   :  { %p3181_p4 = scmp.lt.s32.totalorder %s3179_s15, %s3175_s1 }
  0x4c   :  { %p3182_p5 = por %p3181_p4, %p3180_p3 }
  0x4e   :  { %p3183_p6 = pnand %p3182_p5, %p3176_p2 }
  0x50   :  { %3186 = shalt.err (!%p3183_p6)
}
  0x51   :  { %94 = dma.hbm_to_vmem [thread:$0]  %s4087_s6, 16, %s92_s14, [#allocation12]  }
  0x52   :  { %3207 = dma.done.wait [#allocation3], 34816  }
  0x53   :  { %3208 = vsyncadd [#allocation3], 4294932480 }
  0x54   :  { %3209 = dma.done.wait [#allocation6], 69664  }
  0x55   :  { %3210 = vsyncadd [#allocation6], 4294897632 }
  0x56   :  { %3211 = dma.done.wait [#allocation9], 4112  }
  0x57   :  { %3212 = vsyncadd [#allocation9], 4294963184 }
  0x58   :  { %3213 = dma.done.wait [#allocation12], 2064  }
  0x59   :  { %3214 = vsyncadd [#allocation12], 4294965232  ;;  %v419_v0 = vld [vmem:[#allocation5 + $0xf8] sm:$0xff]  ;;  %v418_v1 = vld [vmem:[#allocation5 + $0xf0] sm:$0xff]  ;;  %s3231_s4 = smov [#allocation14]  }
  0x5a   :  { %v417_v2 = vld [vmem:[#allocation5 + $0xe8] sm:$0xff]  ;;  %944 = vmatprep.subr.mxu0 %v419_v0  ;;  %v483_v3 = vld [vmem:[#allocation5 + $0x2f8] sm:$0xff]  ;;  %v416_v4 = vld [vmem:[#allocation5 + $0xe0] sm:$0xff]  ;;  %s2814_s6 = sshll.u32 %s3231_s4, 4  ;;  %s2815_s6 = int_to_ptr.vmem [resolvable:$true] %s2814_s6 }
  0x5b   :  { %v482_v5 = vld [vmem:[#allocation5 + $0x2f0] sm:$0xff]  ;;  %945 = vmatpush1.msra.mxu0 %v418_v1  ;;  %1105 = vmatprep.subr.mxu1 %v483_v3  ;;  %v415_v6 = vld [vmem:[#allocation5 + $0xd8] sm:$0xff]  ;;  %v481_v7 = vld [vmem:[#allocation5 + $0x2e8] sm:$0xff]  ;;  %s3187_s17 = scalar_lea.vmem %s2815_s6, 2048  ;;  %p3192_p8 = scmp.lt.s32.totalorder %s2815_s6, %s2815_s6 }
  0x5c   :  { %946 = vmatprep.subr.mxu0 %v417_v2  ;;  %1106 = vmatpush1.msra.mxu1 %v482_v5  ;;  %v414_v8 = vld [vmem:[#allocation5 + $0xd0] sm:$0xff]  ;;  %v480_v9 = vld [vmem:[#allocation5 + $0x2e0] sm:$0xff]  ;;  %v479_v10 = vld [vmem:[#allocation5 + $0x2d8] sm:$0xff]  ;;  %p3188_p7 = scmp.ne.s32.totalorder %s2815_s6, %s3187_s17  ;;  %p3193_p9 = scmp.lt.s32.totalorder %s3187_s17, %s3187_s17 }
  0x5d   :  { %947 = vmatpush1.msra.mxu0 %v416_v4  ;;  %1107 = vmatprep.subr.mxu1 %v481_v7  ;;  %v413_v11 = vld [vmem:[#allocation5 + $0xc8] sm:$0xff]  ;;  %v478_v12 = vld [vmem:[#allocation5 + $0x2d0] sm:$0xff]  ;;  %v412_v13 = vld [vmem:[#allocation5 + $0xc0] sm:$0xff] }
  0x5e   :  { %948 = vmatprep.subr.mxu0 %v415_v6  ;;  %1108 = vmatpush1.msra.mxu1 %v480_v9  ;;  %v477_v14 = vld [vmem:[#allocation5 + $0x2c8] sm:$0xff]  ;;  %v411_v15 = vld [vmem:[#allocation5 + $0xb8] sm:$0xff]  ;;  %v476_v16 = vld [vmem:[#allocation5 + $0x2c0] sm:$0xff]  ;;  %p3194_p10 = por %p3193_p9, %p3192_p8 }
  0x5f   :  { %949 = vmatpush1.msra.mxu0 %v414_v8  ;;  %1109 = vmatprep.subr.mxu1 %v479_v10  ;;  %v410_v17 = vld [vmem:[#allocation5 + $0xb0] sm:$0xff]  ;;  %v475_v18 = vld [vmem:[#allocation5 + $0x2b8] sm:$0xff]  ;;  %v409_v19 = vld [vmem:[#allocation5 + $0xa8] sm:$0xff] }
  0x60   :  { %950 = vmatprep.subr.mxu0 %v413_v11  ;;  %1110 = vmatpush1.msra.mxu1 %v478_v12  ;;  %v474_v20 = vld [vmem:[#allocation5 + $0x2b0] sm:$0xff]  ;;  %v408_v21 = vld [vmem:[#allocation5 + $0xa0] sm:$0xff]  ;;  %v473_v22 = vld [vmem:[#allocation5 + $0x2a8] sm:$0xff]  ;;  %p3195_p11 = pnand %p3194_p10, %p3188_p7 }
  0x61   :  { %951 = vmatpush1.msra.mxu0 %v412_v13  ;;  %1111 = vmatprep.subr.mxu1 %v477_v14  ;;  %v407_v23 = vld [vmem:[#allocation5 + $0x98] sm:$0xff]  ;;  %v472_v24 = vld [vmem:[#allocation5 + $0x2a0] sm:$0xff]  ;;  %v406_v25 = vld [vmem:[#allocation5 + $0x90] sm:$0xff] }
  0x62   :  { %952 = vmatprep.subr.mxu0 %v411_v15  ;;  %1112 = vmatpush1.msra.mxu1 %v476_v16  ;;  %v471_v26 = vld [vmem:[#allocation5 + $0x298] sm:$0xff]  ;;  %v405_v27 = vld [vmem:[#allocation5 + $0x88] sm:$0xff]  ;;  %v470_v28 = vld [vmem:[#allocation5 + $0x290] sm:$0xff] }
  0x63   :  { %953 = vmatpush1.msra.mxu0 %v410_v17  ;;  %1113 = vmatprep.subr.mxu1 %v475_v18  ;;  %v404_v29 = vld [vmem:[#allocation5 + $0x80] sm:$0xff]  ;;  %v469_v30 = vld [vmem:[#allocation5 + $0x288] sm:$0xff]  ;;  %v403_v31 = vld [vmem:[#allocation5 + $0x78] sm:$0xff] }
  0x64   :  { %954 = vmatprep.subr.mxu0 %v409_v19  ;;  %1114 = vmatpush1.msra.mxu1 %v474_v20  ;;  %v468_v32 = vld [vmem:[#allocation5 + $0x280] sm:$0xff]  ;;  %v402_v33 = vld [vmem:[#allocation5 + $0x70] sm:$0xff]  ;;  %v467_v34 = vld [vmem:[#allocation5 + $0x278] sm:$0xff] }
  0x65   :  { %955 = vmatpush1.msra.mxu0 %v408_v21  ;;  %1115 = vmatprep.subr.mxu1 %v473_v22  ;;  %v401_v35 = vld [vmem:[#allocation5 + $0x68] sm:$0xff]  ;;  %v466_v36 = vld [vmem:[#allocation5 + $0x270] sm:$0xff]  ;;  %v400_v37 = vld [vmem:[#allocation5 + $0x60] sm:$0xff] }
  0x66   :  { %956 = vmatprep.subr.mxu0 %v407_v23  ;;  %1116 = vmatpush1.msra.mxu1 %v472_v24  ;;  %v465_v38 = vld [vmem:[#allocation5 + $0x268] sm:$0xff]  ;;  %v399_v39 = vld [vmem:[#allocation5 + $0x58] sm:$0xff]  ;;  %v464_v40 = vld [vmem:[#allocation5 + $0x260] sm:$0xff] }
  0x67   :  { %957 = vmatpush1.msra.mxu0 %v406_v25  ;;  %1117 = vmatprep.subr.mxu1 %v471_v26  ;;  %v398_v41 = vld [vmem:[#allocation5 + $0x50] sm:$0xff]  ;;  %v463_v42 = vld [vmem:[#allocation5 + $0x258] sm:$0xff]  ;;  %v397_v43 = vld [vmem:[#allocation5 + $0x48] sm:$0xff] }
  0x68   :  { %958 = vmatprep.subr.mxu0 %v405_v27  ;;  %1118 = vmatpush1.msra.mxu1 %v470_v28  ;;  %v462_v44 = vld [vmem:[#allocation5 + $0x250] sm:$0xff]  ;;  %v396_v45 = vld [vmem:[#allocation5 + $0x40] sm:$0xff]  ;;  %v461_v46 = vld [vmem:[#allocation5 + $0x248] sm:$0xff] }
  0x69   :  { %959 = vmatpush1.msra.mxu0 %v404_v29  ;;  %1119 = vmatprep.subr.mxu1 %v469_v30  ;;  %v395_v47 = vld [vmem:[#allocation5 + $0x38] sm:$0xff]  ;;  %v460_v48 = vld [vmem:[#allocation5 + $0x240] sm:$0xff]  ;;  %v394_v49 = vld [vmem:[#allocation5 + $0x30] sm:$0xff] }
  0x6a   :  { %960 = vmatprep.subr.mxu0 %v403_v31  ;;  %1120 = vmatpush1.msra.mxu1 %v468_v32  ;;  %v459_v50 = vld [vmem:[#allocation5 + $0x238] sm:$0xff]  ;;  %v393_v51 = vld [vmem:[#allocation5 + $0x28] sm:$0xff]  ;;  %v458_v52 = vld [vmem:[#allocation5 + $0x230] sm:$0xff] }
  0x6b   :  { %961 = vmatpush1.msra.mxu0 %v402_v33  ;;  %1121 = vmatprep.subr.mxu1 %v467_v34  ;;  %v392_v53 = vld [vmem:[#allocation5 + $0x20] sm:$0xff]  ;;  %v457_v54 = vld [vmem:[#allocation5 + $0x228] sm:$0xff]  ;;  %v391_v55 = vld [vmem:[#allocation5 + $0x18] sm:$0xff] }
  0x6c   :  { %962 = vmatprep.subr.mxu0 %v401_v35  ;;  %1122 = vmatpush1.msra.mxu1 %v466_v36  ;;  %v456_v56 = vld [vmem:[#allocation5 + $0x220] sm:$0xff]  ;;  %v390_v57 = vld [vmem:[#allocation5 + $0x10] sm:$0xff]  ;;  %v455_v58 = vld [vmem:[#allocation5 + $0x218] sm:$0xff] }
  0x6d   :  { %963 = vmatpush1.msra.mxu0 %v400_v37  ;;  %1123 = vmatprep.subr.mxu1 %v465_v38  ;;  %v389_v59 = vld [vmem:[#allocation5 + $0x8] sm:$0xff]  ;;  %v454_v60 = vld [vmem:[#allocation5 + $0x210] sm:$0xff]  ;;  %v388_v61 = vld [vmem:[#allocation5] sm:$0xff] }
  0x6e   :  { %964 = vmatprep.subr.mxu0 %v399_v39  ;;  %1124 = vmatpush1.msra.mxu1 %v464_v40  ;;  %v453_v62 = vld [vmem:[#allocation5 + $0x208] sm:$0xff]  ;;  %v451_v63 = vld [vmem:[#allocation5 + $0x1f8] sm:$0xff]  ;;  %v452_v0 = vld [vmem:[#allocation5 + $0x200] sm:$0xff] }
  0x6f   :  { %965 = vmatpush1.msra.mxu0 %v398_v41  ;;  %1125 = vmatprep.subr.mxu1 %v463_v42  ;;  %v450_v1 = vld [vmem:[#allocation5 + $0x1f0] sm:$0xff]  ;;  %v515_v2 = vld [vmem:[#allocation5 + $0x3f8] sm:$0xff]  ;;  %v449_v3 = vld [vmem:[#allocation5 + $0x1e8] sm:$0xff] }
  0x70   :  { %966 = vmatprep.subr.mxu0 %v397_v43  ;;  %1126 = vmatpush1.msra.mxu1 %v462_v44  ;;  %v514_v4 = vld [vmem:[#allocation5 + $0x3f0] sm:$0xff]  ;;  %v448_v5 = vld [vmem:[#allocation5 + $0x1e0] sm:$0xff]  ;;  %v513_v6 = vld [vmem:[#allocation5 + $0x3e8] sm:$0xff] }
  0x71   :  { %967 = vmatpush1.msra.mxu0 %v396_v45  ;;  %1127 = vmatprep.subr.mxu1 %v461_v46  ;;  %v447_v7 = vld [vmem:[#allocation5 + $0x1d8] sm:$0xff]  ;;  %v512_v8 = vld [vmem:[#allocation5 + $0x3e0] sm:$0xff]  ;;  %v446_v9 = vld [vmem:[#allocation5 + $0x1d0] sm:$0xff] }
  0x72   :  { %968 = vmatprep.subr.mxu0 %v395_v47  ;;  %1128 = vmatpush1.msra.mxu1 %v460_v48  ;;  %v511_v10 = vld [vmem:[#allocation5 + $0x3d8] sm:$0xff]  ;;  %v445_v11 = vld [vmem:[#allocation5 + $0x1c8] sm:$0xff]  ;;  %v510_v12 = vld [vmem:[#allocation5 + $0x3d0] sm:$0xff] }
  0x73   :  { %969 = vmatpush1.msra.mxu0 %v394_v49  ;;  %1129 = vmatprep.subr.mxu1 %v459_v50  ;;  %v444_v13 = vld [vmem:[#allocation5 + $0x1c0] sm:$0xff]  ;;  %v509_v14 = vld [vmem:[#allocation5 + $0x3c8] sm:$0xff]  ;;  %v443_v15 = vld [vmem:[#allocation5 + $0x1b8] sm:$0xff] }
  0x74   :  { %970 = vmatprep.subr.mxu0 %v393_v51  ;;  %1130 = vmatpush1.msra.mxu1 %v458_v52  ;;  %v508_v16 = vld [vmem:[#allocation5 + $0x3c0] sm:$0xff]  ;;  %v442_v17 = vld [vmem:[#allocation5 + $0x1b0] sm:$0xff]  ;;  %v507_v18 = vld [vmem:[#allocation5 + $0x3b8] sm:$0xff] }
  0x75   :  { %971 = vmatpush1.msra.mxu0 %v392_v53  ;;  %1131 = vmatprep.subr.mxu1 %v457_v54  ;;  %v441_v19 = vld [vmem:[#allocation5 + $0x1a8] sm:$0xff]  ;;  %v506_v20 = vld [vmem:[#allocation5 + $0x3b0] sm:$0xff]  ;;  %v440_v21 = vld [vmem:[#allocation5 + $0x1a0] sm:$0xff] }
  0x76   :  { %972 = vmatprep.subr.mxu0 %v391_v55  ;;  %1132 = vmatpush1.msra.mxu1 %v456_v56  ;;  %v505_v22 = vld [vmem:[#allocation5 + $0x3a8] sm:$0xff]  ;;  %v439_v23 = vld [vmem:[#allocation5 + $0x198] sm:$0xff]  ;;  %v504_v24 = vld [vmem:[#allocation5 + $0x3a0] sm:$0xff] }
  0x77   :  { %973 = vmatpush1.msra.mxu0 %v390_v57  ;;  %1133 = vmatprep.subr.mxu1 %v455_v58  ;;  %v438_v25 = vld [vmem:[#allocation5 + $0x190] sm:$0xff]  ;;  %v503_v26 = vld [vmem:[#allocation5 + $0x398] sm:$0xff]  ;;  %v437_v27 = vld [vmem:[#allocation5 + $0x188] sm:$0xff] }
  0x78   :  { %974 = vmatprep.subr.mxu0 %v389_v59  ;;  %1134 = vmatpush1.msra.mxu1 %v454_v60  ;;  %v502_v28 = vld [vmem:[#allocation5 + $0x390] sm:$0xff]  ;;  %v436_v29 = vld [vmem:[#allocation5 + $0x180] sm:$0xff]  ;;  %v501_v30 = vld [vmem:[#allocation5 + $0x388] sm:$0xff] }
  0x79   :  { %975 = vmatpush1.msra.mxu0 %v388_v61  ;;  %1135 = vmatprep.subr.mxu1 %v453_v62  ;;  %v435_v31 = vld [vmem:[#allocation5 + $0x178] sm:$0xff]  ;;  %v500_v32 = vld [vmem:[#allocation5 + $0x380] sm:$0xff]  ;;  %v434_v33 = vld [vmem:[#allocation5 + $0x170] sm:$0xff] }
  0x7a   :  { %976 = vmatprep.subr.mxu0 %v451_v63  ;;  %1136 = vmatpush1.msra.mxu1 %v452_v0  ;;  %v499_v34 = vld [vmem:[#allocation5 + $0x378] sm:$0xff]  ;;  %v433_v35 = vld [vmem:[#allocation5 + $0x168] sm:$0xff]  ;;  %v498_v36 = vld [vmem:[#allocation5 + $0x370] sm:$0xff] }
  0x7b   :  { %977 = vmatpush2.msra.mxu0 %v450_v1  ;;  %1137 = vmatprep.subr.mxu1 %v515_v2  ;;  %v432_v37 = vld [vmem:[#allocation5 + $0x160] sm:$0xff]  ;;  %v497_v38 = vld [vmem:[#allocation5 + $0x368] sm:$0xff]  ;;  %v431_v39 = vld [vmem:[#allocation5 + $0x158] sm:$0xff] }
  0x7c   :  { %978 = vmatprep.subr.mxu0 %v449_v3  ;;  %1138 = vmatpush2.msra.mxu1 %v514_v4  ;;  %v496_v40 = vld [vmem:[#allocation5 + $0x360] sm:$0xff]  ;;  %v430_v41 = vld [vmem:[#allocation5 + $0x150] sm:$0xff]  ;;  %v495_v42 = vld [vmem:[#allocation5 + $0x358] sm:$0xff] }
  0x7d   :  { %979 = vmatpush2.msra.mxu0 %v448_v5  ;;  %1139 = vmatprep.subr.mxu1 %v513_v6  ;;  %v429_v43 = vld [vmem:[#allocation5 + $0x148] sm:$0xff]  ;;  %v494_v44 = vld [vmem:[#allocation5 + $0x350] sm:$0xff]  ;;  %v428_v45 = vld [vmem:[#allocation5 + $0x140] sm:$0xff] }
  0x7e   :  { %980 = vmatprep.subr.mxu0 %v447_v7  ;;  %1140 = vmatpush2.msra.mxu1 %v512_v8  ;;  %v493_v46 = vld [vmem:[#allocation5 + $0x348] sm:$0xff]  ;;  %v427_v47 = vld [vmem:[#allocation5 + $0x138] sm:$0xff]  ;;  %v492_v48 = vld [vmem:[#allocation5 + $0x340] sm:$0xff] }
  0x7f   :  { %981 = vmatpush2.msra.mxu0 %v446_v9  ;;  %1141 = vmatprep.subr.mxu1 %v511_v10  ;;  %v426_v49 = vld [vmem:[#allocation5 + $0x130] sm:$0xff]  ;;  %v491_v50 = vld [vmem:[#allocation5 + $0x338] sm:$0xff]  ;;  %v425_v51 = vld [vmem:[#allocation5 + $0x128] sm:$0xff] }
  0x80   :  { %982 = vmatprep.subr.mxu0 %v445_v11  ;;  %1142 = vmatpush2.msra.mxu1 %v510_v12  ;;  %v490_v52 = vld [vmem:[#allocation5 + $0x330] sm:$0xff]  ;;  %v424_v53 = vld [vmem:[#allocation5 + $0x120] sm:$0xff]  ;;  %v489_v54 = vld [vmem:[#allocation5 + $0x328] sm:$0xff] }
  0x81   :  { %983 = vmatpush2.msra.mxu0 %v444_v13  ;;  %1143 = vmatprep.subr.mxu1 %v509_v14  ;;  %v423_v55 = vld [vmem:[#allocation5 + $0x118] sm:$0xff]  ;;  %v488_v56 = vld [vmem:[#allocation5 + $0x320] sm:$0xff]  ;;  %v422_v57 = vld [vmem:[#allocation5 + $0x110] sm:$0xff] }
  0x82   :  { %984 = vmatprep.subr.mxu0 %v443_v15  ;;  %1144 = vmatpush2.msra.mxu1 %v508_v16  ;;  %v487_v58 = vld [vmem:[#allocation5 + $0x318] sm:$0xff]  ;;  %v421_v59 = vld [vmem:[#allocation5 + $0x108] sm:$0xff]  ;;  %v420_v61 = vld [vmem:[#allocation5 + $0x100] sm:$0xff] }
  0x83   :  { %985 = vmatpush2.msra.mxu0 %v442_v17  ;;  %1145 = vmatprep.subr.mxu1 %v507_v18  ;;  %v117_v60 = vld [vmem:[#allocation2 + $0x8] sm:$0xff]  ;;  %v486_v62 = vld [vmem:[#allocation5 + $0x310] sm:$0xff]  ;;  %v116_v63 = vld [vmem:[#allocation2] sm:$0xff] }
  0x84   :  { %986 = vmatprep.subr.mxu0 %v441_v19  ;;  %1146 = vmatpush2.msra.mxu1 %v506_v20  ;;  %v485_v0 = vld [vmem:[#allocation5 + $0x308] sm:$0xff]  ;;  %v547_v1 = vld [vmem:[#allocation5 + $0x4f8] sm:$0xff]  ;;  %v484_v2 = vld [vmem:[#allocation5 + $0x300] sm:$0xff] }
  0x85   :  { %987 = vmatpush2.msra.mxu0 %v440_v21  ;;  %1147 = vmatprep.subr.mxu1 %v505_v22  ;;  %v119_v3 = vld [vmem:[#allocation2 + $0x18] sm:$0xff]  ;;  %v546_v4 = vld [vmem:[#allocation5 + $0x4f0] sm:$0xff]  ;;  %v545_v6 = vld [vmem:[#allocation5 + $0x4e8] sm:$0xff] }
  0x86   :  { %988 = vmatprep.subr.mxu0 %v439_v23  ;;  %1148 = vmatpush2.msra.mxu1 %v504_v24  ;;  %v118_v5 = vld [vmem:[#allocation2 + $0x10] sm:$0xff]  ;;  %v611_v7 = vld [vmem:[#allocation5 + $0x6f8] sm:$0xff]  ;;  %v544_v9 = vld [vmem:[#allocation5 + $0x4e0] sm:$0xff] }
  0x87   :  { %989 = vmatpush2.msra.mxu0 %v438_v25  ;;  %1149 = vmatprep.subr.mxu1 %v503_v26  ;;  %v134_v8 = vld [vmem:[#allocation2 + $0x90] sm:$0xff]  ;;  %v133_v11 = vld [vmem:[#allocation2 + $0x88] sm:$0xff]  ;;  %v543_v12 = vld [vmem:[#allocation5 + $0x4d8] sm:$0xff] }
  0x88   :  { %990 = vmatprep.subr.mxu0 %v437_v27  ;;  %1150 = vmatpush2.msra.mxu1 %v502_v28  ;;  %v610_v10 = vld [vmem:[#allocation5 + $0x6f0] sm:$0xff]  ;;  %v609_v13 = vld [vmem:[#allocation5 + $0x6e8] sm:$0xff]  ;;  %v136_v14 = vld [vmem:[#allocation2 + $0xa0] sm:$0xff] }
  0x89   :  { %991 = vmatpush2.msra.mxu0 %v436_v29  ;;  %1151 = vmatprep.subr.mxu1 %v501_v30  ;;  %v542_v15 = vld [vmem:[#allocation5 + $0x4d0] sm:$0xff]  ;;  %v608_v16 = vld [vmem:[#allocation5 + $0x6e0] sm:$0xff]  ;;  %v135_v17 = vld [vmem:[#allocation2 + $0x98] sm:$0xff] }
  0x8a   :  { %992 = vmatprep.subr.mxu0 %v435_v31  ;;  %1152 = vmatpush2.msra.mxu1 %v500_v32  ;;  %v541_v18 = vld [vmem:[#allocation5 + $0x4c8] sm:$0xff]  ;;  %v607_v19 = vld [vmem:[#allocation5 + $0x6d8] sm:$0xff]  ;;  %v540_v21 = vld [vmem:[#allocation5 + $0x4c0] sm:$0xff] }
  0x8b   :  { %993 = vmatpush2.msra.mxu0 %v434_v33  ;;  %1153 = vmatprep.subr.mxu1 %v499_v34  ;;  %v151_v20 = vld [vmem:[#allocation2 + $0x118] sm:$0xff]  ;;  %v606_v22 = vld [vmem:[#allocation5 + $0x6d0] sm:$0xff]  ;;  %v605_v25 = vld [vmem:[#allocation5 + $0x6c8] sm:$0xff] }
  0x8c   :  { %994 = vmatprep.subr.mxu0 %v433_v35  ;;  %1154 = vmatpush2.msra.mxu1 %v498_v36  ;;  %v150_v23 = vld [vmem:[#allocation2 + $0x110] sm:$0xff]  ;;  %v539_v24 = vld [vmem:[#allocation5 + $0x4b8] sm:$0xff]  ;;  %v153_v26 = vld [vmem:[#allocation2 + $0x128] sm:$0xff] }
  0x8d   :  { %995 = vmatpush2.msra.mxu0 %v432_v37  ;;  %1155 = vmatprep.subr.mxu1 %v497_v38  ;;  %v538_v27 = vld [vmem:[#allocation5 + $0x4b0] sm:$0xff]  ;;  %v604_v28 = vld [vmem:[#allocation5 + $0x6c0] sm:$0xff]  ;;  %v537_v30 = vld [vmem:[#allocation5 + $0x4a8] sm:$0xff] }
  0x8e   :  { %996 = vmatprep.subr.mxu0 %v431_v39  ;;  %1156 = vmatpush2.msra.mxu1 %v496_v40  ;;  %v152_v29 = vld [vmem:[#allocation2 + $0x120] sm:$0xff]  ;;  %v603_v31 = vld [vmem:[#allocation5 + $0x6b8] sm:$0xff]  ;;  %v602_v34 = vld [vmem:[#allocation5 + $0x6b0] sm:$0xff] }
  0x8f   :  { %997 = vmatpush2.msra.mxu0 %v430_v41  ;;  %1157 = vmatprep.subr.mxu1 %v495_v42  ;;  %v168_v32 = vld [vmem:[#allocation2 + $0x1a0] sm:$0xff]  ;;  %v167_v35 = vld [vmem:[#allocation2 + $0x198] sm:$0xff]  ;;  %v601_v37 = vld [vmem:[#allocation5 + $0x6a8] sm:$0xff] }
  0x90   :  { %998 = vmatprep.subr.mxu0 %v429_v43  ;;  %1158 = vmatpush2.msra.mxu1 %v494_v44  ;;  %v536_v33 = vld [vmem:[#allocation5 + $0x4a0] sm:$0xff]  ;;  %v535_v36 = vld [vmem:[#allocation5 + $0x498] sm:$0xff]  ;;  %v170_v38 = vld [vmem:[#allocation2 + $0x1b0] sm:$0xff] }
  0x91   :  { %999 = vmatpush2.msra.mxu0 %v428_v45  ;;  %1159 = vmatprep.subr.mxu1 %v493_v46  ;;  %v534_v39 = vld [vmem:[#allocation5 + $0x490] sm:$0xff]  ;;  %v600_v40 = vld [vmem:[#allocation5 + $0x6a0] sm:$0xff]  ;;  %v169_v41 = vld [vmem:[#allocation2 + $0x1a8] sm:$0xff] }
  0x92   :  { %1000 = vmatprep.subr.mxu0 %v427_v47  ;;  %1160 = vmatpush2.msra.mxu1 %v492_v48  ;;  %v533_v42 = vld [vmem:[#allocation5 + $0x488] sm:$0xff]  ;;  %v599_v43 = vld [vmem:[#allocation5 + $0x698] sm:$0xff]  ;;  %v532_v45 = vld [vmem:[#allocation5 + $0x480] sm:$0xff] }
  0x93   :  { %1001 = vmatpush2.msra.mxu0 %v426_v49  ;;  %1161 = vmatprep.subr.mxu1 %v491_v50  ;;  %v185_v44 = vld [vmem:[#allocation2 + $0x228] sm:$0xff]  ;;  %v598_v46 = vld [vmem:[#allocation5 + $0x690] sm:$0xff]  ;;  %v184_v47 = vld [vmem:[#allocation2 + $0x220] sm:$0xff] }
  0x94   :  { %1002 = vmatprep.subr.mxu0 %v425_v51  ;;  %1162 = vmatpush2.msra.mxu1 %v490_v52  ;;  %v531_v48 = vld [vmem:[#allocation5 + $0x478] sm:$0xff]  ;;  %v597_v49 = vld [vmem:[#allocation5 + $0x688] sm:$0xff]  ;;  %v530_v51 = vld [vmem:[#allocation5 + $0x470] sm:$0xff] }
  0x95   :  { %1003 = vmatpush2.msra.mxu0 %v424_v53  ;;  %1163 = vmatprep.subr.mxu1 %v489_v54  ;;  %v187_v50 = vld [vmem:[#allocation2 + $0x238] sm:$0xff]  ;;  %v596_v52 = vld [vmem:[#allocation5 + $0x680] sm:$0xff]  ;;  %v186_v53 = vld [vmem:[#allocation2 + $0x230] sm:$0xff] }
  0x96   :  { %1004 = vmatprep.subr.mxu0 %v423_v55  ;;  %1164 = vmatpush2.msra.mxu1 %v488_v56  ;;  %v529_v54 = vld [vmem:[#allocation5 + $0x468] sm:$0xff]  ;;  %v595_v55 = vld [vmem:[#allocation5 + $0x678] sm:$0xff]  ;;  %v202_v56 = vld [vmem:[#allocation2 + $0x2b0] sm:$0xff] }
  0x97   :  { %1005 = vmatpush2.msra.mxu0 %v422_v57  ;;  %1165 = vmatprep.subr.mxu1 %v487_v58  ;;  %v528_v57 = vld [vmem:[#allocation5 + $0x460] sm:$0xff]  ;;  %v594_v58 = vld [vmem:[#allocation5 + $0x670] sm:$0xff] }
  0x98   :  { %1006 = vmatprep.subr.mxu0 %v421_v59  ;;  %1008 = vmatprep.mubr.f32.mxu0 %v117_v60  ;;  %v201_v59 = vld [vmem:[#allocation2 + $0x2a8] sm:$0xff]  ;;  %v527_v60 = vld [vmem:[#allocation5 + $0x458] sm:$0xff] }
  0x99   :  { %1007 = vmatpush2.msra.mxu0 %v420_v61  ;;  %1166 = vmatpush2.msra.mxu1 %v486_v62  ;;  %v593_v61 = vld [vmem:[#allocation5 + $0x668] sm:$0xff]  ;;  %v204_v62 = vld [vmem:[#allocation2 + $0x2c0] sm:$0xff] }
  0x9a   :  { %1009 = vmatmul.mubr.f32.vlgmr.msra.gmra.mxu0 %v116_v63  ;;  %1167 = vmatprep.subr.mxu1 %v485_v0  ;;  %v526_v63 = vld [vmem:[#allocation5 + $0x450] sm:$0xff]  ;;  %v592_v0 = vld [vmem:[#allocation5 + $0x660] sm:$0xff] }
  0x9b   :  { %1266 = vmatprep.subr.mxu0 %v547_v1  ;;  %1168 = vmatpush2.msra.mxu1 %v484_v2  ;;  %v203_v1 = vld [vmem:[#allocation2 + $0x2b8] sm:$0xff]  ;;  %v525_v2 = vld [vmem:[#allocation5 + $0x448] sm:$0xff] }
  0x9c   :  { %1169 = vmatprep.mubr.f32.mxu1 %v119_v3  ;;  %1267 = vmatpush1.msra.mxu0 %v546_v4  ;;  %v591_v3 = vld [vmem:[#allocation5 + $0x658] sm:$0xff] }
  0x9d   :  { %1170 = vmatmul.mubr.f32.vlgmr.msra.gmra.mxu1 %v118_v5  ;;  %1268 = vmatprep.subr.mxu0 %v545_v6  ;;  %v219_v4 = vld [vmem:[#allocation2 + $0x338] sm:$0xff]  ;;  %v524_v5 = vld [vmem:[#allocation5 + $0x440] sm:$0xff]  ;;  %v590_v6 = vld [vmem:[#allocation5 + $0x650] sm:$0xff] }
  0x9e   :  { %1427 = vmatprep.subr.mxu1 %v611_v7  ;;  %1014 = vmatprep.mubr.f32.mxu0 %v134_v8  ;;  %v218_v7 = vld [vmem:[#allocation2 + $0x330] sm:$0xff]  ;;  %v523_v8 = vld [vmem:[#allocation5 + $0x438] sm:$0xff] }
  0x9f   :  { %1269 = vmatpush1.msra.mxu0 %v544_v9  ;;  %1428 = vmatpush1.msra.mxu1 %v610_v10  ;;  %v589_v9 = vld [vmem:[#allocation5 + $0x648] sm:$0xff] }
  0xa0   :  { %1015 = vmatmul.mubr.f32.gmra.mxu0 %v133_v11  ;;  %1270 = vmatprep.subr.mxu0 %v543_v12  ;;  %v221_v10 = vld [vmem:[#allocation2 + $0x348] sm:$0xff]  ;;  %v522_v11 = vld [vmem:[#allocation5 + $0x430] sm:$0xff]  ;;  %v588_v12 = vld [vmem:[#allocation5 + $0x640] sm:$0xff] }
  0xa1   :  { %1429 = vmatprep.subr.mxu1 %v609_v13  ;;  %1175 = vmatprep.mubr.f32.mxu1 %v136_v14  ;;  %v220_v13 = vld [vmem:[#allocation2 + $0x340] sm:$0xff]  ;;  %v521_v14 = vld [vmem:[#allocation5 + $0x428] sm:$0xff] }
  0xa2   :  { %1271 = vmatpush1.msra.mxu0 %v542_v15  ;;  %1430 = vmatpush1.msra.mxu1 %v608_v16  ;;  %v587_v15 = vld [vmem:[#allocation5 + $0x638] sm:$0xff]  ;;  %v236_v16 = vld [vmem:[#allocation2 + $0x3c0] sm:$0xff] }
  0xa3   :  { %1176 = vmatmul.mubr.f32.gmra.mxu1 %v135_v17  ;;  %1272 = vmatprep.subr.mxu0 %v541_v18  ;;  %v520_v17 = vld [vmem:[#allocation5 + $0x420] sm:$0xff]  ;;  %v586_v18 = vld [vmem:[#allocation5 + $0x630] sm:$0xff] }
  0xa4   :  { %1431 = vmatprep.subr.mxu1 %v607_v19  ;;  %1020 = vmatprep.mubr.f32.mxu0 %v151_v20  ;;  %v235_v19 = vld [vmem:[#allocation2 + $0x3b8] sm:$0xff] }
  0xa5   :  { %1273 = vmatpush1.msra.mxu0 %v540_v21  ;;  %1432 = vmatpush1.msra.mxu1 %v606_v22  ;;  %v519_v20 = vld [vmem:[#allocation5 + $0x418] sm:$0xff]  ;;  %v585_v21 = vld [vmem:[#allocation5 + $0x628] sm:$0xff]  ;;  %v238_v22 = vld [vmem:[#allocation2 + $0x3d0] sm:$0xff] }
  0xa6   :  { %1021 = vmatmul.mubr.f32.gmra.mxu0 %v150_v23  ;;  %1274 = vmatprep.subr.mxu0 %v539_v24  ;;  %v518_v23 = vld [vmem:[#allocation5 + $0x410] sm:$0xff]  ;;  %v584_v24 = vld [vmem:[#allocation5 + $0x620] sm:$0xff] }
  0xa7   :  { %1433 = vmatprep.subr.mxu1 %v605_v25  ;;  %1181 = vmatprep.mubr.f32.mxu1 %v153_v26  ;;  %v237_v25 = vld [vmem:[#allocation2 + $0x3c8] sm:$0xff] }
  0xa8   :  { %1275 = vmatpush1.msra.mxu0 %v538_v27  ;;  %1434 = vmatpush1.msra.mxu1 %v604_v28  ;;  %v517_v26 = vld [vmem:[#allocation5 + $0x408] sm:$0xff]  ;;  %v583_v27 = vld [vmem:[#allocation5 + $0x618] sm:$0xff] }
  0xa9   :  { %1182 = vmatmul.mubr.f32.gmra.mxu1 %v152_v29  ;;  %1276 = vmatprep.subr.mxu0 %v537_v30  ;;  %v253_v28 = vld [vmem:[#allocation2 + $0x448] sm:$0xff]  ;;  %v516_v29 = vld [vmem:[#allocation5 + $0x400] sm:$0xff]  ;;  %v582_v30 = vld [vmem:[#allocation5 + $0x610] sm:$0xff] }
  0xaa   :  { %1435 = vmatprep.subr.mxu1 %v603_v31  ;;  %1026 = vmatprep.mubr.f32.mxu0 %v168_v32  ;;  %v252_v31 = vld [vmem:[#allocation2 + $0x440] sm:$0xff]  ;;  %v579_v32 = vld [vmem:[#allocation5 + $0x5f8] sm:$0xff] }
  0xab   :  { %1277 = vmatpush1.msra.mxu0 %v536_v33  ;;  %1436 = vmatpush1.msra.mxu1 %v602_v34  ;;  %v581_v33 = vld [vmem:[#allocation5 + $0x608] sm:$0xff]  ;;  %v255_v34 = vld [vmem:[#allocation2 + $0x458] sm:$0xff] }
  0xac   :  { %1027 = vmatmul.mubr.f32.gmra.mxu0 %v167_v35  ;;  %1278 = vmatprep.subr.mxu0 %v535_v36  ;;  %v578_v35 = vld [vmem:[#allocation5 + $0x5f0] sm:$0xff]  ;;  %v580_v36 = vld [vmem:[#allocation5 + $0x600] sm:$0xff] }
  0xad   :  { %1437 = vmatprep.subr.mxu1 %v601_v37  ;;  %1187 = vmatprep.mubr.f32.mxu1 %v170_v38  ;;  %v254_v37 = vld [vmem:[#allocation2 + $0x450] sm:$0xff]  ;;  %v577_v38 = vld [vmem:[#allocation5 + $0x5e8] sm:$0xff] }
  0xae   :  { %1279 = vmatpush1.msra.mxu0 %v534_v39  ;;  %1438 = vmatpush1.msra.mxu1 %v600_v40  ;;  %v643_v39 = vld [vmem:[#allocation5 + $0x7f8] sm:$0xff]  ;;  %v270_v40 = vld [vmem:[#allocation2 + $0x4d0] sm:$0xff] }
  0xaf   :  { %1188 = vmatmul.mubr.f32.gmra.mxu1 %v169_v41  ;;  %1280 = vmatprep.subr.mxu0 %v533_v42  ;;  %v576_v41 = vld [vmem:[#allocation5 + $0x5e0] sm:$0xff]  ;;  %v642_v42 = vld [vmem:[#allocation5 + $0x7f0] sm:$0xff] }
  0xb0   :  { %1439 = vmatprep.subr.mxu1 %v599_v43  ;;  %1032 = vmatprep.mubr.f32.mxu0 %v185_v44  ;;  %v269_v43 = vld [vmem:[#allocation2 + $0x4c8] sm:$0xff]  ;;  %v575_v44 = vld [vmem:[#allocation5 + $0x5d8] sm:$0xff] }
  0xb1   :  { %1281 = vmatpush1.msra.mxu0 %v532_v45  ;;  %1440 = vmatpush1.msra.mxu1 %v598_v46  ;;  %v641_v45 = vld [vmem:[#allocation5 + $0x7e8] sm:$0xff]  ;;  %v272_v46 = vld [vmem:[#allocation2 + $0x4e0] sm:$0xff] }
  0xb2   :  { %1033 = vmatmul.mubr.f32.gmra.mxu0 %v184_v47  ;;  %1282 = vmatprep.subr.mxu0 %v531_v48  ;;  %v574_v47 = vld [vmem:[#allocation5 + $0x5d0] sm:$0xff]  ;;  %v640_v48 = vld [vmem:[#allocation5 + $0x7e0] sm:$0xff] }
  0xb3   :  { %1441 = vmatprep.subr.mxu1 %v597_v49  ;;  %1193 = vmatprep.mubr.f32.mxu1 %v187_v50  ;;  %v271_v49 = vld [vmem:[#allocation2 + $0x4d8] sm:$0xff]  ;;  %v573_v50 = vld [vmem:[#allocation5 + $0x5c8] sm:$0xff] }
  0xb4   :  { %1283 = vmatpush1.msra.mxu0 %v530_v51  ;;  %1442 = vmatpush1.msra.mxu1 %v596_v52  ;;  %v639_v51 = vld [vmem:[#allocation5 + $0x7d8] sm:$0xff] }
  0xb5   :  { %1194 = vmatmul.mubr.f32.gmra.mxu1 %v186_v53  ;;  %1284 = vmatprep.subr.mxu0 %v529_v54  ;;  %v287_v52 = vld [vmem:[#allocation2 + $0x558] sm:$0xff]  ;;  %v572_v53 = vld [vmem:[#allocation5 + $0x5c0] sm:$0xff]  ;;  %v638_v54 = vld [vmem:[#allocation5 + $0x7d0] sm:$0xff] }
  0xb6   :  { %1443 = vmatprep.subr.mxu1 %v595_v55  ;;  %1038 = vmatprep.mubr.f32.mxu0 %v202_v56  ;;  %v286_v55 = vld [vmem:[#allocation2 + $0x550] sm:$0xff]  ;;  %v571_v56 = vld [vmem:[#allocation5 + $0x5b8] sm:$0xff] }
  0xb7   :  { %1285 = vmatpush1.msra.mxu0 %v528_v57  ;;  %1444 = vmatpush1.msra.mxu1 %v594_v58  ;;  %v637_v57 = vld [vmem:[#allocation5 + $0x7c8] sm:$0xff] }
  0xb8   :  { %1039 = vmatmul.mubr.f32.gmra.mxu0 %v201_v59  ;;  %1286 = vmatprep.subr.mxu0 %v527_v60  ;;  %v289_v58 = vld [vmem:[#allocation2 + $0x568] sm:$0xff]  ;;  %v570_v59 = vld [vmem:[#allocation5 + $0x5b0] sm:$0xff]  ;;  %v636_v60 = vld [vmem:[#allocation5 + $0x7c0] sm:$0xff] }
  0xb9   :  { %1445 = vmatprep.subr.mxu1 %v593_v61  ;;  %1199 = vmatprep.mubr.f32.mxu1 %v204_v62  ;;  %v288_v61 = vld [vmem:[#allocation2 + $0x560] sm:$0xff]  ;;  %v569_v62 = vld [vmem:[#allocation5 + $0x5a8] sm:$0xff] }
  0xba   :  { %1287 = vmatpush1.msra.mxu0 %v526_v63  ;;  %1446 = vmatpush1.msra.mxu1 %v592_v0  ;;  %v635_v63 = vld [vmem:[#allocation5 + $0x7b8] sm:$0xff]  ;;  %v304_v0 = vld [vmem:[#allocation2 + $0x5e0] sm:$0xff] }
  0xbb   :  { %1200 = vmatmul.mubr.f32.gmra.mxu1 %v203_v1  ;;  %1288 = vmatprep.subr.mxu0 %v525_v2  ;;  %v568_v1 = vld [vmem:[#allocation5 + $0x5a0] sm:$0xff]  ;;  %v634_v2 = vld [vmem:[#allocation5 + $0x7b0] sm:$0xff] }
  0xbc   :  { %1447 = vmatprep.subr.mxu1 %v591_v3  ;;  %1044 = vmatprep.mubr.f32.mxu0 %v219_v4  ;;  %v303_v3 = vld [vmem:[#allocation2 + $0x5d8] sm:$0xff] }
  0xbd   :  { %1289 = vmatpush1.msra.mxu0 %v524_v5  ;;  %1448 = vmatpush1.msra.mxu1 %v590_v6  ;;  %v567_v4 = vld [vmem:[#allocation5 + $0x598] sm:$0xff]  ;;  %v633_v5 = vld [vmem:[#allocation5 + $0x7a8] sm:$0xff]  ;;  %v306_v6 = vld [vmem:[#allocation2 + $0x5f0] sm:$0xff] }
  0xbe   :  { %1045 = vmatmul.mubr.f32.gmra.mxu0 %v218_v7  ;;  %1290 = vmatprep.subr.mxu0 %v523_v8  ;;  %v566_v7 = vld [vmem:[#allocation5 + $0x590] sm:$0xff]  ;;  %v632_v8 = vld [vmem:[#allocation5 + $0x7a0] sm:$0xff] }
  0xbf   :  { %1449 = vmatprep.subr.mxu1 %v589_v9  ;;  %1205 = vmatprep.mubr.f32.mxu1 %v221_v10  ;;  %v305_v9 = vld [vmem:[#allocation2 + $0x5e8] sm:$0xff] }
  0xc0   :  { %1291 = vmatpush1.msra.mxu0 %v522_v11  ;;  %1450 = vmatpush1.msra.mxu1 %v588_v12  ;;  %v565_v10 = vld [vmem:[#allocation5 + $0x588] sm:$0xff]  ;;  %v631_v11 = vld [vmem:[#allocation5 + $0x798] sm:$0xff] }
  0xc1   :  { %1206 = vmatmul.mubr.f32.gmra.mxu1 %v220_v13  ;;  %1292 = vmatprep.subr.mxu0 %v521_v14  ;;  %v321_v12 = vld [vmem:[#allocation2 + $0x668] sm:$0xff]  ;;  %v564_v13 = vld [vmem:[#allocation5 + $0x580] sm:$0xff]  ;;  %v630_v14 = vld [vmem:[#allocation5 + $0x790] sm:$0xff] }
  0xc2   :  { %1451 = vmatprep.subr.mxu1 %v587_v15  ;;  %1050 = vmatprep.mubr.f32.mxu0 %v236_v16  ;;  %v320_v15 = vld [vmem:[#allocation2 + $0x660] sm:$0xff]  ;;  %v563_v16 = vld [vmem:[#allocation5 + $0x578] sm:$0xff] }
  0xc3   :  { %1293 = vmatpush1.msra.mxu0 %v520_v17  ;;  %1452 = vmatpush1.msra.mxu1 %v586_v18  ;;  %v629_v17 = vld [vmem:[#allocation5 + $0x788] sm:$0xff]  ;;  %v323_v18 = vld [vmem:[#allocation2 + $0x678] sm:$0xff] }
  0xc4   :  { %1051 = vmatmul.mubr.f32.gmra.mxu0 %v235_v19  ;;  %1294 = vmatprep.subr.mxu0 %v519_v20  ;;  %v562_v19 = vld [vmem:[#allocation5 + $0x570] sm:$0xff]  ;;  %v628_v20 = vld [vmem:[#allocation5 + $0x780] sm:$0xff] }
  0xc5   :  { %1453 = vmatprep.subr.mxu1 %v585_v21  ;;  %1211 = vmatprep.mubr.f32.mxu1 %v238_v22  ;;  %v322_v21 = vld [vmem:[#allocation2 + $0x670] sm:$0xff]  ;;  %v561_v22 = vld [vmem:[#allocation5 + $0x568] sm:$0xff] }
  0xc6   :  { %1295 = vmatpush1.msra.mxu0 %v518_v23  ;;  %1454 = vmatpush1.msra.mxu1 %v584_v24  ;;  %v627_v23 = vld [vmem:[#allocation5 + $0x778] sm:$0xff]  ;;  %v338_v24 = vld [vmem:[#allocation2 + $0x6f0] sm:$0xff] }
  0xc7   :  { %1212 = vmatmul.mubr.f32.gmra.mxu1 %v237_v25  ;;  %1296 = vmatprep.subr.mxu0 %v517_v26  ;;  %v560_v25 = vld [vmem:[#allocation5 + $0x560] sm:$0xff]  ;;  %v626_v26 = vld [vmem:[#allocation5 + $0x770] sm:$0xff] }
  0xc8   :  { %1455 = vmatprep.subr.mxu1 %v583_v27  ;;  %1056 = vmatprep.mubr.f32.mxu0 %v253_v28  ;;  %v337_v27 = vld [vmem:[#allocation2 + $0x6e8] sm:$0xff]  ;;  %v559_v28 = vld [vmem:[#allocation5 + $0x558] sm:$0xff] }
  0xc9   :  { %1297 = vmatpush1.msra.mxu0 %v516_v29  ;;  %1456 = vmatpush1.msra.mxu1 %v582_v30  ;;  %v625_v29 = vld [vmem:[#allocation5 + $0x768] sm:$0xff]  ;;  %v340_v30 = vld [vmem:[#allocation2 + $0x700] sm:$0xff] }
  0xca   :  { %1057 = vmatmul.mubr.f32.gmra.mxu0 %v252_v31  ;;  %1298 = vmatprep.subr.mxu0 %v579_v32  ;;  %v558_v31 = vld [vmem:[#allocation5 + $0x550] sm:$0xff]  ;;  %v624_v32 = vld [vmem:[#allocation5 + $0x760] sm:$0xff] }
  0xcb   :  { %1457 = vmatprep.subr.mxu1 %v581_v33  ;;  %1217 = vmatprep.mubr.f32.mxu1 %v255_v34  ;;  %v339_v33 = vld [vmem:[#allocation2 + $0x6f8] sm:$0xff]  ;;  %v557_v34 = vld [vmem:[#allocation5 + $0x548] sm:$0xff] }
  0xcc   :  { %1299 = vmatpush2.msra.mxu0 %v578_v35  ;;  %1458 = vmatpush1.msra.mxu1 %v580_v36  ;;  %v623_v35 = vld [vmem:[#allocation5 + $0x758] sm:$0xff] }
  0xcd   :  { %1218 = vmatmul.mubr.f32.gmra.mxu1 %v254_v37  ;;  %1300 = vmatprep.subr.mxu0 %v577_v38  ;;  %v355_v36 = vld [vmem:[#allocation2 + $0x778] sm:$0xff]  ;;  %v556_v37 = vld [vmem:[#allocation5 + $0x540] sm:$0xff]  ;;  %v622_v38 = vld [vmem:[#allocation5 + $0x750] sm:$0xff] }
  0xce   :  { %1459 = vmatprep.subr.mxu1 %v643_v39  ;;  %1062 = vmatprep.mubr.f32.mxu0 %v270_v40  ;;  %v354_v39 = vld [vmem:[#allocation2 + $0x770] sm:$0xff]  ;;  %v555_v40 = vld [vmem:[#allocation5 + $0x538] sm:$0xff] }
  0xcf   :  { %1301 = vmatpush2.msra.mxu0 %v576_v41  ;;  %1460 = vmatpush2.msra.mxu1 %v642_v42  ;;  %v621_v41 = vld [vmem:[#allocation5 + $0x748] sm:$0xff] }
  0xd0   :  { %1063 = vmatmul.mubr.f32.gmra.mxu0 %v269_v43  ;;  %1302 = vmatprep.subr.mxu0 %v575_v44  ;;  %v357_v42 = vld [vmem:[#allocation2 + $0x788] sm:$0xff]  ;;  %v554_v43 = vld [vmem:[#allocation5 + $0x530] sm:$0xff]  ;;  %v620_v44 = vld [vmem:[#allocation5 + $0x740] sm:$0xff] }
  0xd1   :  { %1461 = vmatprep.subr.mxu1 %v641_v45  ;;  %1223 = vmatprep.mubr.f32.mxu1 %v272_v46  ;;  %v356_v45 = vld [vmem:[#allocation2 + $0x780] sm:$0xff]  ;;  %v553_v46 = vld [vmem:[#allocation5 + $0x528] sm:$0xff] }
  0xd2   :  { %1303 = vmatpush2.msra.mxu0 %v574_v47  ;;  %1462 = vmatpush2.msra.mxu1 %v640_v48  ;;  %v619_v47 = vld [vmem:[#allocation5 + $0x738] sm:$0xff]  ;;  %v372_v48 = vld [vmem:[#allocation2 + $0x800] sm:$0xff] }
  0xd3   :  { %1224 = vmatmul.mubr.f32.gmra.mxu1 %v271_v49  ;;  %1304 = vmatprep.subr.mxu0 %v573_v50  ;;  %v552_v49 = vld [vmem:[#allocation5 + $0x520] sm:$0xff]  ;;  %v618_v50 = vld [vmem:[#allocation5 + $0x730] sm:$0xff] }
  0xd4   :  { %1463 = vmatprep.subr.mxu1 %v639_v51  ;;  %1068 = vmatprep.mubr.f32.mxu0 %v287_v52  ;;  %v371_v51 = vld [vmem:[#allocation2 + $0x7f8] sm:$0xff] }
  0xd5   :  { %1305 = vmatpush2.msra.mxu0 %v572_v53  ;;  %1464 = vmatpush2.msra.mxu1 %v638_v54  ;;  %v551_v52 = vld [vmem:[#allocation5 + $0x518] sm:$0xff]  ;;  %v617_v53 = vld [vmem:[#allocation5 + $0x728] sm:$0xff]  ;;  %v374_v54 = vld [vmem:[#allocation2 + $0x810] sm:$0xff] }
  0xd6   :  { %1069 = vmatmul.mubr.f32.gmra.mxu0 %v286_v55  ;;  %1306 = vmatprep.subr.mxu0 %v571_v56  ;;  %v550_v55 = vld [vmem:[#allocation5 + $0x510] sm:$0xff]  ;;  %v616_v56 = vld [vmem:[#allocation5 + $0x720] sm:$0xff] }
  0xd7   :  { %1465 = vmatprep.subr.mxu1 %v637_v57  ;;  %1229 = vmatprep.mubr.f32.mxu1 %v289_v58  ;;  %v373_v57 = vld [vmem:[#allocation2 + $0x808] sm:$0xff] }
  0xd8   :  { %1307 = vmatpush2.msra.mxu0 %v570_v59  ;;  %1466 = vmatpush2.msra.mxu1 %v636_v60  ;;  %v549_v58 = vld [vmem:[#allocation5 + $0x508] sm:$0xff]  ;;  %v615_v59 = vld [vmem:[#allocation5 + $0x718] sm:$0xff]  ;;  %v548_v60 = vld [vmem:[#allocation5 + $0x500] sm:$0xff] }
  0xd9   :  { %1230 = vmatmul.mubr.f32.gmra.mxu1 %v288_v61  ;;  %1308 = vmatprep.subr.mxu0 %v569_v62  ;;  %v121_v61 = vld [vmem:[#allocation2 + $0x28] sm:$0xff]  ;;  %v614_v62 = vld [vmem:[#allocation5 + $0x710] sm:$0xff] }
  0xda   :  { %1467 = vmatprep.subr.mxu1 %v635_v63  ;;  %1074 = vmatprep.mubr.f32.mxu0 %v304_v0  ;;  %v120_v63 = vld [vmem:[#allocation2 + $0x20] sm:$0xff]  ;;  %v613_v0 = vld [vmem:[#allocation5 + $0x708] sm:$0xff] }
  0xdb   :  { %1309 = vmatpush2.msra.mxu0 %v568_v1  ;;  %1468 = vmatpush2.msra.mxu1 %v634_v2  ;;  %v675_v1 = vld [vmem:[#allocation5 + $0x8f8] sm:$0xff]  ;;  %v612_v2 = vld [vmem:[#allocation5 + $0x700] sm:$0xff] }
  0xdc   :  { %1075 = vmatmul.mubr.f32.gmra.mxu0 %v303_v3  ;;  %1310 = vmatprep.subr.mxu0 %v567_v4  ;;  %v123_v3 = vld [vmem:[#allocation2 + $0x38] sm:$0xff]  ;;  %v674_v4 = vld [vmem:[#allocation5 + $0x8f0] sm:$0xff] }
  0xdd   :  { %1469 = vmatprep.subr.mxu1 %v633_v5  ;;  %1235 = vmatprep.mubr.f32.mxu1 %v306_v6  ;;  %v122_v5 = vld [vmem:[#allocation2 + $0x30] sm:$0xff]  ;;  %v673_v6 = vld [vmem:[#allocation5 + $0x8e8] sm:$0xff] }
  0xde   :  { %1311 = vmatpush2.msra.mxu0 %v566_v7  ;;  %1470 = vmatpush2.msra.mxu1 %v632_v8  ;;  %v739_v7 = vld [vmem:[#allocation5 + $0xaf8] sm:$0xff]  ;;  %v138_v8 = vld [vmem:[#allocation2 + $0xb0] sm:$0xff] }
  0xdf   :  { %1236 = vmatmul.mubr.f32.gmra.mxu1 %v305_v9  ;;  %1312 = vmatprep.subr.mxu0 %v565_v10  ;;  %v672_v9 = vld [vmem:[#allocation5 + $0x8e0] sm:$0xff]  ;;  %v738_v10 = vld [vmem:[#allocation5 + $0xaf0] sm:$0xff] }
  0xe0   :  { %1471 = vmatprep.subr.mxu1 %v631_v11  ;;  %1080 = vmatprep.mubr.f32.mxu0 %v321_v12  ;;  %v137_v11 = vld [vmem:[#allocation2 + $0xa8] sm:$0xff]  ;;  %v671_v12 = vld [vmem:[#allocation5 + $0x8d8] sm:$0xff] }
  0xe1   :  { %1313 = vmatpush2.msra.mxu0 %v564_v13  ;;  %1472 = vmatpush2.msra.mxu1 %v630_v14  ;;  %v737_v13 = vld [vmem:[#allocation5 + $0xae8] sm:$0xff]  ;;  %v140_v14 = vld [vmem:[#allocation2 + $0xc0] sm:$0xff] }
  0xe2   :  { %1081 = vmatmul.mubr.f32.gmra.mxu0 %v320_v15  ;;  %1314 = vmatprep.subr.mxu0 %v563_v16  ;;  %v670_v15 = vld [vmem:[#allocation5 + $0x8d0] sm:$0xff]  ;;  %v736_v16 = vld [vmem:[#allocation5 + $0xae0] sm:$0xff] }
  0xe3   :  { %1473 = vmatprep.subr.mxu1 %v629_v17  ;;  %1241 = vmatprep.mubr.f32.mxu1 %v323_v18  ;;  %v139_v17 = vld [vmem:[#allocation2 + $0xb8] sm:$0xff]  ;;  %v669_v18 = vld [vmem:[#allocation5 + $0x8c8] sm:$0xff] }
  0xe4   :  { %1315 = vmatpush2.msra.mxu0 %v562_v19  ;;  %1474 = vmatpush2.msra.mxu1 %v628_v20  ;;  %v735_v19 = vld [vmem:[#allocation5 + $0xad8] sm:$0xff] }
  0xe5   :  { %1242 = vmatmul.mubr.f32.gmra.mxu1 %v322_v21  ;;  %1316 = vmatprep.subr.mxu0 %v561_v22  ;;  %v155_v20 = vld [vmem:[#allocation2 + $0x138] sm:$0xff]  ;;  %v668_v21 = vld [vmem:[#allocation5 + $0x8c0] sm:$0xff]  ;;  %v734_v22 = vld [vmem:[#allocation5 + $0xad0] sm:$0xff] }
  0xe6   :  { %1475 = vmatprep.subr.mxu1 %v627_v23  ;;  %1086 = vmatprep.mubr.f32.mxu0 %v338_v24  ;;  %v154_v23 = vld [vmem:[#allocation2 + $0x130] sm:$0xff]  ;;  %v667_v24 = vld [vmem:[#allocation5 + $0x8b8] sm:$0xff] }
  0xe7   :  { %1317 = vmatpush2.msra.mxu0 %v560_v25  ;;  %1476 = vmatpush2.msra.mxu1 %v626_v26  ;;  %v733_v25 = vld [vmem:[#allocation5 + $0xac8] sm:$0xff] }
  0xe8   :  { %1087 = vmatmul.mubr.f32.gmra.mxu0 %v337_v27  ;;  %1318 = vmatprep.subr.mxu0 %v559_v28  ;;  %v157_v26 = vld [vmem:[#allocation2 + $0x148] sm:$0xff]  ;;  %v666_v27 = vld [vmem:[#allocation5 + $0x8b0] sm:$0xff]  ;;  %v732_v28 = vld [vmem:[#allocation5 + $0xac0] sm:$0xff] }
  0xe9   :  { %1477 = vmatprep.subr.mxu1 %v625_v29  ;;  %1247 = vmatprep.mubr.f32.mxu1 %v340_v30  ;;  %v156_v29 = vld [vmem:[#allocation2 + $0x140] sm:$0xff]  ;;  %v665_v30 = vld [vmem:[#allocation5 + $0x8a8] sm:$0xff] }
  0xea   :  { %1319 = vmatpush2.msra.mxu0 %v558_v31  ;;  %1478 = vmatpush2.msra.mxu1 %v624_v32  ;;  %v731_v31 = vld [vmem:[#allocation5 + $0xab8] sm:$0xff]  ;;  %v172_v32 = vld [vmem:[#allocation2 + $0x1c0] sm:$0xff] }
  0xeb   :  { %1248 = vmatmul.mubr.f32.gmra.mxu1 %v339_v33  ;;  %1320 = vmatprep.subr.mxu0 %v557_v34  ;;  %v664_v33 = vld [vmem:[#allocation5 + $0x8a0] sm:$0xff]  ;;  %v730_v34 = vld [vmem:[#allocation5 + $0xab0] sm:$0xff] }
  0xec   :  { %1479 = vmatprep.subr.mxu1 %v623_v35  ;;  %1092 = vmatprep.mubr.f32.mxu0 %v355_v36  ;;  %v171_v35 = vld [vmem:[#allocation2 + $0x1b8] sm:$0xff] }
  0xed   :  { %1321 = vmatpush2.msra.mxu0 %v556_v37  ;;  %1480 = vmatpush2.msra.mxu1 %v622_v38  ;;  %v663_v36 = vld [vmem:[#allocation5 + $0x898] sm:$0xff]  ;;  %v729_v37 = vld [vmem:[#allocation5 + $0xaa8] sm:$0xff]  ;;  %v174_v38 = vld [vmem:[#allocation2 + $0x1d0] sm:$0xff] }
  0xee   :  { %1093 = vmatmul.mubr.f32.gmra.mxu0 %v354_v39  ;;  %1322 = vmatprep.subr.mxu0 %v555_v40  ;;  %v662_v39 = vld [vmem:[#allocation5 + $0x890] sm:$0xff]  ;;  %v728_v40 = vld [vmem:[#allocation5 + $0xaa0] sm:$0xff] }
  0xef   :  { %1481 = vmatprep.subr.mxu1 %v621_v41  ;;  %1253 = vmatprep.mubr.f32.mxu1 %v357_v42  ;;  %v173_v41 = vld [vmem:[#allocation2 + $0x1c8] sm:$0xff] }
  0xf0   :  { %1323 = vmatpush2.msra.mxu0 %v554_v43  ;;  %1482 = vmatpush2.msra.mxu1 %v620_v44  ;;  %v661_v42 = vld [vmem:[#allocation5 + $0x888] sm:$0xff]  ;;  %v727_v43 = vld [vmem:[#allocation5 + $0xa98] sm:$0xff] }
  0xf1   :  { %1254 = vmatmul.mubr.f32.gmra.mxu1 %v356_v45  ;;  %1324 = vmatprep.subr.mxu0 %v553_v46  ;;  %v189_v44 = vld [vmem:[#allocation2 + $0x248] sm:$0xff]  ;;  %v660_v45 = vld [vmem:[#allocation5 + $0x880] sm:$0xff]  ;;  %v726_v46 = vld [vmem:[#allocation5 + $0xa90] sm:$0xff] }
  0xf2   :  { %1483 = vmatprep.subr.mxu1 %v619_v47  ;;  %1098 = vmatprep.mubr.f32.mxu0 %v372_v48  ;;  %v188_v47 = vld [vmem:[#allocation2 + $0x240] sm:$0xff]  ;;  %v659_v48 = vld [vmem:[#allocation5 + $0x878] sm:$0xff] }
  0xf3   :  { %1325 = vmatpush2.msra.mxu0 %v552_v49  ;;  %1484 = vmatpush2.msra.mxu1 %v618_v50  ;;  %v725_v49 = vld [vmem:[#allocation5 + $0xa88] sm:$0xff]  ;;  %v191_v50 = vld [vmem:[#allocation2 + $0x258] sm:$0xff] }
  0xf4   :  { %1099 = vmatmul.mubr.f32.gmra.mxu0 %v371_v51  ;;  %1326 = vmatprep.subr.mxu0 %v551_v52  ;;  %v658_v51 = vld [vmem:[#allocation5 + $0x870] sm:$0xff]  ;;  %v724_v52 = vld [vmem:[#allocation5 + $0xa80] sm:$0xff] }
  0xf5   :  { %1485 = vmatprep.subr.mxu1 %v617_v53  ;;  %1259 = vmatprep.mubr.f32.mxu1 %v374_v54  ;;  %v190_v53 = vld [vmem:[#allocation2 + $0x250] sm:$0xff]  ;;  %v657_v54 = vld [vmem:[#allocation5 + $0x868] sm:$0xff] }
  0xf6   :  { %1327 = vmatpush2.msra.mxu0 %v550_v55  ;;  %1486 = vmatpush2.msra.mxu1 %v616_v56  ;;  %v723_v55 = vld [vmem:[#allocation5 + $0xa78] sm:$0xff]  ;;  %v206_v56 = vld [vmem:[#allocation2 + $0x2d0] sm:$0xff] }
  0xf7   :  { %1260 = vmatmul.mubr.f32.gmra.mxu1 %v373_v57  ;;  %1328 = vmatprep.subr.mxu0 %v549_v58  ;;  %v656_v57 = vld [vmem:[#allocation5 + $0x860] sm:$0xff]  ;;  %v722_v58 = vld [vmem:[#allocation5 + $0xa70] sm:$0xff] }
  0xf8   :  { %1487 = vmatprep.subr.mxu1 %v615_v59  ;;  %1329 = vmatpush2.msra.mxu0 %v548_v60  ;;  %v205_v59 = vld [vmem:[#allocation2 + $0x2c8] sm:$0xff]  ;;  %v655_v60 = vld [vmem:[#allocation5 + $0x858] sm:$0xff] }
  0xf9   :  { %1330 = vmatprep.mubr.f32.mxu0 %v121_v61  ;;  %1488 = vmatpush2.msra.mxu1 %v614_v62  ;;  %v721_v61 = vld [vmem:[#allocation5 + $0xa68] sm:$0xff]  ;;  %v208_v62 = vld [vmem:[#allocation2 + $0x2e0] sm:$0xff] }
  0xfa   :  { %1331 = vmatmul.mubr.f32.vlgmr.msra.gmra.mxu0 %v120_v63  ;;  %1489 = vmatprep.subr.mxu1 %v613_v0  ;;  %v654_v63 = vld [vmem:[#allocation5 + $0x850] sm:$0xff]  ;;  %v720_v0 = vld [vmem:[#allocation5 + $0xa60] sm:$0xff] }
  0xfb   :  { %1588 = vmatprep.subr.mxu0 %v675_v1  ;;  %1490 = vmatpush2.msra.mxu1 %v612_v2  ;;  %v207_v1 = vld [vmem:[#allocation2 + $0x2d8] sm:$0xff]  ;;  %v653_v2 = vld [vmem:[#allocation5 + $0x848] sm:$0xff] }
  0xfc   :  { %1491 = vmatprep.mubr.f32.mxu1 %v123_v3  ;;  %1589 = vmatpush1.msra.mxu0 %v674_v4  ;;  %v719_v3 = vld [vmem:[#allocation5 + $0xa58] sm:$0xff] }
  0xfd   :  { %1492 = vmatmul.mubr.f32.vlgmr.msra.gmra.mxu1 %v122_v5  ;;  %1590 = vmatprep.subr.mxu0 %v673_v6  ;;  %v223_v4 = vld [vmem:[#allocation2 + $0x358] sm:$0xff]  ;;  %v652_v5 = vld [vmem:[#allocation5 + $0x840] sm:$0xff]  ;;  %v718_v6 = vld [vmem:[#allocation5 + $0xa50] sm:$0xff] }
  0xfe   :  { %1749 = vmatprep.subr.mxu1 %v739_v7  ;;  %1336 = vmatprep.mubr.f32.mxu0 %v138_v8  ;;  %v222_v7 = vld [vmem:[#allocation2 + $0x350] sm:$0xff]  ;;  %v651_v8 = vld [vmem:[#allocation5 + $0x838] sm:$0xff] }
  0xff   :  { %1591 = vmatpush1.msra.mxu0 %v672_v9  ;;  %1750 = vmatpush1.msra.mxu1 %v738_v10  ;;  %v717_v9 = vld [vmem:[#allocation5 + $0xa48] sm:$0xff] }
 0x100   :  { %1337 = vmatmul.mubr.f32.gmra.mxu0 %v137_v11  ;;  %1592 = vmatprep.subr.mxu0 %v671_v12  ;;  %v225_v10 = vld [vmem:[#allocation2 + $0x368] sm:$0xff]  ;;  %v650_v11 = vld [vmem:[#allocation5 + $0x830] sm:$0xff]  ;;  %v716_v12 = vld [vmem:[#allocation5 + $0xa40] sm:$0xff] }
 0x101   :  { %1751 = vmatprep.subr.mxu1 %v737_v13  ;;  %1497 = vmatprep.mubr.f32.mxu1 %v140_v14  ;;  %v224_v13 = vld [vmem:[#allocation2 + $0x360] sm:$0xff]  ;;  %v649_v14 = vld [vmem:[#allocation5 + $0x828] sm:$0xff] }
 0x102   :  { %1593 = vmatpush1.msra.mxu0 %v670_v15  ;;  %1752 = vmatpush1.msra.mxu1 %v736_v16  ;;  %v715_v15 = vld [vmem:[#allocation5 + $0xa38] sm:$0xff]  ;;  %v240_v16 = vld [vmem:[#allocation2 + $0x3e0] sm:$0xff] }
 0x103   :  { %1498 = vmatmul.mubr.f32.gmra.mxu1 %v139_v17  ;;  %1594 = vmatprep.subr.mxu0 %v669_v18  ;;  %v648_v17 = vld [vmem:[#allocation5 + $0x820] sm:$0xff]  ;;  %v714_v18 = vld [vmem:[#allocation5 + $0xa30] sm:$0xff] }
 0x104   :  { %1753 = vmatprep.subr.mxu1 %v735_v19  ;;  %1342 = vmatprep.mubr.f32.mxu0 %v155_v20  ;;  %v239_v19 = vld [vmem:[#allocation2 + $0x3d8] sm:$0xff] }
 0x105   :  { %1595 = vmatpush1.msra.mxu0 %v668_v21  ;;  %1754 = vmatpush1.msra.mxu1 %v734_v22  ;;  %v647_v20 = vld [vmem:[#allocation5 + $0x818] sm:$0xff]  ;;  %v713_v21 = vld [vmem:[#allocation5 + $0xa28] sm:$0xff]  ;;  %v242_v22 = vld [vmem:[#allocation2 + $0x3f0] sm:$0xff] }
 0x106   :  { %1343 = vmatmul.mubr.f32.gmra.mxu0 %v154_v23  ;;  %1596 = vmatprep.subr.mxu0 %v667_v24  ;;  %v646_v23 = vld [vmem:[#allocation5 + $0x810] sm:$0xff]  ;;  %v712_v24 = vld [vmem:[#allocation5 + $0xa20] sm:$0xff] }
 0x107   :  { %1755 = vmatprep.subr.mxu1 %v733_v25  ;;  %1503 = vmatprep.mubr.f32.mxu1 %v157_v26  ;;  %v241_v25 = vld [vmem:[#allocation2 + $0x3e8] sm:$0xff] }
 0x108   :  { %1597 = vmatpush1.msra.mxu0 %v666_v27  ;;  %1756 = vmatpush1.msra.mxu1 %v732_v28  ;;  %v645_v26 = vld [vmem:[#allocation5 + $0x808] sm:$0xff]  ;;  %v711_v27 = vld [vmem:[#allocation5 + $0xa18] sm:$0xff] }
 0x109   :  { %1504 = vmatmul.mubr.f32.gmra.mxu1 %v156_v29  ;;  %1598 = vmatprep.subr.mxu0 %v665_v30  ;;  %v257_v28 = vld [vmem:[#allocation2 + $0x468] sm:$0xff]  ;;  %v644_v29 = vld [vmem:[#allocation5 + $0x800] sm:$0xff]  ;;  %v710_v30 = vld [vmem:[#allocation5 + $0xa10] sm:$0xff] }
 0x10a   :  { %1757 = vmatprep.subr.mxu1 %v731_v31  ;;  %1348 = vmatprep.mubr.f32.mxu0 %v172_v32  ;;  %v256_v31 = vld [vmem:[#allocation2 + $0x460] sm:$0xff]  ;;  %v707_v32 = vld [vmem:[#allocation5 + $0x9f8] sm:$0xff] }
 0x10b   :  { %1599 = vmatpush1.msra.mxu0 %v664_v33  ;;  %1758 = vmatpush1.msra.mxu1 %v730_v34  ;;  %v709_v33 = vld [vmem:[#allocation5 + $0xa08] sm:$0xff]  ;;  %v259_v34 = vld [vmem:[#allocation2 + $0x478] sm:$0xff] }
 0x10c   :  { %1349 = vmatmul.mubr.f32.gmra.mxu0 %v171_v35  ;;  %1600 = vmatprep.subr.mxu0 %v663_v36  ;;  %v706_v35 = vld [vmem:[#allocation5 + $0x9f0] sm:$0xff]  ;;  %v708_v36 = vld [vmem:[#allocation5 + $0xa00] sm:$0xff] }
 0x10d   :  { %1759 = vmatprep.subr.mxu1 %v729_v37  ;;  %1509 = vmatprep.mubr.f32.mxu1 %v174_v38  ;;  %v258_v37 = vld [vmem:[#allocation2 + $0x470] sm:$0xff]  ;;  %v705_v38 = vld [vmem:[#allocation5 + $0x9e8] sm:$0xff] }
 0x10e   :  { %1601 = vmatpush1.msra.mxu0 %v662_v39  ;;  %1760 = vmatpush1.msra.mxu1 %v728_v40  ;;  %v771_v39 = vld [vmem:[#allocation5 + $0xbf8] sm:$0xff]  ;;  %v274_v40 = vld [vmem:[#allocation2 + $0x4f0] sm:$0xff] }
 0x10f   :  { %1510 = vmatmul.mubr.f32.gmra.mxu1 %v173_v41  ;;  %1602 = vmatprep.subr.mxu0 %v661_v42  ;;  %v704_v41 = vld [vmem:[#allocation5 + $0x9e0] sm:$0xff]  ;;  %v770_v42 = vld [vmem:[#allocation5 + $0xbf0] sm:$0xff] }
 0x110   :  { %1761 = vmatprep.subr.mxu1 %v727_v43  ;;  %1354 = vmatprep.mubr.f32.mxu0 %v189_v44  ;;  %v273_v43 = vld [vmem:[#allocation2 + $0x4e8] sm:$0xff]  ;;  %v703_v44 = vld [vmem:[#allocation5 + $0x9d8] sm:$0xff] }
 0x111   :  { %1603 = vmatpush1.msra.mxu0 %v660_v45  ;;  %1762 = vmatpush1.msra.mxu1 %v726_v46  ;;  %v769_v45 = vld [vmem:[#allocation5 + $0xbe8] sm:$0xff]  ;;  %v276_v46 = vld [vmem:[#allocation2 + $0x500] sm:$0xff] }
 0x112   :  { %1355 = vmatmul.mubr.f32.gmra.mxu0 %v188_v47  ;;  %1604 = vmatprep.subr.mxu0 %v659_v48  ;;  %v702_v47 = vld [vmem:[#allocation5 + $0x9d0] sm:$0xff]  ;;  %v768_v48 = vld [vmem:[#allocation5 + $0xbe0] sm:$0xff] }
 0x113   :  { %1763 = vmatprep.subr.mxu1 %v725_v49  ;;  %1515 = vmatprep.mubr.f32.mxu1 %v191_v50  ;;  %v275_v49 = vld [vmem:[#allocation2 + $0x4f8] sm:$0xff]  ;;  %v701_v50 = vld [vmem:[#allocation5 + $0x9c8] sm:$0xff] }
 0x114   :  { %1605 = vmatpush1.msra.mxu0 %v658_v51  ;;  %1764 = vmatpush1.msra.mxu1 %v724_v52  ;;  %v767_v51 = vld [vmem:[#allocation5 + $0xbd8] sm:$0xff] }
 0x115   :  { %1516 = vmatmul.mubr.f32.gmra.mxu1 %v190_v53  ;;  %1606 = vmatprep.subr.mxu0 %v657_v54  ;;  %v291_v52 = vld [vmem:[#allocation2 + $0x578] sm:$0xff]  ;;  %v700_v53 = vld [vmem:[#allocation5 + $0x9c0] sm:$0xff]  ;;  %v766_v54 = vld [vmem:[#allocation5 + $0xbd0] sm:$0xff] }
 0x116   :  { %1765 = vmatprep.subr.mxu1 %v723_v55  ;;  %1360 = vmatprep.mubr.f32.mxu0 %v206_v56  ;;  %v290_v55 = vld [vmem:[#allocation2 + $0x570] sm:$0xff]  ;;  %v699_v56 = vld [vmem:[#allocation5 + $0x9b8] sm:$0xff] }
 0x117   :  { %1607 = vmatpush1.msra.mxu0 %v656_v57  ;;  %1766 = vmatpush1.msra.mxu1 %v722_v58  ;;  %v765_v57 = vld [vmem:[#allocation5 + $0xbc8] sm:$0xff] }
 0x118   :  { %1361 = vmatmul.mubr.f32.gmra.mxu0 %v205_v59  ;;  %1608 = vmatprep.subr.mxu0 %v655_v60  ;;  %v293_v58 = vld [vmem:[#allocation2 + $0x588] sm:$0xff]  ;;  %v698_v59 = vld [vmem:[#allocation5 + $0x9b0] sm:$0xff]  ;;  %v764_v60 = vld [vmem:[#allocation5 + $0xbc0] sm:$0xff] }
 0x119   :  { %1767 = vmatprep.subr.mxu1 %v721_v61  ;;  %1521 = vmatprep.mubr.f32.mxu1 %v208_v62  ;;  %v292_v61 = vld [vmem:[#allocation2 + $0x580] sm:$0xff]  ;;  %v697_v62 = vld [vmem:[#allocation5 + $0x9a8] sm:$0xff] }
 0x11a   :  { %1609 = vmatpush1.msra.mxu0 %v654_v63  ;;  %1768 = vmatpush1.msra.mxu1 %v720_v0  ;;  %v763_v63 = vld [vmem:[#allocation5 + $0xbb8] sm:$0xff]  ;;  %v308_v0 = vld [vmem:[#allocation2 + $0x600] sm:$0xff] }
 0x11b   :  { %1522 = vmatmul.mubr.f32.gmra.mxu1 %v207_v1  ;;  %1610 = vmatprep.subr.mxu0 %v653_v2  ;;  %v696_v1 = vld [vmem:[#allocation5 + $0x9a0] sm:$0xff]  ;;  %v762_v2 = vld [vmem:[#allocation5 + $0xbb0] sm:$0xff] }
 0x11c   :  { %1769 = vmatprep.subr.mxu1 %v719_v3  ;;  %1366 = vmatprep.mubr.f32.mxu0 %v223_v4  ;;  %v307_v3 = vld [vmem:[#allocation2 + $0x5f8] sm:$0xff] }
 0x11d   :  { %1611 = vmatpush1.msra.mxu0 %v652_v5  ;;  %1770 = vmatpush1.msra.mxu1 %v718_v6  ;;  %v695_v4 = vld [vmem:[#allocation5 + $0x998] sm:$0xff]  ;;  %v761_v5 = vld [vmem:[#allocation5 + $0xba8] sm:$0xff]  ;;  %v310_v6 = vld [vmem:[#allocation2 + $0x610] sm:$0xff] }
 0x11e   :  { %1367 = vmatmul.mubr.f32.gmra.mxu0 %v222_v7  ;;  %1612 = vmatprep.subr.mxu0 %v651_v8  ;;  %v694_v7 = vld [vmem:[#allocation5 + $0x990] sm:$0xff]  ;;  %v760_v8 = vld [vmem:[#allocation5 + $0xba0] sm:$0xff] }
 0x11f   :  { %1771 = vmatprep.subr.mxu1 %v717_v9  ;;  %1527 = vmatprep.mubr.f32.mxu1 %v225_v10  ;;  %v309_v9 = vld [vmem:[#allocation2 + $0x608] sm:$0xff] }
 0x120   :  { %1613 = vmatpush1.msra.mxu0 %v650_v11  ;;  %1772 = vmatpush1.msra.mxu1 %v716_v12  ;;  %v693_v10 = vld [vmem:[#allocation5 + $0x988] sm:$0xff]  ;;  %v759_v11 = vld [vmem:[#allocation5 + $0xb98] sm:$0xff] }
 0x121   :  { %1528 = vmatmul.mubr.f32.gmra.mxu1 %v224_v13  ;;  %1614 = vmatprep.subr.mxu0 %v649_v14  ;;  %v325_v12 = vld [vmem:[#allocation2 + $0x688] sm:$0xff]  ;;  %v692_v13 = vld [vmem:[#allocation5 + $0x980] sm:$0xff]  ;;  %v758_v14 = vld [vmem:[#allocation5 + $0xb90] sm:$0xff] }
 0x122   :  { %1773 = vmatprep.subr.mxu1 %v715_v15  ;;  %1372 = vmatprep.mubr.f32.mxu0 %v240_v16  ;;  %v324_v15 = vld [vmem:[#allocation2 + $0x680] sm:$0xff]  ;;  %v691_v16 = vld [vmem:[#allocation5 + $0x978] sm:$0xff] }
 0x123   :  { %1615 = vmatpush1.msra.mxu0 %v648_v17  ;;  %1774 = vmatpush1.msra.mxu1 %v714_v18  ;;  %v757_v17 = vld [vmem:[#allocation5 + $0xb88] sm:$0xff]  ;;  %v327_v18 = vld [vmem:[#allocation2 + $0x698] sm:$0xff] }
 0x124   :  { %1373 = vmatmul.mubr.f32.gmra.mxu0 %v239_v19  ;;  %1616 = vmatprep.subr.mxu0 %v647_v20  ;;  %v690_v19 = vld [vmem:[#allocation5 + $0x970] sm:$0xff]  ;;  %v756_v20 = vld [vmem:[#allocation5 + $0xb80] sm:$0xff] }
 0x125   :  { %1775 = vmatprep.subr.mxu1 %v713_v21  ;;  %1533 = vmatprep.mubr.f32.mxu1 %v242_v22  ;;  %v326_v21 = vld [vmem:[#allocation2 + $0x690] sm:$0xff]  ;;  %v689_v22 = vld [vmem:[#allocation5 + $0x968] sm:$0xff] }
 0x126   :  { %1617 = vmatpush1.msra.mxu0 %v646_v23  ;;  %1776 = vmatpush1.msra.mxu1 %v712_v24  ;;  %v755_v23 = vld [vmem:[#allocation5 + $0xb78] sm:$0xff]  ;;  %v342_v24 = vld [vmem:[#allocation2 + $0x710] sm:$0xff] }
 0x127   :  { %1534 = vmatmul.mubr.f32.gmra.mxu1 %v241_v25  ;;  %1618 = vmatprep.subr.mxu0 %v645_v26  ;;  %v688_v25 = vld [vmem:[#allocation5 + $0x960] sm:$0xff]  ;;  %v754_v26 = vld [vmem:[#allocation5 + $0xb70] sm:$0xff] }
 0x128   :  { %1777 = vmatprep.subr.mxu1 %v711_v27  ;;  %1378 = vmatprep.mubr.f32.mxu0 %v257_v28  ;;  %v341_v27 = vld [vmem:[#allocation2 + $0x708] sm:$0xff]  ;;  %v687_v28 = vld [vmem:[#allocation5 + $0x958] sm:$0xff] }
 0x129   :  { %1619 = vmatpush1.msra.mxu0 %v644_v29  ;;  %1778 = vmatpush1.msra.mxu1 %v710_v30  ;;  %v753_v29 = vld [vmem:[#allocation5 + $0xb68] sm:$0xff]  ;;  %v344_v30 = vld [vmem:[#allocation2 + $0x720] sm:$0xff] }
 0x12a   :  { %1379 = vmatmul.mubr.f32.gmra.mxu0 %v256_v31  ;;  %1620 = vmatprep.subr.mxu0 %v707_v32  ;;  %v686_v31 = vld [vmem:[#allocation5 + $0x950] sm:$0xff]  ;;  %v752_v32 = vld [vmem:[#allocation5 + $0xb60] sm:$0xff] }
 0x12b   :  { %1779 = vmatprep.subr.mxu1 %v709_v33  ;;  %1539 = vmatprep.mubr.f32.mxu1 %v259_v34  ;;  %v343_v33 = vld [vmem:[#allocation2 + $0x718] sm:$0xff]  ;;  %v685_v34 = vld [vmem:[#allocation5 + $0x948] sm:$0xff] }
 0x12c   :  { %1621 = vmatpush2.msra.mxu0 %v706_v35  ;;  %1780 = vmatpush1.msra.mxu1 %v708_v36  ;;  %v751_v35 = vld [vmem:[#allocation5 + $0xb58] sm:$0xff] }
 0x12d   :  { %1540 = vmatmul.mubr.f32.gmra.mxu1 %v258_v37  ;;  %1622 = vmatprep.subr.mxu0 %v705_v38  ;;  %v359_v36 = vld [vmem:[#allocation2 + $0x798] sm:$0xff]  ;;  %v684_v37 = vld [vmem:[#allocation5 + $0x940] sm:$0xff]  ;;  %v750_v38 = vld [vmem:[#allocation5 + $0xb50] sm:$0xff] }
 0x12e   :  { %1781 = vmatprep.subr.mxu1 %v771_v39  ;;  %1384 = vmatprep.mubr.f32.mxu0 %v274_v40  ;;  %v358_v39 = vld [vmem:[#allocation2 + $0x790] sm:$0xff]  ;;  %v683_v40 = vld [vmem:[#allocation5 + $0x938] sm:$0xff] }
 0x12f   :  { %1623 = vmatpush2.msra.mxu0 %v704_v41  ;;  %1782 = vmatpush2.msra.mxu1 %v770_v42  ;;  %v934_v41 = vlaneseq  ;;  %v749_v42 = vld [vmem:[#allocation5 + $0xb48] sm:$0xff] }
 0x130   :  { %1385 = vmatmul.mubr.f32.gmra.mxu0 %v273_v43  ;;  %1624 = vmatprep.subr.mxu0 %v703_v44  ;;  %v361_v43 = vld [vmem:[#allocation2 + $0x7a8] sm:$0xff]  ;;  %v682_v44 = vld [vmem:[#allocation5 + $0x930] sm:$0xff] }
 0x131   :  { %1783 = vmatprep.subr.mxu1 %v769_v45  ;;  %1545 = vmatprep.mubr.f32.mxu1 %v276_v46  ;;  %v748_v45 = vld [vmem:[#allocation5 + $0xb40] sm:$0xff] }
 0x132   :  { %1625 = vmatpush2.msra.mxu0 %v702_v47  ;;  %1784 = vmatpush2.msra.mxu1 %v768_v48  ;;  %v360_v46 = vld [vmem:[#allocation2 + $0x7a0] sm:$0xff]  ;;  %v681_v47 = vld [vmem:[#allocation5 + $0x928] sm:$0xff]  ;;  %v747_v48 = vld [vmem:[#allocation5 + $0xb38] sm:$0xff] }
 0x133   :  { %1546 = vmatmul.mubr.f32.gmra.mxu1 %v275_v49  ;;  %1626 = vmatprep.subr.mxu0 %v701_v50  ;;  %v376_v49 = vld [vmem:[#allocation2 + $0x820] sm:$0xff]  ;;  %v3299_v50 = vshrl.u32 %v934_v41, 7  ;;  %v161_v41 = vld [vmem:[#allocation2 + $0x168] sm:$0xff] }
 0x134   :  { %1785 = vmatprep.subr.mxu1 %v767_v51  ;;  %1390 = vmatprep.mubr.f32.mxu0 %v291_v52  ;;  %v680_v51 = vld [vmem:[#allocation5 + $0x920] sm:$0xff]  ;;  %v746_v52 = vld [vmem:[#allocation5 + $0xb30] sm:$0xff] }
 0x135   :  { %1627 = vmatpush2.msra.mxu0 %v700_v53  ;;  %1786 = vmatpush2.msra.mxu1 %v766_v54  ;;  %v375_v53 = vld [vmem:[#allocation2 + $0x818] sm:$0xff] }
 0x136   :  { %1391 = vmatmul.mubr.f32.gmra.mxu0 %v290_v55  ;;  %1628 = vmatprep.subr.mxu0 %v699_v56  ;;  %v679_v54 = vld [vmem:[#allocation5 + $0x918] sm:$0xff]  ;;  %v745_v55 = vld [vmem:[#allocation5 + $0xb28] sm:$0xff]  ;;  %v378_v56 = vld [vmem:[#allocation2 + $0x830] sm:$0xff] }
 0x137   :  { %1787 = vmatprep.subr.mxu1 %v765_v57  ;;  %1551 = vmatprep.mubr.f32.mxu1 %v293_v58  ;;  %v678_v57 = vld [vmem:[#allocation5 + $0x910] sm:$0xff]  ;;  %v744_v58 = vld [vmem:[#allocation5 + $0xb20] sm:$0xff] }
 0x138   :  { %1629 = vmatpush2.msra.mxu0 %v698_v59  ;;  %1788 = vmatpush2.msra.mxu1 %v764_v60  ;;  %v936_v59 = vsub.s32 0, %v3299_v50  ;;  %v377_v60 = vld [vmem:[#allocation2 + $0x828] sm:$0xff] }
 0x139   :  { %1552 = vmatmul.mubr.f32.gmra.mxu1 %v292_v61  ;;  %1630 = vmatprep.subr.mxu0 %v697_v62  ;;  %v677_v61 = vld [vmem:[#allocation5 + $0x908] sm:$0xff]  ;;  %v932_v62 = vld [vmem:[#allocation7] sm:$0x3] }
 0x13a   :  { %1789 = vmatprep.subr.mxu1 %v763_v63  ;;  %1396 = vmatprep.mubr.f32.mxu0 %v308_v0  ;;  %v743_v63 = vld [vmem:[#allocation5 + $0xb18] sm:$0xff]  ;;  %v676_v0 = vld [vmem:[#allocation5 + $0x900] sm:$0xff] }
 0x13b   :  { %1631 = vmatpush2.msra.mxu0 %v696_v1  ;;  %1790 = vmatpush2.msra.mxu1 %v762_v2  ;;  %v125_v1 = vld [vmem:[#allocation2 + $0x48] sm:$0xff]  ;;  %v742_v2 = vld [vmem:[#allocation5 + $0xb10] sm:$0xff] }
 0x13c   :  { %1397 = vmatmul.mubr.f32.gmra.mxu0 %v307_v3  ;;  %1632 = vmatprep.subr.mxu0 %v695_v4  ;;  %v124_v3 = vld [vmem:[#allocation2 + $0x40] sm:$0xff]  ;;  %v741_v4 = vld [vmem:[#allocation5 + $0xb08] sm:$0xff] }
 0x13d   :  { %1791 = vmatprep.subr.mxu1 %v761_v5  ;;  %1557 = vmatprep.mubr.f32.mxu1 %v310_v6  ;;  %v3302_v5 = vrot.slane %v932_v62, %v936_v59  ;;  %v803_v6 = vld [vmem:[#allocation5 + $0xcf8] sm:$0xff]  ;;  %v857_v59 = vld [vmem:[#allocation5 + $0xea8] sm:$0xff]  ;;  %v790_v62 = vld [vmem:[#allocation5 + $0xc90] sm:$0xff] }
 0x13e   :  { %1633 = vmatpush2.msra.mxu0 %v694_v7  ;;  %1792 = vmatpush2.msra.mxu1 %v760_v8  ;;  %v740_v7 = vld [vmem:[#allocation5 + $0xb00] sm:$0xff]  ;;  %v127_v8 = vld [vmem:[#allocation2 + $0x58] sm:$0xff] }
 0x13f   :  { %1558 = vmatmul.mubr.f32.gmra.mxu1 %v309_v9  ;;  %1634 = vmatprep.subr.mxu0 %v693_v10  ;;  %v802_v9 = vld [vmem:[#allocation5 + $0xcf0] sm:$0xff] }
 0x140   :  { %1793 = vmatprep.subr.mxu1 %v759_v11  ;;  %1402 = vmatprep.mubr.f32.mxu0 %v325_v12  ;;  %v126_v10 = vld [vmem:[#allocation2 + $0x50] sm:$0xff]  ;;  %v801_v11 = vld [vmem:[#allocation5 + $0xce8] sm:$0xff] }
 0x141   :  { %1635 = vmatpush2.msra.mxu0 %v692_v13  ;;  %1794 = vmatpush2.msra.mxu1 %v758_v14  ;;  %v867_v13 = vld [vmem:[#allocation5 + $0xef8] sm:$0xff]  ;;  %v142_v14 = vld [vmem:[#allocation2 + $0xd0] sm:$0xff] }
 0x142   :  { %1403 = vmatmul.mubr.f32.gmra.mxu0 %v324_v15  ;;  %1636 = vmatprep.subr.mxu0 %v691_v16  ;;  %v800_v16 = vld [vmem:[#allocation5 + $0xce0] sm:$0xff] }
 0x143   :  { %1795 = vmatprep.subr.mxu1 %v757_v17  ;;  %1563 = vmatprep.mubr.f32.mxu1 %v327_v18  ;;  %v866_v17 = vld [vmem:[#allocation5 + $0xef0] sm:$0xff] }
 0x144   :  { %1637 = vmatpush2.msra.mxu0 %v690_v19  ;;  %1796 = vmatpush2.msra.mxu1 %v756_v20  ;;  %v141_v19 = vld [vmem:[#allocation2 + $0xc8] sm:$0xff]  ;;  %v799_v20 = vld [vmem:[#allocation5 + $0xcd8] sm:$0xff] }
 0x145   :  { %1564 = vmatmul.mubr.f32.gmra.mxu1 %v326_v21  ;;  %1638 = vmatprep.subr.mxu0 %v689_v22  ;;  %v865_v22 = vld [vmem:[#allocation5 + $0xee8] sm:$0xff] }
 0x146   :  { %1797 = vmatprep.subr.mxu1 %v755_v23  ;;  %1408 = vmatprep.mubr.f32.mxu0 %v342_v24  ;;  %v144_v23 = vld [vmem:[#allocation2 + $0xe0] sm:$0xff] }
 0x147   :  { %1639 = vmatpush2.msra.mxu0 %v688_v25  ;;  %1798 = vmatpush2.msra.mxu1 %v754_v26  ;;  %v798_v25 = vld [vmem:[#allocation5 + $0xcd0] sm:$0xff]  ;;  %v864_v26 = vld [vmem:[#allocation5 + $0xee0] sm:$0xff] }
 0x148   :  { %1409 = vmatmul.mubr.f32.gmra.mxu0 %v341_v27  ;;  %1640 = vmatprep.subr.mxu0 %v687_v28  ;;  %v143_v28 = vld [vmem:[#allocation2 + $0xd8] sm:$0xff] }
 0x149   :  { %1799 = vmatprep.subr.mxu1 %v753_v29  ;;  %1569 = vmatprep.mubr.f32.mxu1 %v344_v30  ;;  %v797_v29 = vld [vmem:[#allocation5 + $0xcc8] sm:$0xff] }
 0x14a   :  { %1641 = vmatpush2.msra.mxu0 %v686_v31  ;;  %1800 = vmatpush2.msra.mxu1 %v752_v32  ;;  %v863_v31 = vld [vmem:[#allocation5 + $0xed8] sm:$0xff] }
 0x14b   :  { %1570 = vmatmul.mubr.f32.gmra.mxu1 %v343_v33  ;;  %1642 = vmatprep.subr.mxu0 %v685_v34  ;;  %v159_v32 = vld [vmem:[#allocation2 + $0x158] sm:$0xff]  ;;  %v796_v34 = vld [vmem:[#allocation5 + $0xcc0] sm:$0xff] }
 0x14c   :  { %1801 = vmatprep.subr.mxu1 %v751_v35  ;;  %1414 = vmatprep.mubr.f32.mxu0 %v359_v36  ;;  %v862_v35 = vld [vmem:[#allocation5 + $0xed0] sm:$0xff] }
 0x14d   :  { %1643 = vmatpush2.msra.mxu0 %v684_v37  ;;  %1802 = vmatpush2.msra.mxu1 %v750_v38  ;;  %v158_v37 = vld [vmem:[#allocation2 + $0x150] sm:$0xff]  ;;  %v795_v38 = vld [vmem:[#allocation5 + $0xcb8] sm:$0xff] }
 0x14e   :  { %1415 = vmatmul.mubr.f32.gmra.mxu0 %v358_v39  ;;  %1644 = vmatprep.subr.mxu0 %v683_v40  ;;  %v861_v40 = vld [vmem:[#allocation5 + $0xec8] sm:$0xff] }
 0x14f   :  { %1803 = vmatprep.subr.mxu1 %v749_v42  ;;  %1575 = vmatprep.mubr.f32.mxu1 %v361_v43  ;;  %v794_v43 = vld [vmem:[#allocation5 + $0xcb0] sm:$0xff] }
 0x150   :  { %1645 = vmatpush2.msra.mxu0 %v682_v44  ;;  %1804 = vmatpush2.msra.mxu1 %v748_v45  ;;  %v860_v44 = vld [vmem:[#allocation5 + $0xec0] sm:$0xff] }
 0x151   :  { %1576 = vmatmul.mubr.f32.gmra.mxu1 %v360_v46  ;;  %1646 = vmatprep.subr.mxu0 %v681_v47  ;;  %v160_v46 = vld [vmem:[#allocation2 + $0x160] sm:$0xff]  ;;  %v793_v47 = vld [vmem:[#allocation5 + $0xca8] sm:$0xff] }
 0x152   :  { %1805 = vmatprep.subr.mxu1 %v747_v48  ;;  %1420 = vmatprep.mubr.f32.mxu0 %v376_v49  ;;  %v859_v49 = vld [vmem:[#allocation5 + $0xeb8] sm:$0xff] }
 0x153   :  { %1647 = vmatpush2.msra.mxu0 %v680_v51  ;;  %1806 = vmatpush2.msra.mxu1 %v746_v52  ;;  %v176_v51 = vld [vmem:[#allocation2 + $0x1e0] sm:$0xff] }
 0x154   :  { %1421 = vmatmul.mubr.f32.gmra.mxu0 %v375_v53  ;;  %1648 = vmatprep.subr.mxu0 %v679_v54  ;;  %v792_v53 = vld [vmem:[#allocation5 + $0xca0] sm:$0xff]  ;;  %v858_v54 = vld [vmem:[#allocation5 + $0xeb0] sm:$0xff] }
 0x155   :  { %1807 = vmatprep.subr.mxu1 %v745_v55  ;;  %1581 = vmatprep.mubr.f32.mxu1 %v378_v56  ;;  %v175_v56 = vld [vmem:[#allocation2 + $0x1d8] sm:$0xff] }
 0x156   :  { %1649 = vmatpush2.msra.mxu0 %v678_v57  ;;  %1808 = vmatpush2.msra.mxu1 %v744_v58  ;;  %v791_v57 = vld [vmem:[#allocation5 + $0xc98] sm:$0xff] }
 0x157   :  { %1582 = vmatmul.mubr.f32.gmra.mxu1 %v377_v60  ;;  %1650 = vmatprep.subr.mxu0 %v677_v61  ;;  %v178_v60 = vld [vmem:[#allocation2 + $0x1f0] sm:$0xff] }
 0x158   :  { %1809 = vmatprep.subr.mxu1 %v743_v63  ;;  %1651 = vmatpush2.msra.mxu0 %v676_v0  ;;  %v856_v63 = vld [vmem:[#allocation5 + $0xea0] sm:$0xff] }
 0x159   :  { %1652 = vmatprep.mubr.f32.mxu0 %v125_v1  ;;  %1810 = vmatpush2.msra.mxu1 %v742_v2  ;;  %v177_v1 = vld [vmem:[#allocation2 + $0x1e8] sm:$0xff] }
 0x15a   :  { %1653 = vmatmul.mubr.f32.vlgmr.msra.gmra.mxu0 %v124_v3  ;;  %1811 = vmatprep.subr.mxu1 %v741_v4  ;;  %v1010_v12 = vpop.f32.mrf.mxu0  ;;  %v789_v2 = vld [vmem:[#allocation5 + $0xc88] sm:$0xff]  ;;  %v855_v4 = vld [vmem:[#allocation5 + $0xe98] sm:$0xff] }
 0x15b   :  { %1910 = vmatprep.subr.mxu0 %v803_v6  ;;  %1812 = vmatpush2.msra.mxu1 %v740_v7  ;;  %v1011_v15 = vadd.f32 %v1010_v12, %v3302_v5  ;;  %v193_v6 = vld [vmem:[#allocation2 + $0x268] sm:$0xff]  ;;  %v787_v12 = vld [vmem:[#allocation5 + $0xc78] sm:$0xff] }
 0x15c   :  { %1813 = vmatprep.mubr.f32.mxu1 %v127_v8  ;;  %1911 = vmatpush1.msra.mxu0 %v802_v9  ;;  %v3305_v18 = vpop.f32.mrf.mxu0  ;;  %v788_v8 = vld [vmem:[#allocation5 + $0xc80] sm:$0xff]  ;;  %v854_v9 = vld [vmem:[#allocation5 + $0xe90] sm:$0xff] }
 0x15d   :  { %1814 = vmatmul.mubr.f32.vlgmr.msra.gmra.mxu1 %v126_v10  ;;  %1912 = vmatprep.subr.mxu0 %v801_v11  ;;  %v1171_v21 = vpop.f32.mrf.mxu1  ;;  %v192_v11 = vld [vmem:[#allocation2 + $0x260] sm:$0xff] }
 0x15e   :  { %2071 = vmatprep.subr.mxu1 %v867_v13  ;;  %1658 = vmatprep.mubr.f32.mxu0 %v142_v14  ;;  %v3307_v24 = vadd.f32 %v1171_v21, %v1011_v15  ;;  %v853_v14 = vld [vmem:[#allocation5 + $0xe88] sm:$0xff]  ;;  %v195_v15 = vld [vmem:[#allocation2 + $0x278] sm:$0xff]  ;;  %v194_v21 = vld [vmem:[#allocation2 + $0x270] sm:$0xff] }
 0x15f   :  { %1913 = vmatpush1.msra.mxu0 %v800_v16  ;;  %2072 = vmatpush1.msra.mxu1 %v866_v17  ;;  %v3309_v27 = vpop.f32.mrf.mxu1  ;;  %v786_v17 = vld [vmem:[#allocation5 + $0xc70] sm:$0xff] }
 0x160   :  { %1659 = vmatmul.mubr.f32.gmra.mxu0 %v141_v19  ;;  %1914 = vmatprep.subr.mxu0 %v799_v20  ;;  %v1016_v30 = vpop.f32.mrf.mxu0  ;;  %v852_v19 = vld [vmem:[#allocation5 + $0xe80] sm:$0xff] }
 0x161   :  { %2073 = vmatprep.subr.mxu1 %v865_v22  ;;  %1819 = vmatprep.mubr.f32.mxu1 %v144_v23  ;;  %v1017_v33 = vadd.f32 %v1016_v30, %v3302_v5  ;;  %v785_v22 = vld [vmem:[#allocation5 + $0xc68] sm:$0xff]  ;;  %v850_v30 = vld [vmem:[#allocation5 + $0xe70] sm:$0xff] }
 0x162   :  { %1915 = vmatpush1.msra.mxu0 %v798_v25  ;;  %2074 = vmatpush1.msra.mxu1 %v864_v26  ;;  %v3312_v36 = vpop.f32.mrf.mxu0  ;;  %v851_v25 = vld [vmem:[#allocation5 + $0xe78] sm:$0xff]  ;;  %v210_v26 = vld [vmem:[#allocation2 + $0x2f0] sm:$0xff] }
 0x163   :  { %1820 = vmatmul.mubr.f32.gmra.mxu1 %v143_v28  ;;  %1916 = vmatprep.subr.mxu0 %v797_v29  ;;  %v1177_v39 = vpop.f32.mrf.mxu1  ;;  %v784_v29 = vld [vmem:[#allocation5 + $0xc60] sm:$0xff] }
 0x164   :  { %2075 = vmatprep.subr.mxu1 %v863_v31  ;;  %1664 = vmatprep.mubr.f32.mxu0 %v159_v32  ;;  %v3314_v42 = vadd.f32 %v1177_v39, %v1017_v33  ;;  %v209_v32 = vld [vmem:[#allocation2 + $0x2e8] sm:$0xff]  ;;  %v783_v33 = vld [vmem:[#allocation5 + $0xc58] sm:$0xff]  ;;  %v782_v39 = vld [vmem:[#allocation5 + $0xc50] sm:$0xff] }
 0x165   :  { %1917 = vmatpush1.msra.mxu0 %v796_v34  ;;  %2076 = vmatpush1.msra.mxu1 %v862_v35  ;;  %v3316_v45 = vpop.f32.mrf.mxu1  ;;  %v849_v35 = vld [vmem:[#allocation5 + $0xe68] sm:$0xff] }
 0x166   :  { %1665 = vmatmul.mubr.f32.gmra.mxu0 %v158_v37  ;;  %1918 = vmatprep.subr.mxu0 %v795_v38  ;;  %v1022_v48 = vpop.f32.mrf.mxu0  ;;  %v212_v37 = vld [vmem:[#allocation2 + $0x300] sm:$0xff] }
 0x167   :  { %2077 = vmatprep.subr.mxu1 %v861_v40  ;;  %1825 = vmatprep.mubr.f32.mxu1 %v161_v41  ;;  %v1023_v52 = vadd.f32 %v1022_v48, %v3302_v5  ;;  %v848_v40 = vld [vmem:[#allocation5 + $0xe60] sm:$0xff]  ;;  %v227_v48 = vld [vmem:[#allocation2 + $0x378] sm:$0xff] }
 0x168   :  { %1919 = vmatpush1.msra.mxu0 %v794_v43  ;;  %2078 = vmatpush1.msra.mxu1 %v860_v44  ;;  %v3319_v55 = vpop.f32.mrf.mxu0  ;;  %v211_v43 = vld [vmem:[#allocation2 + $0x2f8] sm:$0xff]  ;;  %v781_v44 = vld [vmem:[#allocation5 + $0xc48] sm:$0xff] }
 0x169   :  { %1826 = vmatmul.mubr.f32.gmra.mxu1 %v160_v46  ;;  %1920 = vmatprep.subr.mxu0 %v793_v47  ;;  %v1183_v58 = vpop.f32.mrf.mxu1  ;;  %v847_v47 = vld [vmem:[#allocation5 + $0xe58] sm:$0xff] }
 0x16a   :  { %2079 = vmatprep.subr.mxu1 %v859_v49  ;;  %1670 = vmatprep.mubr.f32.mxu0 %v176_v51  ;;  %v3321_v61 = vadd.f32 %v1183_v58, %v1023_v52  ;;  %v780_v51 = vld [vmem:[#allocation5 + $0xc40] sm:$0xff]  ;;  %v846_v52 = vld [vmem:[#allocation5 + $0xe50] sm:$0xff]  ;;  %v845_v58 = vld [vmem:[#allocation5 + $0xe48] sm:$0xff] }
 0x16b   :  { %1921 = vmatpush1.msra.mxu0 %v792_v53  ;;  %2080 = vmatpush1.msra.mxu1 %v858_v54  ;;  %v3323_v0 = vpop.f32.mrf.mxu1  ;;  %v226_v54 = vld [vmem:[#allocation2 + $0x370] sm:$0xff] }
 0x16c   :  { %1671 = vmatmul.mubr.f32.gmra.mxu0 %v175_v56  ;;  %1922 = vmatprep.subr.mxu0 %v791_v57  ;;  %v1028_v3 = vpop.f32.mrf.mxu0  ;;  %v779_v56 = vld [vmem:[#allocation5 + $0xc38] sm:$0xff] }
 0x16d   :  { %2081 = vmatprep.subr.mxu1 %v857_v59  ;;  %1831 = vmatprep.mubr.f32.mxu1 %v178_v60  ;;  %v1029_v7 = vadd.f32 %v1028_v3, %v3302_v5  ;;  %v229_v59 = vld [vmem:[#allocation2 + $0x388] sm:$0xff] }
 0x16e   :  { %1923 = vmatpush1.msra.mxu0 %v790_v62  ;;  %2082 = vmatpush1.msra.mxu1 %v856_v63  ;;  %v3326_v10 = vpop.f32.mrf.mxu0  ;;  %v778_v62 = vld [vmem:[#allocation5 + $0xc30] sm:$0xff]  ;;  %v844_v63 = vld [vmem:[#allocation5 + $0xe40] sm:$0xff]  ;;  %v777_v3 = vld [vmem:[#allocation5 + $0xc28] sm:$0xff] }
 0x16f   :  { %1832 = vmatmul.mubr.f32.gmra.mxu1 %v177_v1  ;;  %1924 = vmatprep.subr.mxu0 %v789_v2  ;;  %v1189_v13 = vpop.f32.mrf.mxu1  ;;  %v228_v2 = vld [vmem:[#allocation2 + $0x380] sm:$0xff] }
 0x170   :  { %2083 = vmatprep.subr.mxu1 %v855_v4  ;;  %1676 = vmatprep.mubr.f32.mxu0 %v193_v6  ;;  %v3328_v16 = vadd.f32 %v1189_v13, %v1029_v7  ;;  %v843_v6 = vld [vmem:[#allocation5 + $0xe38] sm:$0xff]  ;;  %v244_v7 = vld [vmem:[#allocation2 + $0x400] sm:$0xff] }
 0x171   :  { %1925 = vmatpush1.msra.mxu0 %v788_v8  ;;  %2084 = vmatpush1.msra.mxu1 %v854_v9  ;;  %v3330_v20 = vpop.f32.mrf.mxu1  ;;  %v776_v9 = vld [vmem:[#allocation5 + $0xc20] sm:$0xff]  ;;  %v243_v13 = vld [vmem:[#allocation2 + $0x3f8] sm:$0xff] }
 0x172   :  { %1677 = vmatmul.mubr.f32.gmra.mxu0 %v192_v11  ;;  %1926 = vmatprep.subr.mxu0 %v787_v12  ;;  %v1034_v23 = vpop.f32.mrf.mxu0  ;;  %v842_v11 = vld [vmem:[#allocation5 + $0xe30] sm:$0xff] }
 0x173   :  { %2085 = vmatprep.subr.mxu1 %v853_v14  ;;  %1837 = vmatprep.mubr.f32.mxu1 %v195_v15  ;;  %v1035_v28 = vadd.f32 %v1034_v23, %v3302_v5  ;;  %v775_v14 = vld [vmem:[#allocation5 + $0xc18] sm:$0xff]  ;;  %v840_v23 = vld [vmem:[#allocation5 + $0xe20] sm:$0xff] }
 0x174   :  { %1927 = vmatpush1.msra.mxu0 %v786_v17  ;;  %2086 = vmatpush1.msra.mxu1 %v852_v19  ;;  %v3333_v31 = vpop.f32.mrf.mxu0  ;;  %v841_v17 = vld [vmem:[#allocation5 + $0xe28] sm:$0xff]  ;;  %v246_v19 = vld [vmem:[#allocation2 + $0x410] sm:$0xff] }
 0x175   :  { %1838 = vmatmul.mubr.f32.gmra.mxu1 %v194_v21  ;;  %1928 = vmatprep.subr.mxu0 %v785_v22  ;;  %v1195_v34 = vpop.f32.mrf.mxu1  ;;  %v774_v22 = vld [vmem:[#allocation5 + $0xc10] sm:$0xff] }
 0x176   :  { %2087 = vmatprep.subr.mxu1 %v851_v25  ;;  %1682 = vmatprep.mubr.f32.mxu0 %v210_v26  ;;  %v3335_v38 = vadd.f32 %v1195_v34, %v1035_v28  ;;  %v245_v26 = vld [vmem:[#allocation2 + $0x408] sm:$0xff]  ;;  %v772_v34 = vld [vmem:[#allocation5 + $0xc00] sm:$0xff] }
 0x177   :  { %1929 = vmatpush1.msra.mxu0 %v784_v29  ;;  %2088 = vmatpush1.msra.mxu1 %v850_v30  ;;  %v3337_v41 = vpop.f32.mrf.mxu1  ;;  %v773_v28 = vld [vmem:[#allocation5 + $0xc08] sm:$0xff]  ;;  %v839_v30 = vld [vmem:[#allocation5 + $0xe18] sm:$0xff] }
 0x178   :  { %1683 = vmatmul.mubr.f32.gmra.mxu0 %v209_v32  ;;  %1930 = vmatprep.subr.mxu0 %v783_v33  ;;  %v1040_v46 = vpop.f32.mrf.mxu0  ;;  %v261_v32 = vld [vmem:[#allocation2 + $0x488] sm:$0xff] }
 0x179   :  { %2089 = vmatprep.subr.mxu1 %v849_v35  ;;  %1843 = vmatprep.mubr.f32.mxu1 %v212_v37  ;;  %v1041_v49 = vadd.f32 %v1040_v46, %v3302_v5  ;;  %v838_v35 = vld [vmem:[#allocation5 + $0xe10] sm:$0xff]  ;;  %v263_v46 = vld [vmem:[#allocation2 + $0x498] sm:$0xff] }
 0x17a   :  { %1931 = vmatpush1.msra.mxu0 %v782_v39  ;;  %2090 = vmatpush1.msra.mxu1 %v848_v40  ;;  %v3340_v53 = vpop.f32.mrf.mxu0  ;;  %v260_v39 = vld [vmem:[#allocation2 + $0x480] sm:$0xff]  ;;  %v835_v40 = vld [vmem:[#allocation5 + $0xdf8] sm:$0xff] }
 0x17b   :  { %1844 = vmatmul.mubr.f32.gmra.mxu1 %v211_v43  ;;  %1932 = vmatprep.subr.mxu0 %v781_v44  ;;  %v1201_v57 = vpop.f32.mrf.mxu1  ;;  %v837_v44 = vld [vmem:[#allocation5 + $0xe08] sm:$0xff] }
 0x17c   :  { %2091 = vmatprep.subr.mxu1 %v847_v47  ;;  %1688 = vmatprep.mubr.f32.mxu0 %v227_v48  ;;  %v3342_v60 = vadd.f32 %v1201_v57, %v1041_v49  ;;  %v834_v48 = vld [vmem:[#allocation5 + $0xdf0] sm:$0xff]  ;;  %v836_v49 = vld [vmem:[#allocation5 + $0xe00] sm:$0xff]  ;;  %v899_v57 = vld [vmem:[#allocation5 + $0xff8] sm:$0xff] }
 0x17d   :  { %1933 = vmatpush1.msra.mxu0 %v780_v51  ;;  %2092 = vmatpush1.msra.mxu1 %v846_v52  ;;  %v3344_v1 = vpop.f32.mrf.mxu1  ;;  %v262_v52 = vld [vmem:[#allocation2 + $0x490] sm:$0xff] }
 0x17e   :  { %4105 = vst [vmem:[#allocation20_spill] sm:$0xff] %v3344_v1  ;;  %1689 = vmatmul.mubr.f32.gmra.mxu0 %v226_v54  ;;  %1934 = vmatprep.subr.mxu0 %v779_v56  ;;  %v1046_v4 = vpop.f32.mrf.mxu0  ;;  %v833_v54 = vld [vmem:[#allocation5 + $0xde8] sm:$0xff] }
 0x17f   :  { %2093 = vmatprep.subr.mxu1 %v845_v58  ;;  %1849 = vmatprep.mubr.f32.mxu1 %v229_v59  ;;  %v1047_v8 = vadd.f32 %v1046_v4, %v3302_v5  ;;  %v278_v58 = vld [vmem:[#allocation2 + $0x510] sm:$0xff]  ;;  %v831_v4 = vld [vmem:[#allocation5 + $0xdd8] sm:$0xff] }
 0x180   :  { %1935 = vmatpush1.msra.mxu0 %v778_v62  ;;  %2094 = vmatpush1.msra.mxu1 %v844_v63  ;;  %v3347_v12 = vpop.f32.mrf.mxu0  ;;  %v832_v62 = vld [vmem:[#allocation5 + $0xde0] sm:$0xff]  ;;  %v898_v63 = vld [vmem:[#allocation5 + $0xff0] sm:$0xff] }
 0x181   :  { %1850 = vmatmul.mubr.f32.gmra.mxu1 %v228_v2  ;;  %1936 = vmatprep.subr.mxu0 %v777_v3  ;;  %v1207_v15 = vpop.f32.mrf.mxu1  ;;  %v277_v3 = vld [vmem:[#allocation2 + $0x508] sm:$0xff] }
 0x182   :  { %2095 = vmatprep.subr.mxu1 %v843_v6  ;;  %1694 = vmatprep.mubr.f32.mxu0 %v244_v7  ;;  %v3349_v21 = vadd.f32 %v1207_v15, %v1047_v8  ;;  %v897_v7 = vld [vmem:[#allocation5 + $0xfe8] sm:$0xff]  ;;  %v280_v8 = vld [vmem:[#allocation2 + $0x520] sm:$0xff]  ;;  %v279_v15 = vld [vmem:[#allocation2 + $0x518] sm:$0xff] }
 0x183   :  { %1937 = vmatpush1.msra.mxu0 %v776_v9  ;;  %2096 = vmatpush1.msra.mxu1 %v842_v11  ;;  %v3351_v25 = vpop.f32.mrf.mxu1  ;;  %v830_v11 = vld [vmem:[#allocation5 + $0xdd0] sm:$0xff] }
 0x184   :  { %4106 = vst [vmem:[#allocation21_spill] sm:$0xff] %v3351_v25  ;;  %1695 = vmatmul.mubr.f32.gmra.mxu0 %v243_v13  ;;  %1938 = vmatprep.subr.mxu0 %v775_v14  ;;  %v1052_v29 = vpop.f32.mrf.mxu0  ;;  %v896_v13 = vld [vmem:[#allocation5 + $0xfe0] sm:$0xff] }
 0x185   :  { %2097 = vmatprep.subr.mxu1 %v841_v17  ;;  %1855 = vmatprep.mubr.f32.mxu1 %v246_v19  ;;  %v1053_v33 = vadd.f32 %v1052_v29, %v3302_v5  ;;  %v829_v17 = vld [vmem:[#allocation5 + $0xdc8] sm:$0xff]  ;;  %v894_v29 = vld [vmem:[#allocation5 + $0xfd0] sm:$0xff] }
 0x186   :  { %1939 = vmatpush1.msra.mxu0 %v774_v22  ;;  %2098 = vmatpush1.msra.mxu1 %v840_v23  ;;  %v3354_v37 = vpop.f32.mrf.mxu0  ;;  %v895_v22 = vld [vmem:[#allocation5 + $0xfd8] sm:$0xff] }
 0x187   :  { %4107 = vst [vmem:[#allocation22_spill] sm:$0xff] %v3354_v37  ;;  %1856 = vmatmul.mubr.f32.gmra.mxu1 %v245_v26  ;;  %1940 = vmatprep.subr.mxu0 %v773_v28  ;;  %v1213_v43 = vpop.f32.mrf.mxu1  ;;  %v295_v23 = vld [vmem:[#allocation2 + $0x598] sm:$0xff]  ;;  %v828_v28 = vld [vmem:[#allocation5 + $0xdc0] sm:$0xff] }
 0x188   :  { %2099 = vmatprep.subr.mxu1 %v839_v30  ;;  %1700 = vmatprep.mubr.f32.mxu0 %v261_v32  ;;  %v3356_v47 = vadd.f32 %v1213_v43, %v1053_v33  ;;  %v294_v32 = vld [vmem:[#allocation2 + $0x590] sm:$0xff]  ;;  %v827_v33 = vld [vmem:[#allocation5 + $0xdb8] sm:$0xff] }
 0x189   :  { %1941 = vmatpush1.msra.mxu0 %v772_v34  ;;  %2100 = vmatpush1.msra.mxu1 %v838_v35  ;;  %v3358_v51 = vpop.f32.mrf.mxu1  ;;  %v893_v35 = vld [vmem:[#allocation5 + $0xfc8] sm:$0xff]  ;;  %v826_v43 = vld [vmem:[#allocation5 + $0xdb0] sm:$0xff] }
 0x18a   :  { %4108 = vst [vmem:[#allocation23_spill] sm:$0xff] %v3358_v51  ;;  %1701 = vmatmul.mubr.f32.gmra.mxu0 %v260_v39  ;;  %1942 = vmatprep.subr.mxu0 %v835_v40  ;;  %v1058_v56 = vpop.f32.mrf.mxu0  ;;  %v297_v39 = vld [vmem:[#allocation2 + $0x5a8] sm:$0xff] }
 0x18b   :  { %2101 = vmatprep.subr.mxu1 %v837_v44  ;;  %1861 = vmatprep.mubr.f32.mxu1 %v263_v46  ;;  %v1059_v59 = vadd.f32 %v1058_v56, %v3302_v5  ;;  %v892_v44 = vld [vmem:[#allocation5 + $0xfc0] sm:$0xff] }
 0x18c   :  { %1943 = vmatpush2.msra.mxu0 %v834_v48  ;;  %2102 = vmatpush1.msra.mxu1 %v836_v49  ;;  %v3361_v2 = vpop.f32.mrf.mxu0  ;;  %v296_v48 = vld [vmem:[#allocation2 + $0x5a0] sm:$0xff]  ;;  %v825_v49 = vld [vmem:[#allocation5 + $0xda8] sm:$0xff] }
 0x18d   :  { %4109 = vst [vmem:[#allocation24_spill] sm:$0xff] %v3361_v2  ;;  %1862 = vmatmul.mubr.f32.gmra.mxu1 %v262_v52  ;;  %1944 = vmatprep.subr.mxu0 %v833_v54  ;;  %v1219_v6 = vpop.f32.mrf.mxu1  ;;  %v891_v54 = vld [vmem:[#allocation5 + $0xfb8] sm:$0xff]  ;;  %v312_v56 = vld [vmem:[#allocation2 + $0x620] sm:$0xff] }
 0x18e   :  { %2103 = vmatprep.subr.mxu1 %v899_v57  ;;  %1706 = vmatprep.mubr.f32.mxu0 %v278_v58  ;;  %v3363_v9 = vadd.f32 %v1219_v6, %v1059_v59  ;;  %v824_v58 = vld [vmem:[#allocation5 + $0xda0] sm:$0xff]  ;;  %v890_v59 = vld [vmem:[#allocation5 + $0xfb0] sm:$0xff]  ;;  %v889_v6 = vld [vmem:[#allocation5 + $0xfa8] sm:$0xff] }
 0x18f   :  { %1945 = vmatpush2.msra.mxu0 %v832_v62  ;;  %2104 = vmatpush2.msra.mxu1 %v898_v63  ;;  %v3365_v14 = vpop.f32.mrf.mxu1  ;;  %v311_v63 = vld [vmem:[#allocation2 + $0x618] sm:$0xff] }
 0x190   :  { %4110 = vst [vmem:[#allocation25_spill] sm:$0xff] %v3365_v14  ;;  %1707 = vmatmul.mubr.f32.gmra.mxu0 %v277_v3  ;;  %1946 = vmatprep.subr.mxu0 %v831_v4  ;;  %v1064_v19 = vpop.f32.mrf.mxu0  ;;  %v823_v3 = vld [vmem:[#allocation5 + $0xd98] sm:$0xff] }
 0x191   :  { %2105 = vmatprep.subr.mxu1 %v897_v7  ;;  %1867 = vmatprep.mubr.f32.mxu1 %v280_v8  ;;  %v1065_v26 = vadd.f32 %v1064_v19, %v3302_v5  ;;  %v314_v7 = vld [vmem:[#allocation2 + $0x630] sm:$0xff]  ;;  %v821_v19 = vld [vmem:[#allocation5 + $0xd88] sm:$0xff] }
 0x192   :  { %1947 = vmatpush2.msra.mxu0 %v830_v11  ;;  %2106 = vmatpush2.msra.mxu1 %v896_v13  ;;  %v3368_v30 = vpop.f32.mrf.mxu0  ;;  %v822_v11 = vld [vmem:[#allocation5 + $0xd90] sm:$0xff]  ;;  %v888_v13 = vld [vmem:[#allocation5 + $0xfa0] sm:$0xff] }
 0x193   :  { %4111 = vst [vmem:[#allocation26_spill] sm:$0xff] %v3368_v30  ;;  %1868 = vmatmul.mubr.f32.gmra.mxu1 %v279_v15  ;;  %1948 = vmatprep.subr.mxu0 %v829_v17  ;;  %v1225_v34 = vpop.f32.mrf.mxu1  ;;  %v313_v17 = vld [vmem:[#allocation2 + $0x628] sm:$0xff]  ;;  %v248_v30 = vld [vmem:[#allocation2 + $0x420] sm:$0xff] }
 0x194   :  { %2107 = vmatprep.subr.mxu1 %v895_v22  ;;  %1712 = vmatprep.mubr.f32.mxu0 %v295_v23  ;;  %v3370_v40 = vadd.f32 %v1225_v34, %v1065_v26  ;;  %v887_v23 = vld [vmem:[#allocation5 + $0xf98] sm:$0xff]  ;;  %v329_v26 = vld [vmem:[#allocation2 + $0x6a8] sm:$0xff]  ;;  %v328_v34 = vld [vmem:[#allocation2 + $0x6a0] sm:$0xff] }
 0x195   :  { %1949 = vmatpush2.msra.mxu0 %v828_v28  ;;  %2108 = vmatpush2.msra.mxu1 %v894_v29  ;;  %v3372_v46 = vpop.f32.mrf.mxu1  ;;  %v820_v29 = vld [vmem:[#allocation5 + $0xd80] sm:$0xff] }
 0x196   :  { %4112 = vst [vmem:[#allocation27_spill] sm:$0xff] %v3372_v46  ;;  %1713 = vmatmul.mubr.f32.gmra.mxu0 %v294_v32  ;;  %1950 = vmatprep.subr.mxu0 %v827_v33  ;;  %v1070_v52 = vpop.f32.mrf.mxu0  ;;  %v886_v32 = vld [vmem:[#allocation5 + $0xf90] sm:$0xff] }
 0x197   :  { %2109 = vmatprep.subr.mxu1 %v893_v35  ;;  %1873 = vmatprep.mubr.f32.mxu1 %v297_v39  ;;  %v1071_v57 = vadd.f32 %v1070_v52, %v3302_v5  ;;  %v819_v35 = vld [vmem:[#allocation5 + $0xd78] sm:$0xff]  ;;  %v884_v52 = vld [vmem:[#allocation5 + $0xf80] sm:$0xff] }
 0x198   :  { %1951 = vmatpush2.msra.mxu0 %v826_v43  ;;  %2110 = vmatpush2.msra.mxu1 %v892_v44  ;;  %v3375_v62 = vpop.f32.mrf.mxu0  ;;  %v885_v43 = vld [vmem:[#allocation5 + $0xf88] sm:$0xff]  ;;  %v331_v44 = vld [vmem:[#allocation2 + $0x6b8] sm:$0xff] }
 0x199   :  { %4113 = vst [vmem:[#allocation28_spill] sm:$0xff] %v3375_v62  ;;  %1874 = vmatmul.mubr.f32.gmra.mxu1 %v296_v48  ;;  %1952 = vmatprep.subr.mxu0 %v825_v49  ;;  %v1231_v4 = vpop.f32.mrf.mxu1  ;;  %v818_v49 = vld [vmem:[#allocation5 + $0xd70] sm:$0xff] }
 0x19a   :  { %2111 = vmatprep.subr.mxu1 %v891_v54  ;;  %1718 = vmatprep.mubr.f32.mxu0 %v312_v56  ;;  %v3377_v8 = vadd.f32 %v1231_v4, %v1071_v57  ;;  %v330_v56 = vld [vmem:[#allocation2 + $0x6b0] sm:$0xff]  ;;  %v817_v57 = vld [vmem:[#allocation5 + $0xd68] sm:$0xff]  ;;  %v816_v4 = vld [vmem:[#allocation5 + $0xd60] sm:$0xff] }
 0x19b   :  { %1953 = vmatpush2.msra.mxu0 %v824_v58  ;;  %2112 = vmatpush2.msra.mxu1 %v890_v59  ;;  %v3379_v15 = vpop.f32.mrf.mxu1  ;;  %v883_v59 = vld [vmem:[#allocation5 + $0xf78] sm:$0xff]  ;;  %v922_v62 = vld [vmem:[#allocation5 + $0x10b0] sm:$0xff] }
 0x19c   :  { %4114 = vst [vmem:[#allocation29_spill] sm:$0xff] %v3379_v15  ;;  %1719 = vmatmul.mubr.f32.gmra.mxu0 %v311_v63  ;;  %1954 = vmatprep.subr.mxu0 %v823_v3  ;;  %v1076_v22 = vpop.f32.mrf.mxu0  ;;  %v346_v63 = vld [vmem:[#allocation2 + $0x730] sm:$0xff]  ;;  %v924_v15 = vld [vmem:[#allocation5 + $0x10c0] sm:$0xff] }
 0x19d   :  { %2113 = vmatprep.subr.mxu1 %v889_v6  ;;  %1879 = vmatprep.mubr.f32.mxu1 %v314_v7  ;;  %v1077_v28 = vadd.f32 %v1076_v22, %v3302_v5  ;;  %v882_v6 = vld [vmem:[#allocation5 + $0xf70] sm:$0xff]  ;;  %v348_v22 = vld [vmem:[#allocation2 + $0x740] sm:$0xff] }
 0x19e   :  { %1955 = vmatpush2.msra.mxu0 %v822_v11  ;;  %2114 = vmatpush2.msra.mxu1 %v888_v13  ;;  %v3382_v33 = vpop.f32.mrf.mxu0  ;;  %v345_v11 = vld [vmem:[#allocation2 + $0x728] sm:$0xff]  ;;  %v815_v13 = vld [vmem:[#allocation5 + $0xd58] sm:$0xff] }
 0x19f   :  { %4115 = vst [vmem:[#allocation30_spill] sm:$0xff] %v3382_v33  ;;  %1880 = vmatmul.mubr.f32.gmra.mxu1 %v313_v17  ;;  %1956 = vmatprep.subr.mxu0 %v821_v19  ;;  %v1237_v39 = vpop.f32.mrf.mxu1  ;;  %v881_v19 = vld [vmem:[#allocation5 + $0xf68] sm:$0xff]  ;;  %v147_v33 = vld [vmem:[#allocation2 + $0xf8] sm:$0xff] }
 0x1a0   :  { %2115 = vmatprep.subr.mxu1 %v887_v23  ;;  %1724 = vmatprep.mubr.f32.mxu0 %v329_v26  ;;  %v3384_v48 = vadd.f32 %v1237_v39, %v1077_v28  ;;  %v814_v26 = vld [vmem:[#allocation5 + $0xd50] sm:$0xff]  ;;  %v880_v28 = vld [vmem:[#allocation5 + $0xf60] sm:$0xff]  ;;  %v879_v39 = vld [vmem:[#allocation5 + $0xf58] sm:$0xff] }
 0x1a1   :  { %1957 = vmatpush2.msra.mxu0 %v820_v29  ;;  %2116 = vmatpush2.msra.mxu1 %v886_v32  ;;  %v3386_v54 = vpop.f32.mrf.mxu1  ;;  %v347_v32 = vld [vmem:[#allocation2 + $0x738] sm:$0xff] }
 0x1a2   :  { %4116 = vst [vmem:[#allocation31_spill] sm:$0xff] %v3386_v54  ;;  %1725 = vmatmul.mubr.f32.gmra.mxu0 %v328_v34  ;;  %1958 = vmatprep.subr.mxu0 %v819_v35  ;;  %v1082_v58 = vpop.f32.mrf.mxu0  ;;  %v813_v34 = vld [vmem:[#allocation5 + $0xd48] sm:$0xff] }
 0x1a3   :  { %2117 = vmatprep.subr.mxu1 %v885_v43  ;;  %1885 = vmatprep.mubr.f32.mxu1 %v331_v44  ;;  %v1083_v3 = vadd.f32 %v1082_v58, %v3302_v5  ;;  %v363_v43 = vld [vmem:[#allocation2 + $0x7b8] sm:$0xff]  ;;  %v145_v54 = vld [vmem:[#allocation2 + $0xe8] sm:$0xff] }
 0x1a4   :  { %1959 = vmatpush2.msra.mxu0 %v818_v49  ;;  %2118 = vmatpush2.msra.mxu1 %v884_v52  ;;  %v3389_v7 = vpop.f32.mrf.mxu0  ;;  %v812_v49 = vld [vmem:[#allocation5 + $0xd40] sm:$0xff]  ;;  %v878_v52 = vld [vmem:[#allocation5 + $0xf50] sm:$0xff]  ;;  %v811_v58 = vld [vmem:[#allocation5 + $0xd38] sm:$0xff] }
 0x1a5   :  { %1886 = vmatmul.mubr.f32.gmra.mxu1 %v330_v56  ;;  %1960 = vmatprep.subr.mxu0 %v817_v57  ;;  %v1243_v17 = vpop.f32.mrf.mxu1  ;;  %v362_v57 = vld [vmem:[#allocation2 + $0x7b0] sm:$0xff] }
 0x1a6   :  { %2119 = vmatprep.subr.mxu1 %v883_v59  ;;  %1730 = vmatprep.mubr.f32.mxu0 %v346_v63  ;;  %v3391_v23 = vadd.f32 %v1243_v17, %v1083_v3  ;;  %v877_v63 = vld [vmem:[#allocation5 + $0xf48] sm:$0xff]  ;;  %v364_v17 = vld [vmem:[#allocation2 + $0x7c0] sm:$0xff] }
 0x1a7   :  { %1961 = vmatpush2.msra.mxu0 %v816_v4  ;;  %2120 = vmatpush2.msra.mxu1 %v882_v6  ;;  %v3393_v29 = vpop.f32.mrf.mxu1  ;;  %v365_v3 = vld [vmem:[#allocation2 + $0x7c8] sm:$0xff]  ;;  %v810_v6 = vld [vmem:[#allocation5 + $0xd30] sm:$0xff] }
 0x1a8   :  { %1731 = vmatmul.mubr.f32.gmra.mxu0 %v345_v11  ;;  %1962 = vmatprep.subr.mxu0 %v815_v13  ;;  %v1088_v35 = vpop.f32.mrf.mxu0  ;;  %v876_v11 = vld [vmem:[#allocation5 + $0xf40] sm:$0xff] }
 0x1a9   :  { %2121 = vmatprep.subr.mxu1 %v881_v19  ;;  %1891 = vmatprep.mubr.f32.mxu1 %v348_v22  ;;  %v1089_v44 = vadd.f32 %v1088_v35, %v3302_v5  ;;  %v809_v19 = vld [vmem:[#allocation5 + $0xd28] sm:$0xff]  ;;  %v874_v35 = vld [vmem:[#allocation5 + $0xf30] sm:$0xff] }
 0x1aa   :  { %1963 = vmatpush2.msra.mxu0 %v814_v26  ;;  %2122 = vmatpush2.msra.mxu1 %v880_v28  ;;  %v3396_v56 = vpop.f32.mrf.mxu0  ;;  %v875_v26 = vld [vmem:[#allocation5 + $0xf38] sm:$0xff]  ;;  %v380_v28 = vld [vmem:[#allocation2 + $0x840] sm:$0xff] }
 0x1ab   :  { %1892 = vmatmul.mubr.f32.gmra.mxu1 %v347_v32  ;;  %1964 = vmatprep.subr.mxu0 %v813_v34  ;;  %v1249_v59 = vpop.f32.mrf.mxu1  ;;  %v808_v34 = vld [vmem:[#allocation5 + $0xd20] sm:$0xff] }
 0x1ac   :  { %2123 = vmatprep.subr.mxu1 %v879_v39  ;;  %1736 = vmatprep.mubr.f32.mxu0 %v363_v43  ;;  %v3398_v4 = vadd.f32 %v1249_v59, %v1089_v44  ;;  %v379_v43 = vld [vmem:[#allocation2 + $0x838] sm:$0xff]  ;;  %v806_v59 = vld [vmem:[#allocation5 + $0xd10] sm:$0xff] }
 0x1ad   :  { %1965 = vmatpush2.msra.mxu0 %v812_v49  ;;  %2124 = vmatpush2.msra.mxu1 %v878_v52  ;;  %v3400_v13 = vpop.f32.mrf.mxu1  ;;  %v807_v44 = vld [vmem:[#allocation5 + $0xd18] sm:$0xff]  ;;  %v873_v52 = vld [vmem:[#allocation5 + $0xf28] sm:$0xff] }
 0x1ae   :  { %1737 = vmatmul.mubr.f32.gmra.mxu0 %v362_v57  ;;  %1966 = vmatprep.subr.mxu0 %v811_v58  ;;  %v1094_v22 = vpop.f32.mrf.mxu0  ;;  %v382_v57 = vld [vmem:[#allocation2 + $0x850] sm:$0xff] }
 0x1af   :  { %2125 = vmatprep.subr.mxu1 %v877_v63  ;;  %1897 = vmatprep.mubr.f32.mxu1 %v365_v3  ;;  %v1095_v32 = vadd.f32 %v1094_v22, %v3302_v5  ;;  %v872_v63 = vld [vmem:[#allocation5 + $0xf20] sm:$0xff] }
 0x1b0   :  { %1967 = vmatpush2.msra.mxu0 %v810_v6  ;;  %2126 = vmatpush2.msra.mxu1 %v876_v11  ;;  %v3403_v39 = vpop.f32.mrf.mxu0  ;;  %v381_v6 = vld [vmem:[#allocation2 + $0x848] sm:$0xff]  ;;  %v804_v22 = vld [vmem:[#allocation5 + $0xd00] sm:$0xff] }
 0x1b1   :  { %1898 = vmatmul.mubr.f32.gmra.mxu1 %v364_v17  ;;  %1968 = vmatprep.subr.mxu0 %v809_v19  ;;  %v1255_v49 = vpop.f32.mrf.mxu1  ;;  %v805_v11 = vld [vmem:[#allocation5 + $0xd08] sm:$0xff]  ;;  %v871_v19 = vld [vmem:[#allocation5 + $0xf18] sm:$0xff] }
 0x1b2   :  { %2127 = vmatprep.subr.mxu1 %v875_v26  ;;  %1742 = vmatprep.mubr.f32.mxu0 %v380_v28  ;;  %v3405_v58 = vadd.f32 %v1255_v49, %v1095_v32  ;;  %v129_v28 = vld [vmem:[#allocation2 + $0x68] sm:$0xff]  ;;  %v870_v32 = vld [vmem:[#allocation5 + $0xf10] sm:$0xff]  ;;  %v931_v49 = vld [vmem:[#allocation5 + $0x10f8] sm:$0xff] }
 0x1b3   :  { %1969 = vmatpush2.msra.mxu0 %v808_v34  ;;  %2128 = vmatpush2.msra.mxu1 %v874_v35  ;;  %v3407_v3 = vpop.f32.mrf.mxu1  ;;  %v128_v35 = vld [vmem:[#allocation2 + $0x60] sm:$0xff] }
 0x1b4   :  { %1743 = vmatmul.mubr.f32.gmra.mxu0 %v379_v43  ;;  %1970 = vmatprep.subr.mxu0 %v807_v44  ;;  %v1100_v17 = vpop.f32.mrf.mxu0  ;;  %v869_v43 = vld [vmem:[#allocation5 + $0xf08] sm:$0xff] }
 0x1b5   :  { %2129 = vmatprep.subr.mxu1 %v873_v52  ;;  %1903 = vmatprep.mubr.f32.mxu1 %v382_v57  ;;  %v1101_v26 = vadd.f32 %v1100_v17, %v3302_v5  ;;  %v868_v52 = vld [vmem:[#allocation5 + $0xf00] sm:$0xff]  ;;  %v131_v5 = vld [vmem:[#allocation2 + $0x78] sm:$0xff]  ;;  %v130_v17 = vld [vmem:[#allocation2 + $0x70] sm:$0xff] }
 0x1b6   :  { %1971 = vmatpush2.msra.mxu0 %v806_v59  ;;  %2130 = vmatpush2.msra.mxu1 %v872_v63  ;;  %v3410_v34 = vpop.f32.mrf.mxu0  ;;  %v930_v59 = vld [vmem:[#allocation5 + $0x10f0] sm:$0xff] }
 0x1b7   :  { %1904 = vmatmul.mubr.f32.gmra.mxu1 %v381_v6  ;;  %1972 = vmatprep.subr.mxu0 %v805_v11  ;;  %v1261_v44 = vpop.f32.mrf.mxu1  ;;  %v146_v6 = vld [vmem:[#allocation2 + $0xf0] sm:$0xff] }
 0x1b8   :  { %2131 = vmatprep.subr.mxu1 %v871_v19  ;;  %1973 = vmatpush2.msra.mxu0 %v804_v22  ;;  %v3412_v57 = vadd.f32 %v1261_v44, %v1101_v26  ;;  %v929_v19 = vld [vmem:[#allocation5 + $0x10e8] sm:$0xff]  ;;  %v148_v26 = vld [vmem:[#allocation2 + $0x100] sm:$0xff]  ;;  %v163_v44 = vld [vmem:[#allocation2 + $0x178] sm:$0xff] }
 0x1b9   :  { %1974 = vmatprep.mubr.f32.mxu0 %v129_v28  ;;  %2132 = vmatpush2.msra.mxu1 %v870_v32  ;;  %v3414_v63 = vpop.f32.mrf.mxu1  ;;  %v928_v28 = vld [vmem:[#allocation5 + $0x10e0] sm:$0xff] }
 0x1ba   :  { %1975 = vmatmul.mubr.f32.vlgmr.msra.gmra.mxu0 %v128_v35  ;;  %2133 = vmatprep.subr.mxu1 %v869_v43  ;;  %v1332_v11 = vpop.f32.mrf.mxu0  ;;  %v927_v35 = vld [vmem:[#allocation5 + $0x10d8] sm:$0xff] }
 0x1bb   :  { %2232 = vmatprep.subr.mxu0 %v931_v49  ;;  %2134 = vmatpush2.msra.mxu1 %v868_v52  ;;  %v1333_v22 = vadd.f32 %v1332_v11, %v3307_v24  ;;  %v926_v49 = vld [vmem:[#allocation5 + $0x10d0] sm:$0xff]  ;;  %v180_v11 = vld [vmem:[#allocation2 + $0x200] sm:$0xff] }
 0x1bc   :  { %2135 = vmatprep.mubr.f32.mxu1 %v131_v5  ;;  %2233 = vmatpush1.msra.mxu0 %v930_v59  ;;  %v3417_v32 = vpop.f32.mrf.mxu0  ;;  %v162_v24 = vld [vmem:[#allocation2 + $0x170] sm:$0xff]  ;;  %v165_v5 = vld [vmem:[#allocation2 + $0x188] sm:$0xff] }
 0x1bd   :  { %2136 = vmatmul.mubr.f32.vlgmr.msra.gmra.mxu1 %v130_v17  ;;  %1980 = vmatprep.mubr.f32.mxu0 %v146_v6  ;;  %v1493_v43 = vpop.f32.mrf.mxu1  ;;  %v925_v17 = vld [vmem:[#allocation5 + $0x10c8] sm:$0xff] }
 0x1be   :  { %1981 = vmatmul.mubr.f32.gmra.mxu0 %v145_v54  ;;  %2234 = vmatprep.subr.mxu0 %v929_v19  ;;  %v3419_v52 = vadd.f32 %v1493_v43, %v1333_v22  ;;  %v164_v19 = vld [vmem:[#allocation2 + $0x180] sm:$0xff]  ;;  %v923_v22 = vld [vmem:[#allocation5 + $0x10b8] sm:$0xff]  ;;  %v182_v43 = vld [vmem:[#allocation2 + $0x210] sm:$0xff] }
 0x1bf   :  { %2141 = vmatprep.mubr.f32.mxu1 %v148_v26  ;;  %2235 = vmatpush1.msra.mxu0 %v928_v28  ;;  %v3421_v59 = vpop.f32.mrf.mxu1  ;;  %v179_v28 = vld [vmem:[#allocation2 + $0x1f8] sm:$0xff] }
 0x1c0   :  { %1986 = vmatprep.mubr.f32.mxu0 %v163_v44  ;;  %2236 = vmatprep.subr.mxu0 %v927_v35  ;;  %v1338_v6 = vpop.f32.mrf.mxu0  ;;  %v197_v35 = vld [vmem:[#allocation2 + $0x288] sm:$0xff] }
 0x1c1   :  { %2142 = vmatmul.mubr.f32.gmra.mxu1 %v147_v33  ;;  %2237 = vmatpush1.msra.mxu0 %v926_v49  ;;  %v1339_v54 = vadd.f32 %v1338_v6, %v3314_v42  ;;  %v921_v33 = vld [vmem:[#allocation5 + $0x10a8] sm:$0xff]  ;;  %v214_v6 = vld [vmem:[#allocation2 + $0x310] sm:$0xff] }
 0x1c2   :  { %1987 = vmatmul.mubr.f32.gmra.mxu0 %v162_v24  ;;  %2147 = vmatprep.mubr.f32.mxu1 %v165_v5  ;;  %v3424_v26 = vpop.f32.mrf.mxu0  ;;  %v181_v49 = vld [vmem:[#allocation2 + $0x208] sm:$0xff]  ;;  %v920_v24 = vld [vmem:[#allocation5 + $0x10a0] sm:$0xff] }
 0x1c3   :  { %1992 = vmatprep.mubr.f32.mxu0 %v180_v11  ;;  %2238 = vmatprep.subr.mxu0 %v925_v17  ;;  %v1499_v44 = vpop.f32.mrf.mxu1  ;;  %v196_v11 = vld [vmem:[#allocation2 + $0x280] sm:$0xff]  ;;  %v199_v17 = vld [vmem:[#allocation2 + $0x298] sm:$0xff] }
 0x1c4   :  { %2239 = vmatpush1.msra.mxu0 %v924_v15  ;;  %v3426_v46 = vadd.f32 %v1499_v44, %v1339_v54  ;;  %v919_v54 = vld [vmem:[#allocation5 + $0x1098] sm:$0xff] }
 0x1c5   :  { %2148 = vmatmul.mubr.f32.gmra.mxu1 %v164_v19  ;;  %2240 = vmatprep.subr.mxu0 %v923_v22  ;;  %v3428_v42 = vpop.f32.mrf.mxu1  ;;  %v918_v19 = vld [vmem:[#allocation5 + $0x1090] sm:$0xff] }
 0x1c6   :  { %1993 = vmatmul.mubr.f32.gmra.mxu0 %v179_v28  ;;  %2153 = vmatprep.mubr.f32.mxu1 %v182_v43  ;;  %v1344_v5 = vpop.f32.mrf.mxu0  ;;  %v198_v28 = vld [vmem:[#allocation2 + $0x290] sm:$0xff]  ;;  %v917_v43 = vld [vmem:[#allocation5 + $0x1088] sm:$0xff] }
 0x1c7   :  { %1998 = vmatprep.mubr.f32.mxu0 %v197_v35  ;;  %2241 = vmatpush1.msra.mxu0 %v922_v62  ;;  %v1345_v15 = vadd.f32 %v1344_v5, %v3321_v61  ;;  %v213_v35 = vld [vmem:[#allocation2 + $0x308] sm:$0xff]  ;;  %v216_v62 = vld [vmem:[#allocation2 + $0x320] sm:$0xff] }
 0x1c8   :  { %2242 = vmatprep.subr.mxu0 %v921_v33  ;;  %v3431_v44 = vpop.f32.mrf.mxu0  ;;  %v231_v33 = vld [vmem:[#allocation2 + $0x398] sm:$0xff]  ;;  %v916_v5 = vld [vmem:[#allocation5 + $0x1080] sm:$0xff] }
 0x1c9   :  { %2154 = vmatmul.mubr.f32.gmra.mxu1 %v181_v49  ;;  %2243 = vmatpush1.msra.mxu0 %v920_v24  ;;  %v1505_v22 = vpop.f32.mrf.mxu1  ;;  %v915_v49 = vld [vmem:[#allocation5 + $0x1078] sm:$0xff] }
 0x1ca   :  { %1999 = vmatmul.mubr.f32.gmra.mxu0 %v196_v11  ;;  %2159 = vmatprep.mubr.f32.mxu1 %v199_v17  ;;  %v3433_v14 = vadd.f32 %v1505_v22, %v1345_v15  ;;  %v215_v11 = vld [vmem:[#allocation2 + $0x318] sm:$0xff]  ;;  %v914_v17 = vld [vmem:[#allocation5 + $0x1070] sm:$0xff] }
 0x1cb   :  { %2004 = vmatprep.mubr.f32.mxu0 %v214_v6  ;;  %2244 = vmatprep.subr.mxu0 %v919_v54  ;;  %v3435_v61 = vpop.f32.mrf.mxu1  ;;  %v230_v6 = vld [vmem:[#allocation2 + $0x390] sm:$0xff]  ;;  %v233_v54 = vld [vmem:[#allocation2 + $0x3a8] sm:$0xff] }
 0x1cc   :  { %2245 = vmatpush1.msra.mxu0 %v918_v19  ;;  %v1350_v51 = vpop.f32.mrf.mxu0  ;;  %v913_v19 = vld [vmem:[#allocation5 + $0x1068] sm:$0xff] }
 0x1cd   :  { %2160 = vmatmul.mubr.f32.gmra.mxu1 %v198_v28  ;;  %2246 = vmatprep.subr.mxu0 %v917_v43  ;;  %v1351_v24 = vadd.f32 %v1350_v51, %v3328_v16  ;;  %v912_v28 = vld [vmem:[#allocation5 + $0x1060] sm:$0xff]  ;;  %v911_v43 = vld [vmem:[#allocation5 + $0x1058] sm:$0xff] }
 0x1ce   :  { %2005 = vmatmul.mubr.f32.gmra.mxu0 %v213_v35  ;;  %2165 = vmatprep.mubr.f32.mxu1 %v216_v62  ;;  %v3438_v15 = vpop.f32.mrf.mxu0  ;;  %v232_v51 = vld [vmem:[#allocation2 + $0x3a0] sm:$0xff]  ;;  %v247_v62 = vld [vmem:[#allocation2 + $0x418] sm:$0xff] }
 0x1cf   :  { %2010 = vmatprep.mubr.f32.mxu0 %v231_v33  ;;  %2247 = vmatpush1.msra.mxu0 %v916_v5  ;;  %v1511_v22 = vpop.f32.mrf.mxu1  ;;  %v250_v33 = vld [vmem:[#allocation2 + $0x430] sm:$0xff] }
 0x1d0   :  { %2248 = vmatprep.subr.mxu0 %v915_v49  ;;  %v3440_v2 = vadd.f32 %v1511_v22, %v1351_v24  ;;  %v265_v49 = vld [vmem:[#allocation2 + $0x4a8] sm:$0xff]  ;;  %v910_v24 = vld [vmem:[#allocation5 + $0x1050] sm:$0xff] }
 0x1d1   :  { %2166 = vmatmul.mubr.f32.gmra.mxu1 %v215_v11  ;;  %2249 = vmatpush1.msra.mxu0 %v914_v17  ;;  %v3442_v16 = vpop.f32.mrf.mxu1  ;;  %v909_v11 = vld [vmem:[#allocation5 + $0x1048] sm:$0xff] }
 0x1d2   :  { %2011 = vmatmul.mubr.f32.gmra.mxu0 %v230_v6  ;;  %2171 = vmatprep.mubr.f32.mxu1 %v233_v54  ;;  %v1356_v35 = vpop.f32.mrf.mxu0  ;;  %v249_v6 = vld [vmem:[#allocation2 + $0x428] sm:$0xff]  ;;  %v908_v54 = vld [vmem:[#allocation5 + $0x1040] sm:$0xff] }
 0x1d3   :  { %2016 = vmatprep.mubr.f32.mxu0 %v248_v30  ;;  %2250 = vmatprep.subr.mxu0 %v913_v19  ;;  %v1357_v5 = vadd.f32 %v1356_v35, %v3335_v38  ;;  %v264_v30 = vld [vmem:[#allocation2 + $0x4a0] sm:$0xff]  ;;  %v267_v19 = vld [vmem:[#allocation2 + $0x4b8] sm:$0xff] }
 0x1d4   :  { %2251 = vmatpush1.msra.mxu0 %v912_v28  ;;  %v3445_v22 = vpop.f32.mrf.mxu0  ;;  %v282_v28 = vld [vmem:[#allocation2 + $0x530] sm:$0xff]  ;;  %v907_v35 = vld [vmem:[#allocation5 + $0x1038] sm:$0xff] }
 0x1d5   :  { %2172 = vmatmul.mubr.f32.gmra.mxu1 %v232_v51  ;;  %2252 = vmatprep.subr.mxu0 %v911_v43  ;;  %v1517_v17 = vpop.f32.mrf.mxu1  ;;  %v906_v51 = vld [vmem:[#allocation5 + $0x1030] sm:$0xff] }
 0x1d6   :  { %2017 = vmatmul.mubr.f32.gmra.mxu0 %v247_v62  ;;  %2177 = vmatprep.mubr.f32.mxu1 %v250_v33  ;;  %v3447_v37 = vadd.f32 %v1517_v17, %v1357_v5  ;;  %v266_v62 = vld [vmem:[#allocation2 + $0x4b0] sm:$0xff]  ;;  %v905_v33 = vld [vmem:[#allocation5 + $0x1028] sm:$0xff] }
 0x1d7   :  { %2022 = vmatprep.mubr.f32.mxu0 %v265_v49  ;;  %2253 = vmatpush1.msra.mxu0 %v910_v24  ;;  %v3449_v38 = vpop.f32.mrf.mxu1  ;;  %v281_v49 = vld [vmem:[#allocation2 + $0x528] sm:$0xff]  ;;  %v284_v24 = vld [vmem:[#allocation2 + $0x540] sm:$0xff] }
 0x1d8   :  { %4117 = vst [vmem:[#allocation32_spill] sm:$0xff] %v3449_v38  ;;  %2254 = vmatprep.subr.mxu0 %v909_v11  ;;  %v1362_v25 = vpop.f32.mrf.mxu0  ;;  %v299_v38 = vld [vmem:[#allocation2 + $0x5b8] sm:$0xff]  ;;  %v904_v11 = vld [vmem:[#allocation5 + $0x1020] sm:$0xff] }
 0x1d9   :  { %2178 = vmatmul.mubr.f32.gmra.mxu1 %v249_v6  ;;  %2255 = vmatpush1.msra.mxu0 %v908_v54  ;;  %v1363_v43 = vadd.f32 %v1362_v25, %v3342_v60  ;;  %v903_v6 = vld [vmem:[#allocation5 + $0x1018] sm:$0xff]  ;;  %v902_v54 = vld [vmem:[#allocation5 + $0x1010] sm:$0xff] }
 0x1da   :  { %2023 = vmatmul.mubr.f32.gmra.mxu0 %v264_v30  ;;  %2183 = vmatprep.mubr.f32.mxu1 %v267_v19  ;;  %v3452_v5 = vpop.f32.mrf.mxu0  ;;  %v283_v25 = vld [vmem:[#allocation2 + $0x538] sm:$0xff]  ;;  %v298_v19 = vld [vmem:[#allocation2 + $0x5b0] sm:$0xff] }
 0x1db   :  { %4118 = vst [vmem:[#allocation33_spill] sm:$0xff] %v3452_v5  ;;  %2028 = vmatprep.mubr.f32.mxu0 %v282_v28  ;;  %2256 = vmatprep.subr.mxu0 %v907_v35  ;;  %v1523_v17 = vpop.f32.mrf.mxu1  ;;  %v301_v28 = vld [vmem:[#allocation2 + $0x5c8] sm:$0xff] }
 0x1dc   :  { %2257 = vmatpush1.msra.mxu0 %v906_v51  ;;  %v3454_v1 = vadd.f32 %v1523_v17, %v1363_v43  ;;  %v316_v51 = vld [vmem:[#allocation2 + $0x640] sm:$0xff]  ;;  %v901_v43 = vld [vmem:[#allocation5 + $0x1008] sm:$0xff] }
 0x1dd   :  { %2184 = vmatmul.mubr.f32.gmra.mxu1 %v266_v62  ;;  %2258 = vmatprep.subr.mxu0 %v905_v33  ;;  %v3456_v60 = vpop.f32.mrf.mxu1  ;;  %v900_v62 = vld [vmem:[#allocation5 + $0x1000] sm:$0xff] }
 0x1de   :  { %4119 = vst [vmem:[#allocation34_spill] sm:$0xff] %v3456_v60  ;;  %2029 = vmatmul.mubr.f32.gmra.mxu0 %v281_v49  ;;  %2189 = vmatprep.mubr.f32.mxu1 %v284_v24  ;;  %v1368_v30 = vpop.f32.mrf.mxu0  ;;  %v300_v49 = vld [vmem:[#allocation2 + $0x5c0] sm:$0xff]  ;;  %v318_v60 = vld [vmem:[#allocation2 + $0x650] sm:$0xff] }
 0x1df   :  { %2034 = vmatprep.mubr.f32.mxu0 %v299_v38  ;;  %2259 = vmatpush1.msra.mxu0 %v904_v11  ;;  %v1369_v35 = vadd.f32 %v1368_v30, %v3349_v21  ;;  %v315_v38 = vld [vmem:[#allocation2 + $0x638] sm:$0xff]  ;;  %v333_v21 = vld [vmem:[#allocation2 + $0x6c8] sm:$0xff] }
 0x1e0   :  { %2260 = vmatprep.subr.mxu0 %v903_v6  ;;  %v3459_v17 = vpop.f32.mrf.mxu0 }
 0x1e1   :  { %4120 = vst [vmem:[#allocation35_spill] sm:$0xff] %v3459_v17  ;;  %2190 = vmatmul.mubr.f32.gmra.mxu1 %v283_v25  ;;  %2261 = vmatpush1.msra.mxu0 %v902_v54  ;;  %v1529_v33 = vpop.f32.mrf.mxu1  ;;  %v317_v54 = vld [vmem:[#allocation2 + $0x648] sm:$0xff] }
 0x1e2   :  { %2035 = vmatmul.mubr.f32.gmra.mxu0 %v298_v19  ;;  %2195 = vmatprep.mubr.f32.mxu1 %v301_v28  ;;  %v3461_v24 = vadd.f32 %v1529_v33, %v1369_v35  ;;  %v332_v19 = vld [vmem:[#allocation2 + $0x6c0] sm:$0xff]  ;;  %v335_v28 = vld [vmem:[#allocation2 + $0x6d8] sm:$0xff] }
 0x1e3   :  { %2040 = vmatprep.mubr.f32.mxu0 %v316_v51  ;;  %2262 = vmatprep.subr.mxu0 %v901_v43  ;;  %v3463_v11 = vpop.f32.mrf.mxu1  ;;  %v350_v51 = vld [vmem:[#allocation2 + $0x750] sm:$0xff] }
 0x1e4   :  { %4121 = vst [vmem:[#allocation36_spill] sm:$0xff] %v3463_v11  ;;  %2263 = vmatpush1.msra.mxu0 %v900_v62  ;;  %v1374_v6 = vpop.f32.mrf.mxu0  ;;  %v334_v62 = vld [vmem:[#allocation2 + $0x6d0] sm:$0xff]  ;;  %v2429_v11 = vld [vmem:[#allocation8 + $0x20] sm:$0xff] }
 0x1e5   :  { %2196 = vmatmul.mubr.f32.gmra.mxu1 %v300_v49  ;;  %v1375_v25 = vadd.f32 %v1374_v6, %v3356_v47  ;;  %v349_v47 = vld [vmem:[#allocation2 + $0x748] sm:$0xff]  ;;  %v367_v6 = vld [vmem:[#allocation2 + $0x7d8] sm:$0xff] }
 0x1e6   :  { %2041 = vmatmul.mubr.f32.gmra.mxu0 %v315_v38  ;;  %2201 = vmatprep.mubr.f32.mxu1 %v318_v60  ;;  %v3466_v30 = vpop.f32.mrf.mxu0  ;;  %v352_v60 = vld [vmem:[#allocation2 + $0x760] sm:$0xff] }
 0x1e7   :  { %4122 = vst [vmem:[#allocation37_spill] sm:$0xff] %v3466_v30  ;;  %2046 = vmatprep.mubr.f32.mxu0 %v333_v21  ;;  %v1535_v35 = vpop.f32.mrf.mxu1 }
 0x1e8   :  { %v3468_v33 = vadd.f32 %v1535_v35, %v1375_v25  ;;  %v351_v25 = vld [vmem:[#allocation2 + $0x758] sm:$0xff] }
 0x1e9   :  { %2202 = vmatmul.mubr.f32.gmra.mxu1 %v317_v54  ;;  %v3470_v43 = vpop.f32.mrf.mxu1 }
 0x1ea   :  { %4123 = vst [vmem:[#allocation38_spill] sm:$0xff] %v3470_v43  ;;  %2047 = vmatmul.mubr.f32.gmra.mxu0 %v332_v19  ;;  %2207 = vmatprep.mubr.f32.mxu1 %v335_v28  ;;  %v1380_v49 = vpop.f32.mrf.mxu0  ;;  %v366_v19 = vld [vmem:[#allocation2 + $0x7d0] sm:$0xff]  ;;  %v369_v28 = vld [vmem:[#allocation2 + $0x7e8] sm:$0xff] }
 0x1eb   :  { %2052 = vmatprep.mubr.f32.mxu0 %v350_v51  ;;  %v1381_v38 = vadd.f32 %v1380_v49, %v3363_v9  ;;  %v384_v51 = vld [vmem:[#allocation2 + $0x860] sm:$0xff] }
 0x1ec   :  { %v3473_v21 = vpop.f32.mrf.mxu0  ;;  %v368_v49 = vld [vmem:[#allocation2 + $0x7e0] sm:$0xff] }
 0x1ed   :  { %4124 = vst [vmem:[#allocation39_spill] sm:$0xff] %v3473_v21  ;;  %2208 = vmatmul.mubr.f32.gmra.mxu1 %v334_v62  ;;  %v1541_v30 = vpop.f32.mrf.mxu1  ;;  %v3230_v21 = vmov 0.0  }
 0x1ee   :  { %2053 = vmatmul.mubr.f32.gmra.mxu0 %v349_v47  ;;  %2213 = vmatprep.mubr.f32.mxu1 %v352_v60  ;;  %v3475_v54 = vadd.f32 %v1541_v30, %v1381_v38  ;;  %v383_v47 = vld [vmem:[#allocation2 + $0x858] sm:$0xff]  ;;  %v386_v60 = vld [vmem:[#allocation2 + $0x870] sm:$0xff] }
 0x1ef   :  { %2058 = vmatprep.mubr.f32.mxu0 %v367_v6  ;;  %v3477_v35 = vpop.f32.mrf.mxu1 }
 0x1f0   :  { %4125 = vst [vmem:[#allocation40_spill] sm:$0xff] %v3477_v35  ;;  %v1386_v43 = vpop.f32.mrf.mxu0  ;;  %v385_v35 = vld [vmem:[#allocation2 + $0x868] sm:$0xff] }
 0x1f1   :  { %2214 = vmatmul.mubr.f32.gmra.mxu1 %v351_v25  ;;  %v1387_v9 = vadd.f32 %v1386_v43, %v3370_v40  ;;  %v132_v40 = vld [vmem:[#allocation2 + $0x80] sm:$0xff] }
 0x1f2   :  { %2059 = vmatmul.mubr.f32.gmra.mxu0 %v366_v19  ;;  %2219 = vmatprep.mubr.f32.mxu1 %v369_v28  ;;  %v3480_v62 = vpop.f32.mrf.mxu0  ;;  %v940_v28 = vsub.s32 1, %v3299_v50 }
 0x1f3   :  { %4126 = vst [vmem:[#allocation41_spill] sm:$0xff] %v3480_v62  ;;  %2064 = vmatprep.mubr.f32.mxu0 %v384_v51  ;;  %v1547_v30 = vpop.f32.mrf.mxu1 }
 0x1f4   :  { %v3482_v38 = vadd.f32 %v1547_v30, %v1387_v9  ;;  %v3046_v30 = vld [vmem:[#allocation7] sm:$0x3] }
 0x1f5   :  { %2220 = vmatmul.mubr.f32.gmra.mxu1 %v368_v49  ;;  %v3484_v6 = vpop.f32.mrf.mxu1  ;;  %v149_v49 = vld [vmem:[#allocation2 + $0x108] sm:$0xff] }
 0x1f6   :  { %4127 = vst [vmem:[#allocation42_spill] sm:$0xff] %v3484_v6  ;;  %2065 = vmatmul.mubr.f32.gmra.mxu0 %v383_v47  ;;  %2225 = vmatprep.mubr.f32.mxu1 %v386_v60  ;;  %v1392_v25 = vpop.f32.mrf.mxu0  ;;  %v3496_v6 = vrot.slane %v3046_v30, %v940_v28  ;;  %v2456_v30 = vld [vmem:[#allocation8 + $0xf8] sm:$0xff] }
 0x1f7   :  { %2296 = vmatprep.mubr.f32.mxu0 %v3230_v21  ;;  %v1393_v43 = vadd.f32 %v1392_v25, %v3377_v8  ;;  %2831 = vmatprep.subr.mxu1 %v2456_v30 }
 0x1f8   :  { %v3488_v19 = vpop.f32.mrf.mxu0  ;;  %v1085_v50 = vadd.f32 %v3389_v7, %v3496_v6  ;;  %v2440_v7 = vld [vmem:[#allocation8 + $0x78] sm:$0xff] }
 0x1f9   :  { %4128 = vst [vmem:[#allocation43_spill] sm:$0xff] %v3488_v19  ;;  %2226 = vmatmul.mubr.f32.gmra.mxu1 %v385_v35  ;;  %v1553_v51 = vpop.f32.mrf.mxu1  ;;  %v166_v35 = vld [vmem:[#allocation2 + $0x190] sm:$0xff] }
 0x1fa   :  { %2297 = vmatmul.mubr.f32.vlgmr.msra.gmra.mxu0 %v132_v40  ;;  %v3491_v9 = vadd.f32 %v1553_v51, %v1393_v43  ;;  %v1246_v28 = vadd.f32 %v3393_v29, %v1085_v50  ;;  %2832 = vmatpush3.msra.mxu1 %v2440_v7  ;;  %v200_v29 = vld [vmem:[#allocation2 + $0x2a0] sm:$0xff]  ;;  %v2454_v7 = vld [vmem:[#allocation8 + $0xe8] sm:$0xff] }
 0x1fb   :  { %2302 = vmatprep.mubr.f32.mxu0 %v3230_v21  ;;  %v3494_v47 = vpop.f32.mrf.mxu1 }
 0x1fc   :  { %4129 = vst [vmem:[#allocation44_spill] sm:$0xff] %v3494_v47  ;;  %v1398_v60 = vpop.f32.mrf.mxu0 }
 0x1fd   :  { %v1399_v8 = vadd.f32 %v1398_v60, %v3384_v48  ;;  %v183_v48 = vld [vmem:[#allocation2 + $0x218] sm:$0xff] }
 0x1fe   :  { %2303 = vmatmul.mubr.f32.gmra.mxu0 %v149_v49  ;;  %v3499_v25 = vpop.f32.mrf.mxu0 }
 0x1ff   :  { %4130 = vst [vmem:[#allocation45_spill] sm:$0xff] %v3499_v25  ;;  %2308 = vmatprep.mubr.f32.mxu0 %v3230_v21  ;;  %v1559_v40 = vpop.f32.mrf.mxu1  ;;  %v1091_v25 = vadd.f32 %v3396_v56, %v3496_v6 }
 0x200   :  { %v3504_v43 = vadd.f32 %v1559_v40, %v1399_v8 }
 0x201   :  { %v3506_v51 = vpop.f32.mrf.mxu1  ;;  %v1252_v62 = vadd.f32 %v3400_v13, %v1091_v25 }
 0x202   :  { %4131 = vst [vmem:[#allocation46_spill] sm:$0xff] %v3506_v51  ;;  %2309 = vmatmul.mubr.f32.gmra.mxu0 %v166_v35  ;;  %v1404_v47 = vpop.f32.mrf.mxu0 }
 0x203   :  { %2314 = vmatprep.mubr.f32.mxu0 %v3230_v21  ;;  %v1405_v49 = vadd.f32 %v1404_v47, %v3391_v23  ;;  %v2455_v23 = vld [vmem:[#allocation8 + $0xf0] sm:$0xff] }
 0x204   :  { %v1406_v60 = vpop.f32.mrf.mxu0  ;;  %v2439_v47 = vld [vmem:[#allocation8 + $0x70] sm:$0xff]  ;;  %2833 = vmatprep.subr.mxu1 %v2455_v23  ;;  %v2437_v23 = vld [vmem:[#allocation8 + $0x60] sm:$0xff] }
 0x205   :  { %v1407_v19 = vadd.f32 %v1406_v60, %v1246_v28  ;;  %v1565_v8 = vpop.f32.mrf.mxu1  ;;  %2834 = vmatpush3.msra.mxu1 %v2439_v47  ;;  %v1103_v47 = vadd.f32 %v3410_v34, %v3496_v6 }
 0x206   :  { %2315 = vmatmul.mubr.f32.gmra.mxu0 %v183_v48  ;;  %v3513_v40 = vadd.f32 %v1565_v8, %v1405_v49  ;;  %v1097_v48 = vadd.f32 %v3403_v39, %v3496_v6  ;;  %v217_v49 = vld [vmem:[#allocation2 + $0x328] sm:$0xff]  ;;  %2835 = vmatprep.subr.mxu1 %v2454_v7  ;;  %v234_v39 = vld [vmem:[#allocation2 + $0x3b0] sm:$0xff]  ;;  %v2436_v7 = vld [vmem:[#allocation8 + $0x58] sm:$0xff] }
 0x207   :  { %2320 = vmatprep.mubr.f32.mxu0 %v3230_v21  ;;  %v1567_v50 = vpop.f32.mrf.mxu1  ;;  %v2438_v8 = vld [vmem:[#allocation8 + $0x68] sm:$0xff] }
 0x208   :  { %v1410_v35 = vpop.f32.mrf.mxu0  ;;  %v3516_v51 = vadd.f32 %v1567_v50, %v1407_v19  ;;  %2836 = vmatpush3.msra.mxu1 %v2438_v8  ;;  %v1258_v25 = vadd.f32 %v3407_v3, %v1097_v48  ;;  %v251_v3 = vld [vmem:[#allocation2 + $0x438] sm:$0xff]  ;;  %v1264_v8 = vadd.f32 %v3414_v63, %v1103_v47 }
 0x209   :  { %v1411_v56 = vadd.f32 %v1410_v35, %v3398_v4  ;;  %v2453_v35 = vld [vmem:[#allocation8 + $0xe0] sm:$0xff] }
 0x20a   :  { %2321 = vmatmul.mubr.f32.gmra.mxu0 %v200_v29  ;;  %v1412_v28 = vpop.f32.mrf.mxu0  ;;  %2837 = vmatprep.subr.mxu1 %v2453_v35  ;;  %v2435_v35 = vld [vmem:[#allocation8 + $0x50] sm:$0xff] }
 0x20b   :  { %2326 = vmatprep.mubr.f32.mxu0 %v3230_v21  ;;  %v1413_v60 = vadd.f32 %v1412_v28, %v1252_v62  ;;  %v1571_v30 = vpop.f32.mrf.mxu1  ;;  %2838 = vmatpush3.msra.mxu1 %v2437_v23 }
 0x20c   :  { %v3523_v19 = vadd.f32 %v1571_v30, %v1411_v56 }
 0x20d   :  { %v1573_v50 = vpop.f32.mrf.mxu1 }
 0x20e   :  { %2327 = vmatmul.mubr.f32.gmra.mxu0 %v217_v49  ;;  %v1416_v4 = vpop.f32.mrf.mxu0  ;;  %v3525_v13 = vadd.f32 %v1573_v50, %v1413_v60 }
 0x20f   :  { %2332 = vmatprep.mubr.f32.mxu0 %v3230_v21  ;;  %v1417_v29 = vadd.f32 %v1416_v4, %v3405_v58  ;;  %v2452_v58 = vld [vmem:[#allocation8 + $0xd8] sm:$0xff] }
 0x210   :  { %v1418_v62 = vpop.f32.mrf.mxu0  ;;  %2839 = vmatprep.subr.mxu1 %v2452_v58  ;;  %v268_v4 = vld [vmem:[#allocation2 + $0x4c0] sm:$0xff]  ;;  %v302_v58 = vld [vmem:[#allocation2 + $0x5d0] sm:$0xff] }
 0x211   :  { %v1419_v56 = vadd.f32 %v1418_v62, %v1258_v25  ;;  %v1577_v28 = vpop.f32.mrf.mxu1  ;;  %2840 = vmatpush3.msra.mxu1 %v2436_v7  ;;  %v2451_v62 = vld [vmem:[#allocation8 + $0xd0] sm:$0xff] }
 0x212   :  { %2333 = vmatmul.mubr.f32.gmra.mxu0 %v234_v39  ;;  %v3532_v49 = vadd.f32 %v1577_v28, %v1417_v29  ;;  %2841 = vmatprep.subr.mxu1 %v2451_v62  ;;  %v2448_v62 = vld [vmem:[#allocation8 + $0xb8] sm:$0xff] }
 0x213   :  { %2338 = vmatprep.mubr.f32.mxu0 %v3230_v21  ;;  %v1579_v48 = vpop.f32.mrf.mxu1  ;;  %2842 = vmatpush3.msra.mxu1 %v2435_v35  ;;  %v2432_v35 = vld [vmem:[#allocation8 + $0x38] sm:$0xff] }
 0x214   :  { %v1422_v60 = vpop.f32.mrf.mxu0  ;;  %v3535_v30 = vadd.f32 %v1579_v48, %v1419_v56  ;;  %v2434_v48 = vld [vmem:[#allocation8 + $0x48] sm:$0xff] }
 0x215   :  { %v1423_v34 = vadd.f32 %v1422_v60, %v3412_v57  ;;  %v285_v57 = vld [vmem:[#allocation2 + $0x548] sm:$0xff] }
 0x216   :  { %2339 = vmatmul.mubr.f32.gmra.mxu0 %v251_v3  ;;  %v1424_v50 = vpop.f32.mrf.mxu0  ;;  %v2450_v3 = vld [vmem:[#allocation8 + $0xc8] sm:$0xff] }
 0x217   :  { %2344 = vmatprep.mubr.f32.mxu0 %v3230_v21  ;;  %v1425_v25 = vadd.f32 %v1424_v50, %v1264_v8  ;;  %v1583_v39 = vpop.f32.mrf.mxu1  ;;  %2843 = vmatprep.subr.mxu1 %v2450_v3  ;;  %v2433_v50 = vld [vmem:[#allocation8 + $0x40] sm:$0xff] }
 0x218   :  { %v3540_v29 = vadd.f32 %v1583_v39, %v1423_v34  ;;  %2844 = vmatpush3.msra.mxu1 %v2434_v48  ;;  %v2449_v34 = vld [vmem:[#allocation8 + $0xc0] sm:$0xff]  ;;  %v2447_v48 = vld [vmem:[#allocation8 + $0xb0] sm:$0xff] }
 0x219   :  { %v1585_v23 = vpop.f32.mrf.mxu1  ;;  %2845 = vmatprep.subr.mxu1 %v2449_v34  ;;  %v353_v34 = vld [vmem:[#allocation2 + $0x768] sm:$0xff] }
 0x21a   :  { %2345 = vmatmul.mubr.f32.gmra.mxu0 %v268_v4  ;;  %v3542_v56 = vadd.f32 %v1585_v23, %v1425_v25  ;;  %v1654_v63 = vpop.f32.mrf.mxu0  ;;  %2846 = vmatpush3.msra.mxu1 %v2433_v50  ;;  %v319_v25 = vld [vmem:[#allocation2 + $0x658] sm:$0xff] }
 0x21b   :  { %2350 = vmatprep.mubr.f32.mxu0 %v3230_v21  ;;  %v3546_v47 = vadd.f32 %v1654_v63, %v3419_v52  ;;  %2847 = vmatprep.subr.mxu1 %v2448_v62  ;;  %v2446_v62 = vld [vmem:[#allocation8 + $0xa8] sm:$0xff] }
 0x21c   :  { %v3548_v28 = vpop.f32.mrf.mxu0  ;;  %2848 = vmatpush3.msra.mxu1 %v2432_v35  ;;  %v2430_v35 = vld [vmem:[#allocation8 + $0x28] sm:$0xff] }
 0x21d   :  { %v3550_v60 = vpop.f32.mrf.mxu1  ;;  %2849 = vmatprep.subr.mxu1 %v2447_v48 }
 0x21e   :  { %2351 = vmatmul.mubr.f32.gmra.mxu0 %v285_v57 }
 0x21f   :  { %2356 = vmatprep.mubr.f32.mxu0 %v3230_v21  ;;  %v3553_v7 = vpop.f32.mrf.mxu1 }
 0x220   :  { %v1660_v8 = vpop.f32.mrf.mxu0 }
 0x221   :  { %v3556_v52 = vadd.f32 %v1660_v8, %v3426_v46  ;;  %v336_v46 = vld [vmem:[#allocation2 + $0x6e0] sm:$0xff] }
 0x222   :  { %2357 = vmatmul.mubr.f32.gmra.mxu0 %v302_v58  ;;  %v3558_v4 = vpop.f32.mrf.mxu0  ;;  %v2431_v58 = vld [vmem:[#allocation8 + $0x30] sm:$0xff] }
 0x223   :  { %2362 = vmatprep.mubr.f32.mxu0 %v3230_v21  ;;  %v3561_v39 = vpop.f32.mrf.mxu1  ;;  %2850 = vmatpush3.msra.mxu1 %v2431_v58  ;;  %v2445_v58 = vld [vmem:[#allocation8 + $0xa0] sm:$0xff] }
 0x224   :  { %2851 = vmatprep.subr.mxu1 %v2446_v62  ;;  %v2444_v62 = vld [vmem:[#allocation8 + $0x98] sm:$0xff] }
 0x225   :  { %v3563_v23 = vpop.f32.mrf.mxu1  ;;  %2852 = vmatpush3.msra.mxu1 %v2430_v35  ;;  %v2428_v35 = vld [vmem:[#allocation8 + $0x18] sm:$0xff] }
 0x226   :  { %2363 = vmatmul.mubr.f32.gmra.mxu0 %v319_v25  ;;  %v1666_v63 = vpop.f32.mrf.mxu0  ;;  %2853 = vmatprep.subr.mxu1 %v2445_v58  ;;  %v2443_v58 = vld [vmem:[#allocation8 + $0x90] sm:$0xff] }
 0x227   :  { %2368 = vmatprep.mubr.f32.mxu0 %v3230_v21  ;;  %v3567_v57 = vadd.f32 %v1666_v63, %v3433_v14  ;;  %2854 = vmatpush3.msra.mxu1 %v2429_v11  ;;  %v2427_v11 = vld [vmem:[#allocation8 + $0x10] sm:$0xff] }
 0x228   :  { %v3569_v3 = vpop.f32.mrf.mxu0  ;;  %2855 = vmatprep.subr.mxu1 %v2444_v62  ;;  %v2426_v62 = vld [vmem:[#allocation8 + $0x8] sm:$0xff] }
 0x229   :  { %v3571_v8 = vpop.f32.mrf.mxu1  ;;  %2856 = vmatpush3.msra.mxu1 %v2428_v35 }
 0x22a   :  { %2369 = vmatmul.mubr.f32.gmra.mxu0 %v336_v46  ;;  %v370_v46 = vld [vmem:[#allocation2 + $0x7f0] sm:$0xff]  ;;  %2857 = vmatprep.subr.mxu1 %v2443_v58  ;;  %v2425_v58 = vld [vmem:[#allocation8] sm:$0xff] }
 0x22b   :  { %2374 = vmatprep.mubr.f32.mxu0 %v3230_v21  ;;  %v3574_v50 = vpop.f32.mrf.mxu1  ;;  %2858 = vmatpush3.msra.mxu1 %v2427_v11 }
 0x22c   :  { %v1672_v25 = vpop.f32.mrf.mxu0 }
 0x22d   :  { %v3577_v14 = vadd.f32 %v1672_v25, %v3440_v2  ;;  %v387_v2 = vld [vmem:[#allocation2 + $0x878] sm:$0xff] }
 0x22e   :  { %2375 = vmatmul.mubr.f32.gmra.mxu0 %v353_v34  ;;  %v3579_v63 = vpop.f32.mrf.mxu0 }
 0x22f   :  { %4132 = vst [vmem:[#allocation47_spill] sm:$0xff] %v3577_v14  ;;  %2380 = vmatprep.mubr.f32.mxu0 %v3230_v21  ;;  %v3582_v48 = vpop.f32.mrf.mxu1 }
 0x231   :  { %v3584_v17 = vpop.f32.mrf.mxu1 }
 0x232   :  { %4133 = vst [vmem:[#allocation48_spill] sm:$0xff] %v3584_v17  ;;  %2381 = vmatmul.mubr.f32.gmra.mxu0 %v370_v46  ;;  %v1678_v5 = vpop.f32.mrf.mxu0 }
 0x233   :  { %2386 = vmatprep.mubr.f32.mxu0 %v3230_v21  ;;  %v3588_v34 = vadd.f32 %v1678_v5, %v3447_v37 }
 0x234   :  { %v3590_v25 = vpop.f32.mrf.mxu0 }
 0x235   :  { %4134 = vst [vmem:[#allocation49_spill] sm:$0xff] %v3588_v34  ;;  %v3592_v14 = vpop.f32.mrf.mxu1 }
 0x236   :  { %4135 = vst [vmem:[#allocation50_spill] sm:$0xff] %v3592_v14  ;;  %2387 = vmatmul.mubr.f32.gmra.mxu0 %v387_v2  ;;  %v2442_v14 = vld [vmem:[#allocation8 + $0x88] sm:$0xff] }
 0x237   :  { %v3594_v17 = vpop.f32.mrf.mxu1  ;;  %2859 = vmatprep.subr.mxu1 %v2442_v14 }
 0x238   :  { %4136 = vst [vmem:[#allocation51_spill] sm:$0xff] %v3594_v17  ;;  %v1684_v46 = vpop.f32.mrf.mxu0  ;;  %2860 = vmatpush3.msra.mxu1 %v2426_v62 }
 0x239   :  { %v3597_v21 = vadd.f32 %v1684_v46, %v3454_v1  ;;  %v2441_v1 = vld [vmem:[#allocation8 + $0x80] sm:$0xff] }
 0x23a   :  { %v3599_v37 = vpop.f32.mrf.mxu0  ;;  %2861 = vmatprep.subr.mxu1 %v2441_v1 }
 0x23b   :  { %4137 = vst [vmem:[#allocation52_spill] sm:$0xff] %v3597_v21  ;;  %4138 = vst [vmem:[#allocation53_spill] sm:$0xff] %v3599_v37  ;;  %v3601_v5 = vpop.f32.mrf.mxu1  ;;  %2862 = vmatpush3.msra.mxu1 %v2425_v58 }
 0x23c   :  { %4139 = vst [vmem:[#allocation54_spill] sm:$0xff] %v3601_v5 }
 0x23d   :  { %v3603_v34 = vpop.f32.mrf.mxu1 }
 0x23e   :  { %4140 = vst [vmem:[#allocation55_spill] sm:$0xff] %v3603_v34  ;;  %v1690_v2 = vpop.f32.mrf.mxu0 }
 0x23f   :  { %v3606_v35 = vadd.f32 %v1690_v2, %v3461_v24 }
 0x240   :  { %v3608_v17 = vpop.f32.mrf.mxu0 }
 0x241   :  { %4141 = vst [vmem:[#allocation56_spill] sm:$0xff] %v3606_v35  ;;  %4142 = vst [vmem:[#allocation57_spill] sm:$0xff] %v3608_v17  ;;  %v3610_v46 = vpop.f32.mrf.mxu1  ;;  %v3762_v35 = vld [vmem:[#allocation11 + $0x38] sm:$0xff]  ;;  %v3768_v17 = vld [vmem:[#allocation11 + $0x30] sm:$0xff] }
 0x242   :  { %4143 = vst [vmem:[#allocation58_spill] sm:$0xff] %v3610_v46  ;;  %4189 = vst [vmem:[#allocation104_spill] sm:$0xff] %v3762_v35 }
 0x243   :  { %v3612_v11 = vpop.f32.mrf.mxu1  ;;  %4191 = vst [vmem:[#allocation106_spill] sm:$0xff] %v3768_v17 }
 0x244   :  { %4144 = vst [vmem:[#allocation59_spill] sm:$0xff] %v3612_v11  ;;  %v1696_v5 = vpop.f32.mrf.mxu0 }
 0x245   :  { %v3615_v34 = vadd.f32 %v1696_v5, %v3468_v33 }
 0x246   :  { %v3617_v21 = vpop.f32.mrf.mxu0 }
 0x247   :  { %4145 = vst [vmem:[#allocation60_spill] sm:$0xff] %v3615_v34  ;;  %4146 = vst [vmem:[#allocation61_spill] sm:$0xff] %v3617_v21  ;;  %v3619_v14 = vpop.f32.mrf.mxu1 }
 0x248   :  { %4147 = vst [vmem:[#allocation62_spill] sm:$0xff] %v3619_v14 }
 0x249   :  { %v3621_v24 = vpop.f32.mrf.mxu1 }
 0x24a   :  { %4148 = vst [vmem:[#allocation63_spill] sm:$0xff] %v3621_v24  ;;  %v1702_v62 = vpop.f32.mrf.mxu0 }
 0x24b   :  { %v3624_v2 = vadd.f32 %v1702_v62, %v3475_v54 }
 0x24c   :  { %v3626_v46 = vpop.f32.mrf.mxu0 }
 0x24d   :  { %4149 = vst [vmem:[#allocation64_spill] sm:$0xff] %v3624_v2  ;;  %4150 = vst [vmem:[#allocation65_spill] sm:$0xff] %v3626_v46  ;;  %v3628_v1 = vpop.f32.mrf.mxu1 }
 0x24e   :  { %4151 = vst [vmem:[#allocation66_spill] sm:$0xff] %v3628_v1 }
 0x24f   :  { %v3630_v58 = vpop.f32.mrf.mxu1 }
 0x250   :  { %4152 = vst [vmem:[#allocation67_spill] sm:$0xff] %v3630_v58  ;;  %v1708_v11 = vpop.f32.mrf.mxu0 }
 0x251   :  { %v3633_v33 = vadd.f32 %v1708_v11, %v3482_v38 }
 0x252   :  { %v3635_v5 = vpop.f32.mrf.mxu0 }
 0x253   :  { %4153 = vst [vmem:[#allocation68_spill] sm:$0xff] %v3633_v33  ;;  %4154 = vst [vmem:[#allocation69_spill] sm:$0xff] %v3635_v5  ;;  %v3637_v34 = vpop.f32.mrf.mxu1  ;;  %v3754_v5 = vld [vmem:[#allocation11 + $0x40] sm:$0xff] }
 0x254   :  { %4155 = vst [vmem:[#allocation70_spill] sm:$0xff] %v3637_v34  ;;  %4187 = vst [vmem:[#allocation102_spill] sm:$0xff] %v3754_v5 }
 0x255   :  { %v3639_v14 = vpop.f32.mrf.mxu1 }
 0x256   :  { %4156 = vst [vmem:[#allocation71_spill] sm:$0xff] %v3639_v14  ;;  %v1714_v24 = vpop.f32.mrf.mxu0 }
 0x257   :  { %v3642_v54 = vadd.f32 %v1714_v24, %v3491_v9 }
 0x258   :  { %v3644_v62 = vpop.f32.mrf.mxu0 }
 0x259   :  { %4157 = vst [vmem:[#allocation72_spill] sm:$0xff] %v3642_v54  ;;  %4158 = vst [vmem:[#allocation73_spill] sm:$0xff] %v3644_v62  ;;  %v3646_v2 = vpop.f32.mrf.mxu1 }
 0x25a   :  { %4159 = vst [vmem:[#allocation74_spill] sm:$0xff] %v3646_v2 }
 0x25b   :  { %v3648_v1 = vpop.f32.mrf.mxu1 }
 0x25c   :  { %4160 = vst [vmem:[#allocation75_spill] sm:$0xff] %v3648_v1  ;;  %v1720_v58 = vpop.f32.mrf.mxu0 }
 0x25d   :  { %v3651_v38 = vadd.f32 %v1720_v58, %v3504_v43 }
 0x25e   :  { %v3653_v11 = vpop.f32.mrf.mxu0 }
 0x25f   :  { %4161 = vst [vmem:[#allocation76_spill] sm:$0xff] %v3651_v38  ;;  %4162 = vst [vmem:[#allocation77_spill] sm:$0xff] %v3653_v11  ;;  %v3655_v33 = vpop.f32.mrf.mxu1  ;;  %v3748_v11 = vld [vmem:[#allocation11 + $0x48] sm:$0xff] }
 0x260   :  { %4163 = vst [vmem:[#allocation78_spill] sm:$0xff] %v3655_v33  ;;  %4185 = vst [vmem:[#allocation100_spill] sm:$0xff] %v3748_v11 }
 0x261   :  { %v3657_v34 = vpop.f32.mrf.mxu1 }
 0x262   :  { %4164 = vst [vmem:[#allocation79_spill] sm:$0xff] %v3657_v34  ;;  %v1726_v14 = vpop.f32.mrf.mxu0 }
 0x263   :  { %v3660_v9 = vadd.f32 %v1726_v14, %v3513_v40 }
 0x264   :  { %v1728_v24 = vpop.f32.mrf.mxu0 }
 0x265   :  { %4165 = vst [vmem:[#allocation80_spill] sm:$0xff] %v3660_v9  ;;  %v3663_v54 = vadd.f32 %v1728_v24, %v3516_v51  ;;  %v3665_v2 = vpop.f32.mrf.mxu1 }
 0x266   :  { %4167 = vst [vmem:[#allocation82_spill] sm:$0xff] %v3665_v2 }
 0x267   :  { %4166 = vst [vmem:[#allocation81_spill] sm:$0xff] %v3663_v54  ;;  %v3667_v1 = vpop.f32.mrf.mxu1 }
 0x268   :  { %4168 = vst [vmem:[#allocation83_spill] sm:$0xff] %v3667_v1  ;;  %v1732_v43 = vpop.f32.mrf.mxu0 }
 0x269   :  { %v3670_v58 = vadd.f32 %v1732_v43, %v3523_v19 }
 0x26a   :  { %v1734_v38 = vpop.f32.mrf.mxu0 }
 0x26b   :  { %4169 = vst [vmem:[#allocation84_spill] sm:$0xff] %v3670_v58  ;;  %v3673_v33 = vadd.f32 %v1734_v38, %v3525_v13  ;;  %v3675_v34 = vpop.f32.mrf.mxu1  ;;  %v3740_v58 = vld [vmem:[#allocation11 + $0x50] sm:$0xff] }
 0x26c   :  { %4171 = vst [vmem:[#allocation86_spill] sm:$0xff] %v3675_v34  ;;  %4184 = vst [vmem:[#allocation99_spill] sm:$0xff] %v3740_v58 }
 0x26d   :  { %4170 = vst [vmem:[#allocation85_spill] sm:$0xff] %v3673_v33  ;;  %v3677_v40 = vpop.f32.mrf.mxu1 }
 0x26e   :  { %4172 = vst [vmem:[#allocation87_spill] sm:$0xff] %v3677_v40  ;;  %v1738_v14 = vpop.f32.mrf.mxu0 }
 0x26f   :  { %v3680_v51 = vadd.f32 %v1738_v14, %v3532_v49 }
 0x270   :  { %v1740_v24 = vpop.f32.mrf.mxu0 }
 0x271   :  { %4173 = vst [vmem:[#allocation88_spill] sm:$0xff] %v3680_v51  ;;  %v3683_v54 = vadd.f32 %v1740_v24, %v3535_v30  ;;  %v3685_v1 = vpop.f32.mrf.mxu1  ;;  %v3734_v51 = vld [vmem:[#allocation11 + $0x58] sm:$0xff] }
 0x272   :  { %4175 = vst [vmem:[#allocation90_spill] sm:$0xff] %v3685_v1  ;;  %4183 = vst [vmem:[#allocation98_spill] sm:$0xff] %v3734_v51 }
 0x273   :  { %4174 = vst [vmem:[#allocation89_spill] sm:$0xff] %v3683_v54  ;;  %v3687_v19 = vpop.f32.mrf.mxu1 }
 0x274   :  { %4176 = vst [vmem:[#allocation91_spill] sm:$0xff] %v3687_v19  ;;  %v1744_v43 = vpop.f32.mrf.mxu0  ;;  %v3707_v19 = vld [vmem:[#allocation11 + $0x78] sm:$0xff] }
 0x275   :  { %v3690_v13 = vadd.f32 %v1744_v43, %v3540_v29  ;;  %v3709_v29 = vld [vmem:[#allocation11 + $0x70] sm:$0xff]  ;;  %2943 = vmatprep.subr.mxu0 %v3707_v19  ;;  %2999 = vmatprep.subr.mxu1 %v3707_v19 }
 0x276   :  { %v1746_v38 = vpop.f32.mrf.mxu0  ;;  %2944 = vmatpush3.msra.mxu0 %v3707_v19 }
 0x277   :  { %4177 = vst [vmem:[#allocation92_spill] sm:$0xff] %v3690_v13  ;;  %v3693_v33 = vadd.f32 %v1746_v38, %v3542_v56  ;;  %v3695_v40 = vpop.f32.mrf.mxu1  ;;  %v3718_v38 = vld [vmem:[#allocation11 + $0x68] sm:$0xff]  ;;  %2945 = vmatprep.subr.mxu0 %v3709_v29 }
 0x278   :  { %4179 = vst [vmem:[#allocation94_spill] sm:$0xff] %v3695_v40  ;;  %4181 = vst [vmem:[#allocation96_spill] sm:$0xff] %v3718_v38  ;;  %2946 = vmatpush3.msra.mxu0 %v3709_v29  ;;  %v3726_v40 = vld [vmem:[#allocation11 + $0x60] sm:$0xff] }
 0x279   :  { %4178 = vst [vmem:[#allocation93_spill] sm:$0xff] %v3693_v33  ;;  %v3697_v49 = vpop.f32.mrf.mxu1  ;;  %4182 = vst [vmem:[#allocation97_spill] sm:$0xff] %v3726_v40  ;;  %2947 = vmatprep.subr.mxu0 %v3718_v38 }
 0x27a   :  { %4180 = vst [vmem:[#allocation95_spill] sm:$0xff] %v3697_v49  ;;  %v3699_v14 = vpop.f32.mrf.mxu0  ;;  %2948 = vmatpush3.msra.mxu0 %v3718_v38 }
 0x27b   :  { %2949 = vmatprep.subr.mxu0 %v3726_v40 }
 0x27c   :  { %v3701_v30 = vpop.f32.mrf.mxu0  ;;  %2950 = vmatpush3.msra.mxu0 %v3726_v40 }
 0x27d   :  { %v3703_v24 = vpop.f32.mrf.mxu1  ;;  %2951 = vmatprep.subr.mxu0 %v3734_v51 }
 0x27e   :  { %v3705_v54 = vpop.f32.mrf.mxu0  ;;  %2952 = vmatpush3.msra.mxu0 %v3734_v51 }
 0x27f   :  { %v3711_v43 = vpop.f32.mrf.mxu1  ;;  %2953 = vmatprep.subr.mxu0 %v3740_v58 }
 0x280   :  { %v3715_v56 = vpop.f32.mrf.mxu0  ;;  %2954 = vmatpush3.msra.mxu0 %v3740_v58 }
 0x281   :  { %v3720_v49 = vpop.f32.mrf.mxu1  ;;  %2955 = vmatprep.subr.mxu0 %v3748_v11 }
 0x282   :  { %v3723_v33 = vpop.f32.mrf.mxu0  ;;  %2956 = vmatpush3.msra.mxu0 %v3748_v11 }
 0x283   :  { %v3729_v13 = vpop.f32.mrf.mxu1  ;;  %2957 = vmatprep.subr.mxu0 %v3754_v5 }
 0x284   :  { %v3731_v1 = vpop.f32.mrf.mxu0  ;;  %2958 = vmatpush3.msra.mxu0 %v3754_v5 }
 0x285   :  { %v3743_v2 = vpop.f32.mrf.mxu1  ;;  %2959 = vmatprep.subr.mxu0 %v3762_v35 }
 0x286   :  { %v3737_v34 = vpop.f32.mrf.mxu0  ;;  %2960 = vmatpush3.msra.mxu0 %v3762_v35 }
 0x287   :  { %v3757_v46 = vpop.f32.mrf.mxu1  ;;  %2961 = vmatprep.subr.mxu0 %v3768_v17 }
 0x288   :  { %v3745_v9 = vpop.f32.mrf.mxu0  ;;  %2962 = vmatpush3.msra.mxu0 %v3768_v17 }
 0x289   :  { %v3771_v58 = vpop.f32.mrf.mxu1 }
 0x28a   :  { %v3751_v62 = vpop.f32.mrf.mxu0  ;;  %4192 = vst [vmem:[#allocation107_spill] sm:$0xff] %v3771_v58 }
 0x28b   :  { %4186 = vst [vmem:[#allocation101_spill] sm:$0xff] %v3751_v62 }
 0x28c   :  { %v3759_v21 = vpop.f32.mrf.mxu0 }
 0x28d   :  { %4188 = vst [vmem:[#allocation103_spill] sm:$0xff] %v3759_v21  ;;  %v3780_v21 = vpop.f32.mrf.mxu1 }
 0x28e   :  { %v3765_v51 = vpop.f32.mrf.mxu0  ;;  %4195 = vst [vmem:[#allocation110_spill] sm:$0xff] %v3780_v21 }
 0x28f   :  { %4190 = vst [vmem:[#allocation105_spill] sm:$0xff] %v3765_v51  ;;  %v3786_v38 = vpop.f32.mrf.mxu1 }
 0x290   :  { %v3773_v40 = vpop.f32.mrf.mxu0 }
 0x291   :  { %4193 = vst [vmem:[#allocation108_spill] sm:$0xff] %v3773_v40  ;;  %v3792_v40 = vpop.f32.mrf.mxu1 }
 0x292   :  { %v3777_v11 = vpop.f32.mrf.mxu0  ;;  %4200 = vst [vmem:[#allocation115_spill] sm:$0xff] %v3792_v40 }
 0x293   :  { %4194 = vst [vmem:[#allocation109_spill] sm:$0xff] %v3777_v11  ;;  %v3798_v11 = vpop.f32.mrf.mxu1 }
 0x294   :  { %v3782_v51 = vpop.f32.mrf.mxu0  ;;  %4203 = vst [vmem:[#allocation118_spill] sm:$0xff] %v3798_v11 }
 0x295   :  { %4196 = vst [vmem:[#allocation111_spill] sm:$0xff] %v3782_v51  ;;  %v3804_v51 = vpop.f32.mrf.mxu1 }
 0x296   :  { %v3784_v5 = vpop.f32.mrf.mxu0  ;;  %4206 = vst [vmem:[#allocation121_spill] sm:$0xff] %v3804_v51 }
 0x297   :  { %4197 = vst [vmem:[#allocation112_spill] sm:$0xff] %v3784_v5  ;;  %v3812_v40 = vpop.f32.mrf.mxu1 }
 0x298   :  { %v3788_v62 = vpop.f32.mrf.mxu0  ;;  %4209 = vst [vmem:[#allocation124_spill] sm:$0xff] %v3812_v40 }
 0x299   :  { %4198 = vst [vmem:[#allocation113_spill] sm:$0xff] %v3788_v62  ;;  %v1013_v62 = vadd.f32 %v3305_v18, %v3496_v6  ;;  %v3822_v51 = vpop.f32.mrf.mxu1 }
 0x29a   :  { %v3790_v58 = vpop.f32.mrf.mxu0 }
 0x29b   :  { %4199 = vst [vmem:[#allocation114_spill] sm:$0xff] %v3790_v58 }
 0x29c   :  { %v3794_v35 = vpop.f32.mrf.mxu0 }
 0x29d   :  { %4201 = vst [vmem:[#allocation116_spill] sm:$0xff] %v3794_v35 }
 0x29e   :  { %v3796_v37 = vpop.f32.mrf.mxu0 }
 0x29f   :  { %4202 = vst [vmem:[#allocation117_spill] sm:$0xff] %v3796_v37  ;;  %v1174_v37 = vadd.f32 %v3309_v27, %v1013_v62 }
 0x2a0   :  { %v3800_v17 = vpop.f32.mrf.mxu0 }
 0x2a1   :  { %4204 = vst [vmem:[#allocation119_spill] sm:$0xff] %v3800_v17  ;;  %v1019_v17 = vadd.f32 %v3312_v36, %v3496_v6  ;;  %v3833_v36 = vpop.f32.mrf.mxu1 }
 0x2a2   :  { %v3802_v21 = vpop.f32.mrf.mxu0 }
 0x2a3   :  { %4205 = vst [vmem:[#allocation120_spill] sm:$0xff] %v3802_v21  ;;  %v1335_v21 = vadd.f32 %v3417_v32, %v1174_v37  ;;  %v1180_v18 = vadd.f32 %v3316_v45, %v1019_v17  ;;  %v1031_v37 = vadd.f32 %v3326_v10, %v3496_v6 }
 0x2a4   :  { %v3806_v5 = vpop.f32.mrf.mxu0 }
 0x2a5   :  { %4207 = vst [vmem:[#allocation122_spill] sm:$0xff] %v3806_v5  ;;  %v1496_v27 = vadd.f32 %v3421_v59, %v1335_v21  ;;  %v1341_v62 = vadd.f32 %v3424_v26, %v1180_v18  ;;  %v1037_v59 = vadd.f32 %v3333_v31, %v3496_v6  ;;  %v1816_v26 = vadd.f32 %v3550_v60, %v3546_v47  ;;  %v3849_v21 = vpop.f32.mrf.mxu1 }
 0x2a6   :  { %v3810_v58 = vpop.f32.mrf.mxu0  ;;  %v1192_v10 = vadd.f32 %v3330_v20, %v1031_v37  ;;  %v1049_v20 = vadd.f32 %v3347_v12, %v3496_v6  ;;  %v4213_v37 = vld [vmem:[#allocation21_spill] sm:$0xff] }
 0x2a7   :  { %4208 = vst [vmem:[#allocation123_spill] sm:$0xff] %v3810_v58  ;;  %v1025_v58 = vadd.f32 %v3319_v55, %v3496_v6  ;;  %v1657_v45 = vadd.f32 %v3548_v28, %v1496_v27  ;;  %v1502_v55 = vadd.f32 %v3428_v42, %v1341_v62  ;;  %v1977_v42 = vadd.f32 %v3699_v14, %v1816_v26 }
 0x2a8   :  { %v3814_v35 = vpop.f32.mrf.mxu0  ;;  %v1353_v31 = vadd.f32 %v3438_v15, %v1192_v10  ;;  %v1198_v60 = vadd.f32 %v3337_v41, %v1037_v59  ;;  %v1043_v27 = vadd.f32 %v3340_v53, %v3496_v6  ;;  %v4216_v10 = vld [vmem:[#allocation32_spill] sm:$0xff] }
 0x2a9   :  { %v1186_v32 = vadd.f32 %v3323_v0, %v1025_v58  ;;  %v1818_v28 = vadd.f32 %v3553_v7, %v1657_v45  ;;  %v1663_v58 = vadd.f32 %v3558_v4, %v1502_v55  ;;  %v1822_v7 = vadd.f32 %v3561_v39, %v3556_v52  ;;  %v3869_v4 = vpop.f32.mrf.mxu1  ;;  %v4212_v39 = vld [vmem:[#allocation20_spill] sm:$0xff] }
 0x2aa   :  { %v3819_v11 = vpop.f32.mrf.mxu0  ;;  %v2138_v41 = vadd.f32 %v3703_v24, %v1977_v42  ;;  %v1514_v12 = vadd.f32 %v3442_v16, %v1353_v31  ;;  %v1210_v45 = vadd.f32 %v4213_v37, %v1049_v20  ;;  %v4217_v42 = vld [vmem:[#allocation33_spill] sm:$0xff]  ;;  %v4224_v37 = vld [vmem:[#allocation34_spill] sm:$0xff] }
 0x2ab   :  { %4210 = vst [vmem:[#allocation125_spill] sm:$0xff] %v3819_v11  ;;  %v1979_v47 = vadd.f32 %v3701_v30, %v1818_v28  ;;  %v1983_v53 = vadd.f32 %v3705_v54, %v1822_v7  ;;  %v4214_v54 = vld [vmem:[#allocation22_spill] sm:$0xff] }
 0x2ac   :  { %v3824_v5 = vpop.f32.mrf.mxu0  ;;  %v1055_v55 = vadd.f32 %v4214_v54, %v3496_v6 }
 0x2ad   :  { %v2140_v62 = vadd.f32 %v3711_v43, %v1979_v47  ;;  %v1675_v43 = vadd.f32 %v3579_v63, %v1514_v12  ;;  %v4218_v63 = vld [vmem:[#allocation26_spill] sm:$0xff] }
 0x2ae   :  { %v3829_v40 = vpop.f32.mrf.mxu0 }
 0x2af   :  { %4211 = vst [vmem:[#allocation126_spill] sm:$0xff] %v3829_v40  ;;  %v1347_v40 = vadd.f32 %v3431_v44, %v1186_v32  ;;  %v1204_v32 = vadd.f32 %v4212_v39, %v1043_v27  ;;  %v4219_v27 = vld [vmem:[#allocation47_spill] sm:$0xff] }
 0x2b0   :  { %v3835_v11 = vpop.f32.mrf.mxu0  ;;  %v1834_v20 = vadd.f32 %v3582_v48, %v4219_v27 }
 0x2b1   :  { %v1508_v44 = vadd.f32 %v3435_v61, %v1347_v40  ;;  %v1824_v61 = vadd.f32 %v3563_v23, %v1663_v58  ;;  %v1359_v40 = vadd.f32 %v3445_v22, %v1198_v60  ;;  %v1828_v23 = vadd.f32 %v3571_v8, %v3567_v57 }
 0x2b2   :  { %v3841_v17 = vpop.f32.mrf.mxu0  ;;  %v2144_v58 = vadd.f32 %v3720_v49, %v1983_v53  ;;  %v1067_v60 = vadd.f32 %v4218_v63, %v3496_v6  ;;  %v1995_v48 = vadd.f32 %v3737_v34, %v1834_v20  ;;  %v4236_v20 = vld [vmem:[#allocation103_spill] sm:$0xff] }
 0x2b3   :  { %v1669_v15 = vadd.f32 %v3569_v3, %v1508_v44  ;;  %v1985_v52 = vadd.f32 %v3715_v56, %v1824_v61  ;;  %v3885_v3 = vpop.f32.mrf.mxu1  ;;  %v4215_v56 = vld [vmem:[#allocation24_spill] sm:$0xff]  ;;  %v1520_v28 = vadd.f32 %v4216_v10, %v1359_v40  ;;  %v1989_v57 = vadd.f32 %v3723_v33, %v1828_v23  ;;  %v4220_v33 = vld [vmem:[#allocation23_spill] sm:$0xff]  ;;  %v4229_v10 = vld [vmem:[#allocation53_spill] sm:$0xff] }
 0x2b4   :  { %v3851_v0 = vpop.f32.mrf.mxu0  ;;  %v1061_v26 = vadd.f32 %v4215_v56, %v3496_v6  ;;  %v1365_v44 = vadd.f32 %v4217_v42, %v1204_v32  ;;  %v1216_v40 = vadd.f32 %v4220_v33, %v1055_v55  ;;  %v4232_v42 = vld [vmem:[#allocation101_spill] sm:$0xff]  ;;  %v4238_v33 = vld [vmem:[#allocation52_spill] sm:$0xff] }
 0x2b5   :  { %v1830_v16 = vadd.f32 %v3574_v50, %v1669_v15  ;;  %v2146_v31 = vadd.f32 %v3729_v13, %v1985_v52  ;;  %v3903_v7 = vpop.f32.mrf.mxu1  ;;  %v1681_v13 = vadd.f32 %v3590_v25, %v1520_v28  ;;  %v2150_v39 = vadd.f32 %v3743_v2, %v1989_v57  ;;  %v4225_v25 = vld [vmem:[#allocation27_spill] sm:$0xff] }
 0x2b6   :  { %v3857_v18 = vpop.f32.mrf.mxu0  ;;  %v1526_v23 = vadd.f32 %v4224_v37, %v1365_v44  ;;  %v3917_v55 = vadd.f32 %v4225_v25, %v1067_v60  ;;  %v4231_v57 = vld [vmem:[#allocation107_spill] sm:$0xff]  ;;  %v4235_v60 = vld [vmem:[#allocation110_spill] sm:$0xff] }
 0x2b7   :  { %v1991_v47 = vadd.f32 %v3731_v1, %v1830_v16  ;;  %v4222_v1 = vld [vmem:[#allocation25_spill] sm:$0xff]  ;;  %v3921_v2 = vpop.f32.mrf.mxu1 }
 0x2b8   :  { %v3871_v14 = vpop.f32.mrf.mxu0  ;;  %v1222_v12 = vadd.f32 %v4222_v1, %v1061_v26  ;;  %v4226_v16 = vld [vmem:[#allocation49_spill] sm:$0xff]  ;;  %v4228_v26 = vld [vmem:[#allocation51_spill] sm:$0xff] }
 0x2ba   :  { %v2298_v30 = vpop.f32.mrf.mxu0 }
 0x2bb   :  { %v2299_v22 = vadd.f32 %v2298_v30, %v2138_v41  ;;  %v4221_v41 = vld [vmem:[#allocation48_spill] sm:$0xff] }
 0x2bc   :  { %v2300_v24 = vpop.f32.mrf.mxu0  ;;  %v1836_v53 = vadd.f32 %v4221_v41, %v1675_v43  ;;  %v4239_v41 = vld [vmem:[#allocation54_spill] sm:$0xff] }
 0x2bd   :  { %v2301_v59 = vadd.f32 %v2300_v24, %v2140_v62  ;;  %v2393_v61 = vmax.f32 %v2299_v22, 0.0  ;;  %v4223_v62 = vld [vmem:[#allocation35_spill] sm:$0xff]  ;;  %v2152_v22 = vadd.f32 %v3757_v46, %v1991_v47  ;;  %v1842_v46 = vadd.f32 %v4228_v26, %v1681_v13  ;;  %v4233_v47 = vld [vmem:[#allocation96_spill] sm:$0xff]  ;;  %v3939_v13 = vpop.f32.mrf.mxu1 }
 0x2be   :  { %v2304_v8 = vpop.f32.mrf.mxu0  ;;  %v1371_v52 = vadd.f32 %v4223_v62, %v1210_v45  ;;  %v1997_v24 = vadd.f32 %v3745_v9, %v1836_v53  ;;  %v4227_v45 = vld [vmem:[#allocation50_spill] sm:$0xff]  ;;  %v1687_v9 = vadd.f32 %v4229_v10, %v1526_v23  ;;  %v1846_v53 = vadd.f32 %v4239_v41, %v4238_v33  ;;  %v4243_v23 = vld [vmem:[#allocation39_spill] sm:$0xff]  ;;  %v4248_v26 = vld [vmem:[#allocation108_spill] sm:$0xff] }
 0x2bf   :  { %v2394_v50 = vmax.f32 %v2301_v59, 0.0  ;;  %v2305_v49 = vadd.f32 %v2304_v8, %v2144_v58  ;;  %v1840_v43 = vadd.f32 %v4227_v45, %v4226_v16  ;;  %v2156_v8 = vadd.f32 %v4231_v57, %v1995_v48  ;;  %v4242_v48 = vld [vmem:[#allocation57_spill] sm:$0xff]  ;;  %v4245_v45 = vld [vmem:[#allocation98_spill] sm:$0xff]  ;;  %v4258_v41 = vld [vmem:[#allocation100_spill] sm:$0xff] }
 0x2c0   :  { %v2306_v15 = vpop.f32.mrf.mxu0  ;;  %v2158_v27 = vadd.f32 %v4235_v60, %v1997_v24 }
 0x2c1   :  { %v2307_v30 = vadd.f32 %v2306_v15, %v2146_v31  ;;  %2528 = vmatprep.mubr.f32.mxu1 %v2394_v50  ;;  %v2395_v34 = vmax.f32 %v2305_v49, 0.0  ;;  %v2001_v44 = vadd.f32 %v4232_v42, %v1840_v43  ;;  %v4234_v50 = vld [vmem:[#allocation37_spill] sm:$0xff]  ;;  %v4246_v43 = vld [vmem:[#allocation38_spill] sm:$0xff] }
 0x2c2   :  { %v2310_v32 = vpop.f32.mrf.mxu0  ;;  %2529 = vmatmul.mubr.f32.vlgmr.msra.gmra.mxu1 %v2393_v61  ;;  %v1377_v63 = vadd.f32 %v4234_v50, %v1216_v40  ;;  %v2003_v61 = vadd.f32 %v4236_v20, %v1842_v46  ;;  %v4241_v40 = vld [vmem:[#allocation55_spill] sm:$0xff]  ;;  %v4254_v50 = vld [vmem:[#allocation61_spill] sm:$0xff] }
 0x2c3   :  { %v2396_v54 = vmax.f32 %v2307_v30, 0.0  ;;  %3015 = vmatpush3.msra.mxu1 %v3707_v19  ;;  %v2311_v59 = vadd.f32 %v2310_v32, %v2150_v39  ;;  %v4230_v19 = vld [vmem:[#allocation36_spill] sm:$0xff]  ;;  %v1848_v39 = vadd.f32 %v4241_v40, %v1687_v9  ;;  %v2162_v24 = vadd.f32 %v3786_v38, %v2001_v44  ;;  %v4249_v9 = vld [vmem:[#allocation29_spill] sm:$0xff]  ;;  %v4252_v44 = vld [vmem:[#allocation99_spill] sm:$0xff] }
 0x2c4   :  { %v2312_v56 = vpop.f32.mrf.mxu0  ;;  %3000 = vmatprep.subr.mxu1 %v3709_v29  ;;  %v1532_v58 = vadd.f32 %v4230_v19, %v1371_v52  ;;  %v4240_v52 = vld [vmem:[#allocation97_spill] sm:$0xff]  ;;  %v4251_v19 = vld [vmem:[#allocation58_spill] sm:$0xff] }
 0x2c5   :  { %v2313_v28 = vadd.f32 %v2312_v56, %v2152_v22  ;;  %2533 = vmatprep.mubr.f32.mxu1 %v2396_v54  ;;  %3016 = vmatpush3.msra.mxu1 %v3709_v29  ;;  %v4237_v29 = vld [vmem:[#allocation28_spill] sm:$0xff]  ;;  %v2397_v30 = vmax.f32 %v2311_v59, 0.0  ;;  %v1383_v22 = vadd.f32 %v4243_v23, %v1222_v12  ;;  %v4244_v54 = vld [vmem:[#allocation105_spill] sm:$0xff]  ;;  %v4247_v59 = vld [vmem:[#allocation115_spill] sm:$0xff]  ;;  %v2009_v46 = vadd.f32 %v4248_v26, %v1848_v39 }
 0x2c6   :  { %v2316_v31 = vpop.f32.mrf.mxu0  ;;  %2534 = vmatmul.mubr.f32.gmra.mxu1 %v2395_v34  ;;  %3001 = vmatprep.subr.mxu1 %v4233_v47  ;;  %v1073_v15 = vadd.f32 %v4237_v29, %v3496_v6  ;;  %v1693_v32 = vadd.f32 %v4242_v48, %v1532_v58  ;;  %v2007_v25 = vadd.f32 %v4244_v54, %v1846_v53  ;;  %v4250_v12 = vld [vmem:[#allocation56_spill] sm:$0xff]  ;;  %v3956_v58 = vpop.f32.mrf.mxu1  ;;  %v4257_v29 = vld [vmem:[#allocation109_spill] sm:$0xff]  ;;  %v4262_v48 = vld [vmem:[#allocation30_spill] sm:$0xff] }
 0x2c7   :  { %v2398_v49 = vmax.f32 %v2313_v28, 0.0  ;;  %3017 = vmatpush3.msra.mxu1 %v4233_v47  ;;  %v2317_v1 = vadd.f32 %v2316_v31, %v2156_v8  ;;  %v1538_v34 = vadd.f32 %v4246_v43, %v1377_v63  ;;  %v2164_v56 = vadd.f32 %v4247_v59, %v2003_v61  ;;  %v4253_v31 = vld [vmem:[#allocation59_spill] sm:$0xff]  ;;  %v4256_v61 = vld [vmem:[#allocation118_spill] sm:$0xff]  ;;  %v4259_v53 = vld [vmem:[#allocation41_spill] sm:$0xff] }
 0x2c8   :  { %v2318_v62 = vpop.f32.mrf.mxu0  ;;  %3002 = vmatprep.subr.mxu1 %v4240_v52  ;;  %v1234_v28 = vadd.f32 %v4249_v9, %v1073_v15  ;;  %v1852_v38 = vadd.f32 %v4251_v19, %v4250_v12  ;;  %v1854_v47 = vadd.f32 %v4253_v31, %v1693_v32  ;;  %v1079_v32 = vadd.f32 %v4262_v48, %v3496_v6  ;;  %v4264_v23 = vld [vmem:[#allocation62_spill] sm:$0xff]  ;;  %v4268_v26 = vld [vmem:[#allocation43_spill] sm:$0xff]  ;;  %v4270_v9 = vld [vmem:[#allocation112_spill] sm:$0xff] }
 0x2c9   :  { %v2319_v37 = vadd.f32 %v2318_v62, %v2158_v27  ;;  %2538 = vmatprep.mubr.f32.mxu1 %v2398_v49  ;;  %3018 = vmatpush3.msra.mxu1 %v4240_v52  ;;  %v2399_v57 = vmax.f32 %v2317_v1, 0.0  ;;  %v1699_v63 = vadd.f32 %v4254_v50, %v1538_v34  ;;  %v4255_v27 = vld [vmem:[#allocation40_spill] sm:$0xff]  ;;  %v2168_v49 = vadd.f32 %v4256_v61, %v2007_v25  ;;  %v4260_v1 = vld [vmem:[#allocation121_spill] sm:$0xff]  ;;  %v4261_v52 = vld [vmem:[#allocation111_spill] sm:$0xff] }
 0x2ca   :  { %v2322_v16 = vpop.f32.mrf.mxu0  ;;  %2539 = vmatmul.mubr.f32.gmra.mxu1 %v2397_v30  ;;  %3003 = vmatprep.subr.mxu1 %v4245_v45  ;;  %v1544_v20 = vadd.f32 %v4255_v27, %v1383_v22  ;;  %v2013_v15 = vadd.f32 %v4257_v29, %v1852_v38  ;;  %v1389_v30 = vadd.f32 %v4259_v53, %v3917_v55  ;;  %v4266_v55 = vld [vmem:[#allocation63_spill] sm:$0xff]  ;;  %v4267_v34 = vld [vmem:[#allocation65_spill] sm:$0xff]  ;;  %v4271_v38 = vld [vmem:[#allocation104_spill] sm:$0xff] }
 0x2cb   :  { %v2400_v10 = vmax.f32 %v2319_v37, 0.0  ;;  %3019 = vmatpush3.msra.mxu1 %v4245_v45  ;;  %v2323_v8 = vadd.f32 %v2322_v16, %v2162_v24  ;;  %v2170_v62 = vadd.f32 %v4260_v1, %v2009_v46  ;;  %v2015_v40 = vadd.f32 %v4261_v52, %v1854_v47  ;;  %v4263_v37 = vld [vmem:[#allocation60_spill] sm:$0xff]  ;;  %v3975_v24 = vpop.f32.mrf.mxu1  ;;  %v4265_v45 = vld [vmem:[#allocation102_spill] sm:$0xff]  ;;  %v4274_v50 = vld [vmem:[#allocation31_spill] sm:$0xff] }
 0x2cc   :  { %v2324_v42 = vpop.f32.mrf.mxu0  ;;  %3004 = vmatprep.subr.mxu1 %v4252_v44  ;;  %v1858_v22 = vadd.f32 %v4264_v23, %v4263_v37  ;;  %v1860_v43 = vadd.f32 %v4266_v55, %v1699_v63  ;;  %v1705_v59 = vadd.f32 %v4267_v34, %v1544_v20  ;;  %v1395_v6 = vadd.f32 %v4268_v26, %v1234_v28  ;;  %v4269_v46 = vld [vmem:[#allocation124_spill] sm:$0xff] }
 0x2cd   :  { %v2325_v60 = vadd.f32 %v2324_v42, %v2164_v56  ;;  %2543 = vmatprep.mubr.f32.mxu1 %v2400_v10  ;;  %3020 = vmatpush3.msra.mxu1 %v4252_v44  ;;  %v2401_v54 = vmax.f32 %v2323_v8, 0.0  ;;  %v2174_v10 = vadd.f32 %v4269_v46, %v2013_v15  ;;  %v2176_v42 = vadd.f32 %v3822_v51, %v2015_v40  ;;  %v4273_v44 = vld [vmem:[#allocation113_spill] sm:$0xff]  ;;  %v4275_v28 = vld [vmem:[#allocation64_spill] sm:$0xff]  ;;  %v3992_v20 = vpop.f32.mrf.mxu1  ;;  %v4277_v15 = vld [vmem:[#allocation106_spill] sm:$0xff] }
 0x2ce   :  { %v2328_v33 = vpop.f32.mrf.mxu0  ;;  %2544 = vmatmul.mubr.f32.gmra.mxu1 %v2399_v57  ;;  %3005 = vmatprep.subr.mxu1 %v4258_v41  ;;  %v2019_v12 = vadd.f32 %v4270_v9, %v1858_v22  ;;  %v4272_v57 = vld [vmem:[#allocation42_spill] sm:$0xff]  ;;  %v2021_v31 = vadd.f32 %v4273_v44, %v1860_v43  ;;  %v1240_v63 = vadd.f32 %v4274_v50, %v1079_v32  ;;  %v4279_v51 = vld [vmem:[#allocation69_spill] sm:$0xff]  ;;  %v4280_v1 = vld [vmem:[#allocation44_spill] sm:$0xff] }
 0x2cf   :  { %v2402_v39 = vmax.f32 %v2325_v60, 0.0  ;;  %3021 = vmatpush3.msra.mxu1 %v4258_v41  ;;  %v2329_v25 = vadd.f32 %v2328_v33, %v2168_v49  ;;  %v1550_v8 = vadd.f32 %v4272_v57, %v1389_v30  ;;  %v4276_v60 = vld [vmem:[#allocation66_spill] sm:$0xff]  ;;  %v4278_v33 = vld [vmem:[#allocation67_spill] sm:$0xff]  ;;  %v4282_v32 = vld [vmem:[#allocation45_spill] sm:$0xff]  ;;  %v4006_v43 = vpop.f32.mrf.mxu1 }
 0x2d0   :  { %v2330_v16 = vpop.f32.mrf.mxu0  ;;  %3006 = vmatprep.subr.mxu1 %v4265_v45  ;;  %v1864_v27 = vadd.f32 %v4276_v60, %v4275_v28  ;;  %v1866_v41 = vadd.f32 %v4278_v33, %v1705_v59  ;;  %v2180_v52 = vadd.f32 %v3833_v36, %v2019_v12  ;;  %v4281_v40 = vld [vmem:[#allocation114_spill] sm:$0xff]  ;;  %v1401_v37 = vadd.f32 %v4282_v32, %v1240_v63  ;;  %v4283_v22 = vld [vmem:[#allocation116_spill] sm:$0xff]  ;;  %v4286_v36 = vld [vmem:[#allocation71_spill] sm:$0xff] }
 0x2d1   :  { %v2331_v56 = vadd.f32 %v2330_v16, %v2170_v62  ;;  %2548 = vmatprep.mubr.f32.mxu1 %v2402_v39  ;;  %3022 = vmatpush3.msra.mxu1 %v4265_v45  ;;  %v2403_v61 = vmax.f32 %v2329_v25, 0.0  ;;  %v1711_v53 = vadd.f32 %v4279_v51, %v1550_v8  ;;  %v1556_v62 = vadd.f32 %v4280_v1, %v1395_v6  ;;  %v4284_v16 = vld [vmem:[#allocation68_spill] sm:$0xff]  ;;  %v4285_v45 = vld [vmem:[#allocation70_spill] sm:$0xff]  ;;  %v4287_v6 = vld [vmem:[#allocation73_spill] sm:$0xff]  ;;  %v2211_v28 = vpop.f32.mrf.mxu1 }
 0x2d2   :  { %v2334_v19 = vpop.f32.mrf.mxu0  ;;  %2549 = vmatmul.mubr.f32.gmra.mxu1 %v2401_v54  ;;  %3007 = vmatprep.subr.mxu1 %v4271_v38  ;;  %v2025_v39 = vadd.f32 %v4281_v40, %v1864_v27  ;;  %v2182_v23 = vadd.f32 %v3849_v21, %v2021_v31  ;;  %v2027_v54 = vadd.f32 %v4283_v22, %v1866_v41  ;;  %v4288_v21 = vld [vmem:[#allocation117_spill] sm:$0xff]  ;;  %v4292_v50 = vld [vmem:[#allocation74_spill] sm:$0xff]  ;;  %v4295_v51 = vld [vmem:[#allocation120_spill] sm:$0xff] }
 0x2d3   :  { %v2404_v47 = vmax.f32 %v2331_v56, 0.0  ;;  %3023 = vmatpush3.msra.mxu1 %v4271_v38  ;;  %v2335_v49 = vadd.f32 %v2334_v19, %v2174_v10  ;;  %v1870_v55 = vadd.f32 %v4285_v45, %v4284_v16  ;;  %v1872_v26 = vadd.f32 %v4286_v36, %v1711_v53  ;;  %v4289_v38 = vld [vmem:[#allocation46_spill] sm:$0xff]  ;;  %v4297_v40 = vld [vmem:[#allocation76_spill] sm:$0xff]  ;;  %v2215_v32 = vpop.f32.mrf.mxu1  ;;  %v4300_v45 = vld [vmem:[#allocation123_spill] sm:$0xff] }
 0x2d4   :  { %v2336_v29 = vpop.f32.mrf.mxu0  ;;  %3008 = vmatprep.subr.mxu1 %v4277_v15  ;;  %v1717_v46 = vadd.f32 %v4287_v6, %v1556_v62  ;;  %v2186_v9 = vadd.f32 %v3869_v4, %v2025_v39  ;;  %v1562_v57 = vadd.f32 %v4289_v38, %v1401_v37  ;;  %v2188_v8 = vadd.f32 %v3885_v3, %v2027_v54  ;;  %v4296_v1 = vld [vmem:[#allocation122_spill] sm:$0xff]  ;;  %v4299_v54 = vld [vmem:[#allocation79_spill] sm:$0xff]  ;;  %v4301_v36 = vld [vmem:[#allocation80_spill] sm:$0xff] }
 0x2d5   :  { %v2337_v30 = vadd.f32 %v2336_v29, %v2176_v42  ;;  %2553 = vmatprep.mubr.f32.mxu1 %v2404_v47  ;;  %3024 = vmatpush3.msra.mxu1 %v4277_v15  ;;  %v2405_v34 = vmax.f32 %v2335_v49, 0.0  ;;  %v2031_v12 = vadd.f32 %v4288_v21, %v1870_v55  ;;  %v4290_v42 = vld [vmem:[#allocation119_spill] sm:$0xff]  ;;  %v4291_v47 = vld [vmem:[#allocation72_spill] sm:$0xff]  ;;  %v4294_v29 = vld [vmem:[#allocation77_spill] sm:$0xff] }
 0x2d6   :  { %v2340_v48 = vpop.f32.mrf.mxu0  ;;  %2554 = vmatmul.mubr.f32.gmra.mxu1 %v2403_v61  ;;  %v2033_v44 = vadd.f32 %v4290_v42, %v1872_v26  ;;  %v1876_v63 = vadd.f32 %v4292_v50, %v4291_v47  ;;  %v4293_v49 = vld [vmem:[#allocation75_spill] sm:$0xff]  ;;  %v1723_v15 = vadd.f32 %v4294_v29, %v1562_v57  ;;  %v4298_v39 = vld [vmem:[#allocation78_spill] sm:$0xff]  ;;  %v4306_v47 = vld [vmem:[#allocation84_spill] sm:$0xff] }
 0x2d7   :  { %v2406_v25 = vmax.f32 %v2337_v30, 0.0  ;;  %v2341_v59 = vadd.f32 %v2340_v48, %v2180_v52  ;;  %v1878_v4 = vadd.f32 %v4293_v49, %v1717_v46  ;;  %v2192_v41 = vadd.f32 %v3903_v7, %v2031_v12  ;;  %v4302_v26 = vld [vmem:[#allocation82_spill] sm:$0xff]  ;;  %v2217_v46 = vpop.f32.mrf.mxu1  ;;  %v4303_v12 = vld [vmem:[#allocation81_spill] sm:$0xff]  ;;  %v4309_v29 = vld [vmem:[#allocation87_spill] sm:$0xff] }
 0x2d8   :  { %v2342_v56 = vpop.f32.mrf.mxu0  ;;  %v2037_v3 = vadd.f32 %v4295_v51, %v1876_v63  ;;  %v2194_v30 = vadd.f32 %v3921_v2, %v2033_v44  ;;  %v1882_v48 = vadd.f32 %v4298_v39, %v4297_v40  ;;  %v1888_v6 = vadd.f32 %v4302_v26, %v4301_v36  ;;  %v4307_v50 = vld [vmem:[#allocation86_spill] sm:$0xff]  ;;  %v4317_v26 = vld [vmem:[#allocation93_spill] sm:$0xff] }
 0x2d9   :  { %v2343_v10 = vadd.f32 %v2342_v56, %v2182_v23  ;;  %2558 = vmatprep.mubr.f32.mxu1 %v2406_v25  ;;  %v2407_v60 = vmax.f32 %v2341_v59, 0.0  ;;  %v2039_v62 = vadd.f32 %v4296_v1, %v1878_v4  ;;  %v1884_v25 = vadd.f32 %v4299_v54, %v1723_v15  ;;  %v4308_v4 = vld [vmem:[#allocation85_spill] sm:$0xff]  ;;  %v4312_v1 = vld [vmem:[#allocation90_spill] sm:$0xff] }
 0x2da   :  { %v2346_v19 = vpop.f32.mrf.mxu0  ;;  %2559 = vmatmul.mubr.f32.gmra.mxu1 %v2405_v34  ;;  %v2198_v7 = vadd.f32 %v3939_v13, %v2037_v3  ;;  %v2043_v55 = vadd.f32 %v4300_v45, %v1882_v48  ;;  %v1894_v63 = vadd.f32 %v4307_v50, %v4306_v47  ;;  %v1896_v15 = vadd.f32 %v4309_v29, %v4308_v4  ;;  %v4315_v45 = vld [vmem:[#allocation92_spill] sm:$0xff] }
 0x2db   :  { %v2408_v31 = vmax.f32 %v2343_v10, 0.0  ;;  %v2347_v27 = vadd.f32 %v2346_v19, %v2186_v9  ;;  %v2200_v2 = vadd.f32 %v3956_v58, %v2039_v62  ;;  %v2045_v59 = vadd.f32 %v3814_v35, %v1884_v25  ;;  %v4304_v19 = vld [vmem:[#allocation83_spill] sm:$0xff]  ;;  %v2626_v4 = vld [vmem:[#allocation11 + $0x8] sm:$0xff] }
 0x2dc   :  { %v2348_v61 = vpop.f32.mrf.mxu0  ;;  %v1890_v38 = vadd.f32 %v4304_v19, %v4303_v12  ;;  %v2204_v57 = vadd.f32 %v3975_v24, %v2043_v55  ;;  %v2057_v3 = vadd.f32 %v3835_v11, %v1896_v15  ;;  %v4316_v55 = vld [vmem:[#allocation94_spill] sm:$0xff]  ;;  %v2625_v29 = vld [vmem:[#allocation11] sm:$0xff] }
 0x2dd   :  { %v2349_v33 = vadd.f32 %v2348_v61, %v2188_v8  ;;  %2563 = vmatprep.mubr.f32.mxu1 %v2408_v31  ;;  %v2409_v37 = vmax.f32 %v2347_v27, 0.0  ;;  %v4305_v8 = vld [vmem:[#allocation125_spill] sm:$0xff]  ;;  %v2206_v35 = vadd.f32 %v3992_v20, %v2045_v59 }
 0x2de   :  { %v2352_v53 = vpop.f32.mrf.mxu0  ;;  %2564 = vmatmul.mubr.f32.gmra.mxu1 %v2407_v60  ;;  %v2049_v42 = vadd.f32 %v4305_v8, %v1888_v6  ;;  %v2051_v44 = vadd.f32 %v3824_v5, %v1890_v38  ;;  %v2221_v60 = vpop.f32.mrf.mxu1  ;;  %v4318_v6 = vld [vmem:[#allocation95_spill] sm:$0xff] }
 0x2df   :  { %v2410_v52 = vmax.f32 %v2349_v33, 0.0  ;;  %v2353_v23 = vadd.f32 %v2352_v53, %v2192_v41  ;;  %v4310_v41 = vld [vmem:[#allocation126_spill] sm:$0xff] }
 0x2e0   :  { %v2354_v22 = vpop.f32.mrf.mxu0  ;;  %v2210_v33 = vadd.f32 %v4006_v43, %v2049_v42  ;;  %v2055_v51 = vadd.f32 %v4310_v41, %v1894_v63  ;;  %v2212_v5 = vadd.f32 %v2211_v28, %v2051_v44  ;;  %v2218_v28 = vadd.f32 %v2217_v46, %v2057_v3 }
 0x2e1   :  { %v2355_v16 = vadd.f32 %v2354_v22, %v2194_v30  ;;  %2568 = vmatprep.mubr.f32.mxu1 %v2410_v52  ;;  %v2411_v10 = vmax.f32 %v2353_v23, 0.0  ;;  %v4311_v30 = vld [vmem:[#allocation88_spill] sm:$0xff]  ;;  %v2223_v52 = vpop.f32.mrf.mxu1  ;;  %v4314_v23 = vld [vmem:[#allocation91_spill] sm:$0xff] }
 0x2e2   :  { %v2358_v34 = vpop.f32.mrf.mxu0  ;;  %2569 = vmatmul.mubr.f32.gmra.mxu1 %v2409_v37  ;;  %v1900_v62 = vadd.f32 %v4312_v1, %v4311_v30  ;;  %v4313_v37 = vld [vmem:[#allocation89_spill] sm:$0xff]  ;;  %v2216_v43 = vadd.f32 %v2215_v32, %v2055_v51 }
 0x2e3   :  { %v2412_v56 = vmax.f32 %v2355_v16, 0.0  ;;  %v2359_v9 = vadd.f32 %v2358_v34, %v2198_v7  ;;  %v1902_v22 = vadd.f32 %v4314_v23, %v4313_v37  ;;  %v1906_v34 = vadd.f32 %v4316_v55, %v4315_v45 }
 0x2e4   :  { %v2360_v21 = vpop.f32.mrf.mxu0  ;;  %v2061_v25 = vadd.f32 %v3841_v17, %v1900_v62 }
 0x2e5   :  { %v2361_v13 = vadd.f32 %v2360_v21, %v2200_v2  ;;  %2573 = vmatprep.mubr.f32.mxu1 %v2412_v56  ;;  %v2413_v27 = vmax.f32 %v2359_v9, 0.0  ;;  %v2063_v11 = vadd.f32 %v3851_v0, %v1902_v22  ;;  %v2227_v2 = vpop.f32.mrf.mxu1  ;;  %v2067_v17 = vadd.f32 %v3857_v18, %v1906_v34 }
 0x2e6   :  { %v2364_v58 = vpop.f32.mrf.mxu0  ;;  %2574 = vmatmul.mubr.f32.gmra.mxu1 %v2411_v10  ;;  %v1908_v10 = vadd.f32 %v4318_v6, %v4317_v26  ;;  %v2222_v32 = vadd.f32 %v2221_v60, %v2061_v25  ;;  %v2630_v60 = vld [vmem:[#allocation11 + $0x28] sm:$0xff] }
 0x2e7   :  { %v2414_v31 = vmax.f32 %v2361_v13, 0.0  ;;  %v2365_v61 = vadd.f32 %v2364_v58, %v2204_v57  ;;  %v2224_v46 = vadd.f32 %v2223_v52, %v2063_v11  ;;  %v2229_v19 = vpop.f32.mrf.mxu1  ;;  %v2228_v42 = vadd.f32 %v2227_v2, %v2067_v17  ;;  %2963 = vmatprep.subr.mxu0 %v2630_v60  ;;  %3009 = vmatprep.subr.mxu1 %v2630_v60 }
 0x2e8   :  { %v2366_v49 = vpop.f32.mrf.mxu0  ;;  %v2069_v0 = vadd.f32 %v3871_v14, %v1908_v10  ;;  %2964 = vmatpush3.msra.mxu0 %v2630_v60  ;;  %3025 = vmatpush3.msra.mxu1 %v2630_v60 }
 0x2e9   :  { %v2367_v24 = vadd.f32 %v2366_v49, %v2206_v35  ;;  %2578 = vmatprep.mubr.f32.mxu1 %v2414_v31  ;;  %v2415_v40 = vmax.f32 %v2365_v61, 0.0  ;;  %v2628_v61 = vld [vmem:[#allocation11 + $0x18] sm:$0xff]  ;;  %v2627_v49 = vld [vmem:[#allocation11 + $0x10] sm:$0xff] }
 0x2ea   :  { %v2370_v20 = vpop.f32.mrf.mxu0  ;;  %2579 = vmatmul.mubr.f32.gmra.mxu1 %v2413_v27  ;;  %v2230_v35 = vadd.f32 %v2229_v19, %v2069_v0  ;;  %v2629_v27 = vld [vmem:[#allocation11 + $0x20] sm:$0xff] }
 0x2eb   :  { %v2416_v53 = vmax.f32 %v2367_v24, 0.0  ;;  %v2371_v39 = vadd.f32 %v2370_v20, %v2210_v33  ;;  %2965 = vmatprep.subr.mxu0 %v2629_v27  ;;  %3010 = vmatprep.subr.mxu1 %v2629_v27  ;;  %v4057_v24 = vld [vmem:[#allocation10] ss:$0 sm:$0xff] }
 0x2ec   :  { %v2372_v48 = vpop.f32.mrf.mxu0  ;;  %2966 = vmatpush3.msra.mxu0 %v2629_v27  ;;  %3026 = vmatpush3.msra.mxu1 %v2629_v27 }
 0x2ed   :  { %v2373_v54 = vadd.f32 %v2372_v48, %v2212_v5  ;;  %2583 = vmatprep.mubr.f32.mxu1 %v2416_v53  ;;  %v2417_v59 = vmax.f32 %v2371_v39, 0.0  ;;  %2967 = vmatprep.subr.mxu0 %v2628_v61 }
 0x2ee   :  { %v2376_v16 = vpop.f32.mrf.mxu0  ;;  %2584 = vmatmul.mubr.f32.gmra.mxu1 %v2415_v40  ;;  %3011 = vmatprep.subr.mxu1 %v2628_v61 }
 0x2ef   :  { %v2418_v7 = vmax.f32 %v2373_v54, 0.0  ;;  %v2377_v56 = vadd.f32 %v2376_v16, %v2216_v43  ;;  %2968 = vmatpush3.msra.mxu0 %v2628_v61  ;;  %3027 = vmatpush3.msra.mxu1 %v2628_v61 }
 0x2f0   :  { %v2378_v36 = vpop.f32.mrf.mxu0  ;;  %2969 = vmatprep.subr.mxu0 %v2627_v49  ;;  %3012 = vmatprep.subr.mxu1 %v2627_v49 }
 0x2f1   :  { %v2379_v9 = vadd.f32 %v2378_v36, %v2218_v28  ;;  %2588 = vmatprep.mubr.f32.mxu1 %v2418_v7  ;;  %v2419_v38 = vmax.f32 %v2377_v56, 0.0  ;;  %2970 = vmatpush3.msra.mxu0 %v2627_v49 }
 0x2f2   :  { %v2382_v21 = vpop.f32.mrf.mxu0  ;;  %2589 = vmatmul.mubr.f32.gmra.mxu1 %v2417_v59  ;;  %2971 = vmatprep.subr.mxu0 %v2626_v4 }
 0x2f3   :  { %v2420_v12 = vmax.f32 %v2379_v9, 0.0  ;;  %v2383_v13 = vadd.f32 %v2382_v21, %v2222_v32  ;;  %3028 = vmatpush3.msra.mxu1 %v2627_v49  ;;  %2972 = vmatpush3.msra.mxu0 %v2626_v4 }
 0x2f4   :  { %v2384_v57 = vpop.f32.mrf.mxu0  ;;  %3013 = vmatprep.subr.mxu1 %v2626_v4  ;;  %2973 = vmatprep.subr.mxu0 %v2625_v29 }
 0x2f5   :  { %v2385_v8 = vadd.f32 %v2384_v57, %v2224_v46  ;;  %2593 = vmatprep.mubr.f32.mxu1 %v2420_v12  ;;  %v2421_v31 = vmax.f32 %v2383_v13, 0.0  ;;  %3029 = vmatpush3.msra.mxu1 %v2626_v4 }
 0x2f6   :  { %v2388_v58 = vpop.f32.mrf.mxu0  ;;  %2594 = vmatmul.mubr.f32.gmra.mxu1 %v2419_v38  ;;  %3014 = vmatprep.subr.mxu1 %v2625_v29 }
 0x2f7   :  { %v2422_v44 = vmax.f32 %v2385_v8, 0.0  ;;  %v2389_v47 = vadd.f32 %v2388_v58, %v2228_v42  ;;  %2974 = vmatpush3.msra.mxu0 %v2625_v29  ;;  %3030 = vmatpush3.msra.mxu1 %v2625_v29 }
 0x2f8   :  { %v2390_v18 = vpop.f32.mrf.mxu0 }
 0x2f9   :  { %v2391_v50 = vadd.f32 %v2390_v18, %v2230_v35  ;;  %2598 = vmatprep.mubr.f32.mxu1 %v2422_v44  ;;  %v2423_v14 = vmax.f32 %v2389_v47, 0.0 }
 0x2fa   :  { %2599 = vmatmul.mubr.f32.gmra.mxu1 %v2421_v31 }
 0x2fb   :  { %v2424_v63 = vmax.f32 %v2391_v50, 0.0 }
 0x2fd   :  { %2603 = vmatprep.mubr.f32.mxu1 %v2424_v63 }
 0x2fe   :  { %2604 = vmatmul.mubr.f32.gmra.mxu1 %v2423_v14 }
 0x382   :  { %v2863_v15 = vpop.f32.mrf.mxu1 }
 0x384   :  { %v2864_v33 = vpop.f32.mrf.mxu1 }
 0x385   :  { %v2865_v41 = vadd.f32 %v2864_v33, %v2863_v15 }
 0x386   :  { %v2866_v51 = vpop.f32.mrf.mxu1 }
 0x387   :  { %v2531_v20 = vadd.f32 %v2865_v41, %v4057_v24 }
 0x388   :  { %v2867_v5 = vpop.f32.mrf.mxu1 }
 0x389   :  { %v2609_v3 = vmax.f32 %v2531_v20, 0.0  ;;  %v2868_v53 = vadd.f32 %v2867_v5, %v2866_v51 }
 0x38a   :  { %v2869_v30 = vpop.f32.mrf.mxu1 }
 0x38b   :  { %v2536_v1 = vadd.f32 %v2868_v53, %v4057_v24  ;;  %2975 = vmatprep.mubr.f32.mxu0 %v2609_v3 }
 0x38c   :  { %v2870_v62 = vpop.f32.mrf.mxu1 }
 0x38d   :  { %v2610_v52 = vmax.f32 %v2536_v1, 0.0  ;;  %v2871_v40 = vadd.f32 %v2870_v62, %v2869_v30 }
 0x38e   :  { %v2872_v39 = vpop.f32.mrf.mxu1 }
 0x38f   :  { %v2541_v48 = vadd.f32 %v2871_v40, %v4057_v24  ;;  %2976 = vmatmul.mubr.f32.vlgmr.msra.gmra.mxu0 %v2610_v52 }
 0x390   :  { %v2873_v37 = vpop.f32.mrf.mxu1 }
 0x391   :  { %v2611_v23 = vmax.f32 %v2541_v48, 0.0  ;;  %v2874_v22 = vadd.f32 %v2873_v37, %v2872_v39 }
 0x392   :  { %v2875_v54 = vpop.f32.mrf.mxu1 }
 0x393   :  { %v2546_v43 = vadd.f32 %v2874_v22, %v4057_v24  ;;  %2978 = vmatprep.mubr.f32.mxu0 %v2611_v23  ;;  %v2830_v22 = vld [vmem:[#allocation13] ss:$0 sm:$0xff] }
 0x394   :  { %v2876_v25 = vpop.f32.mrf.mxu1 }
 0x395   :  { %v2612_v16 = vmax.f32 %v2546_v43, 0.0  ;;  %v2877_v28 = vadd.f32 %v2876_v25, %v2875_v54 }
 0x396   :  { %v2878_v11 = vpop.f32.mrf.mxu1 }
 0x397   :  { %v2551_v7 = vadd.f32 %v2877_v28, %v4057_v24  ;;  %2979 = vmatmul.mubr.f32.gmra.mxu0 %v2612_v16 }
 0x398   :  { %v2879_v45 = vpop.f32.mrf.mxu1 }
 0x399   :  { %v2613_v55 = vmax.f32 %v2551_v7, 0.0  ;;  %v2880_v34 = vadd.f32 %v2879_v45, %v2878_v11 }
 0x39a   :  { %v2881_v2 = vpop.f32.mrf.mxu1 }
 0x39b   :  { %v2556_v59 = vadd.f32 %v2880_v34, %v4057_v24  ;;  %2981 = vmatprep.mubr.f32.mxu0 %v2613_v55 }
 0x39c   :  { %v2882_v56 = vpop.f32.mrf.mxu1 }
 0x39d   :  { %v2614_v36 = vmax.f32 %v2556_v59, 0.0  ;;  %v2883_v26 = vadd.f32 %v2882_v56, %v2881_v2 }
 0x39e   :  { %v2884_v6 = vpop.f32.mrf.mxu1 }
 0x39f   :  { %v2561_v10 = vadd.f32 %v2883_v26, %v4057_v24  ;;  %2982 = vmatmul.mubr.f32.gmra.mxu0 %v2614_v36 }
 0x3a0   :  { %v2885_v9 = vpop.f32.mrf.mxu1 }
 0x3a1   :  { %v2615_v32 = vmax.f32 %v2561_v10, 0.0  ;;  %v2886_v17 = vadd.f32 %v2885_v9, %v2884_v6 }
 0x3a2   :  { %v2887_v21 = vpop.f32.mrf.mxu1 }
 0x3a3   :  { %v2566_v46 = vadd.f32 %v2886_v17, %v4057_v24  ;;  %2984 = vmatprep.mubr.f32.mxu0 %v2615_v32 }
 0x3a4   :  { %v2888_v0 = vpop.f32.mrf.mxu1 }
 0x3a5   :  { %v2616_v12 = vmax.f32 %v2566_v46, 0.0  ;;  %v2889_v19 = vadd.f32 %v2888_v0, %v2887_v21 }
 0x3a6   :  { %v2890_v38 = vpop.f32.mrf.mxu1 }
 0x3a7   :  { %v2571_v13 = vadd.f32 %v2889_v19, %v4057_v24  ;;  %2985 = vmatmul.mubr.f32.gmra.mxu0 %v2616_v12 }
 0x3a8   :  { %v2891_v57 = vpop.f32.mrf.mxu1 }
 0x3a9   :  { %v2617_v8 = vmax.f32 %v2571_v13, 0.0  ;;  %v2892_v42 = vadd.f32 %v2891_v57, %v2890_v38 }
 0x3aa   :  { %v2893_v58 = vpop.f32.mrf.mxu1 }
 0x3ab   :  { %v2576_v35 = vadd.f32 %v2892_v42, %v4057_v24  ;;  %2987 = vmatprep.mubr.f32.mxu1 %v2617_v8 }
 0x3ac   :  { %v2894_v44 = vpop.f32.mrf.mxu1 }
 0x3ad   :  { %v2618_v31 = vmax.f32 %v2576_v35, 0.0  ;;  %v2895_v47 = vadd.f32 %v2894_v44, %v2893_v58 }
 0x3ae   :  { %v2896_v18 = vpop.f32.mrf.mxu1 }
 0x3af   :  { %v2581_v50 = vadd.f32 %v2895_v47, %v4057_v24  ;;  %2988 = vmatmul.mubr.f32.vlgmr.msra.gmra.mxu1 %v2618_v31 }
 0x3b0   :  { %v2897_v63 = vpop.f32.mrf.mxu1 }
 0x3b1   :  { %v2619_v14 = vmax.f32 %v2581_v50, 0.0  ;;  %v2898_v60 = vadd.f32 %v2897_v63, %v2896_v18 }
 0x3b2   :  { %v2899_v27 = vpop.f32.mrf.mxu1 }
 0x3b3   :  { %v2586_v61 = vadd.f32 %v2898_v60, %v4057_v24  ;;  %2990 = vmatprep.mubr.f32.mxu1 %v2619_v14 }
 0x3b4   :  { %v2900_v49 = vpop.f32.mrf.mxu1 }
 0x3b5   :  { %v2620_v4 = vmax.f32 %v2586_v61, 0.0  ;;  %v2901_v29 = vadd.f32 %v2900_v49, %v2899_v27 }
 0x3b6   :  { %v2902_v15 = vpop.f32.mrf.mxu1 }
 0x3b7   :  { %v2591_v33 = vadd.f32 %v2901_v29, %v4057_v24  ;;  %2991 = vmatmul.mubr.f32.gmra.mxu1 %v2620_v4 }
 0x3b8   :  { %v2903_v41 = vpop.f32.mrf.mxu1 }
 0x3b9   :  { %v2621_v51 = vmax.f32 %v2591_v33, 0.0  ;;  %v2904_v20 = vadd.f32 %v2903_v41, %v2902_v15 }
 0x3ba   :  { %v2905_v5 = vpop.f32.mrf.mxu1 }
 0x3bb   :  { %v2596_v3 = vadd.f32 %v2904_v20, %v4057_v24  ;;  %2993 = vmatprep.mubr.f32.mxu1 %v2621_v51 }
 0x3bc   :  { %v2906_v53 = vpop.f32.mrf.mxu1 }
 0x3bd   :  { %v2622_v30 = vmax.f32 %v2596_v3, 0.0  ;;  %v2907_v1 = vadd.f32 %v2906_v53, %v2905_v5 }
 0x3be   :  { %v2908_v62 = vpop.f32.mrf.mxu1 }
 0x3bf   :  { %v2601_v52 = vadd.f32 %v2907_v1, %v4057_v24  ;;  %2994 = vmatmul.mubr.f32.gmra.mxu1 %v2622_v30 }
 0x3c0   :  { %v2909_v40 = vpop.f32.mrf.mxu1 }
 0x3c1   :  { %v2623_v39 = vmax.f32 %v2601_v52, 0.0  ;;  %v2910_v48 = vadd.f32 %v2909_v40, %v2908_v62 }
 0x3c3   :  { %v2606_v37 = vadd.f32 %v2910_v48, %v4057_v24  ;;  %2996 = vmatprep.mubr.f32.mxu1 %v2623_v39 }
 0x3c5   :  { %v2624_v23 = vmax.f32 %v2606_v37, 0.0 }
 0x3c7   :  { %2997 = vmatmul.mubr.f32.gmra.mxu1 %v2624_v23 }
 0x44f   :  { %v2977_v54 = vpop.f32.mrf.mxu0 }
 0x450   :  { %v2720_v43 = vadd.f32 %v2977_v54, %v2830_v22 }
 0x451   :  { %v2714_v25 = vpop.f32.mrf.mxu0 }
 0x452   :  { %2794 = vst [vmem:[#allocation14 + $0x8] sm:$0xff] %v2720_v43  ;;  %v2715_v16 = vadd.f32 %v2830_v22, %v2714_v25 }
 0x454   :  { %2793 = vst [vmem:[#allocation14] sm:$0xff] %v2715_v16 }
 0x457   :  { %v2980_v28 = vpop.f32.mrf.mxu0 }
 0x458   :  { %v2730_v11 = vadd.f32 %v2980_v28, %v2830_v22 }
 0x459   :  { %v2724_v7 = vpop.f32.mrf.mxu0 }
 0x45a   :  { %2796 = vst [vmem:[#allocation14 + $0x18] sm:$0xff] %v2730_v11  ;;  %v2725_v45 = vadd.f32 %v2830_v22, %v2724_v7 }
 0x45c   :  { %2795 = vst [vmem:[#allocation14 + $0x10] sm:$0xff] %v2725_v45 }
 0x45f   :  { %v2983_v55 = vpop.f32.mrf.mxu0 }
 0x460   :  { %v2740_v34 = vadd.f32 %v2983_v55, %v2830_v22 }
 0x461   :  { %v2734_v2 = vpop.f32.mrf.mxu0 }
 0x462   :  { %2798 = vst [vmem:[#allocation14 + $0x28] sm:$0xff] %v2740_v34  ;;  %v2735_v24 = vadd.f32 %v2830_v22, %v2734_v2 }
 0x464   :  { %2797 = vst [vmem:[#allocation14 + $0x20] sm:$0xff] %v2735_v24 }
 0x467   :  { %v2986_v59 = vpop.f32.mrf.mxu0 }
 0x468   :  { %v2750_v56 = vadd.f32 %v2986_v59, %v2830_v22 }
 0x469   :  { %v2744_v36 = vpop.f32.mrf.mxu0 }
 0x46a   :  { %2800 = vst [vmem:[#allocation14 + $0x38] sm:$0xff] %v2750_v56  ;;  %v2745_v26 = vadd.f32 %v2830_v22, %v2744_v36 }
 0x46c   :  { %2799 = vst [vmem:[#allocation14 + $0x30] sm:$0xff] %v2745_v26 }
 0x46f   :  { %v2989_v6 = vpop.f32.mrf.mxu1 }
 0x470   :  { %v2760_v10 = vadd.f32 %v2989_v6, %v2830_v22 }
 0x471   :  { %v2754_v9 = vpop.f32.mrf.mxu1 }
 0x472   :  { %2802 = vst [vmem:[#allocation14 + $0x48] sm:$0xff] %v2760_v10  ;;  %v2755_v32 = vadd.f32 %v2830_v22, %v2754_v9 }
 0x474   :  { %2801 = vst [vmem:[#allocation14 + $0x40] sm:$0xff] %v2755_v32 }
 0x477   :  { %v2992_v17 = vpop.f32.mrf.mxu1 }
 0x478   :  { %v2770_v21 = vadd.f32 %v2992_v17, %v2830_v22 }
 0x479   :  { %v2764_v46 = vpop.f32.mrf.mxu1 }
 0x47a   :  { %2804 = vst [vmem:[#allocation14 + $0x58] sm:$0xff] %v2770_v21  ;;  %v2765_v0 = vadd.f32 %v2830_v22, %v2764_v46 }
 0x47c   :  { %2803 = vst [vmem:[#allocation14 + $0x50] sm:$0xff] %v2765_v0 }
 0x47f   :  { %v2995_v12 = vpop.f32.mrf.mxu1 }
 0x480   :  { %v2780_v19 = vadd.f32 %v2995_v12, %v2830_v22 }
 0x481   :  { %v2774_v38 = vpop.f32.mrf.mxu1 }
 0x482   :  { %2806 = vst [vmem:[#allocation14 + $0x68] sm:$0xff] %v2780_v19  ;;  %v2775_v13 = vadd.f32 %v2830_v22, %v2774_v38 }
 0x484   :  { %2805 = vst [vmem:[#allocation14 + $0x60] sm:$0xff] %v2775_v13 }
 0x487   :  { %v2998_v57 = vpop.f32.mrf.mxu1 }
 0x488   :  { %v2790_v8 = vadd.f32 %v2998_v57, %v2830_v22 }
 0x489   :  { %v2784_v42 = vpop.f32.mrf.mxu1 }
 0x48a   :  { %2808 = vst [vmem:[#allocation14 + $0x78] sm:$0xff] %v2790_v8  ;;  %v2785_v58 = vadd.f32 %v2830_v22, %v2784_v42 }
 0x48c   :  { %2807 = vst [vmem:[#allocation14 + $0x70] sm:$0xff] %v2785_v58 }
 0x48d   :  { %3198 = shalt.err (!%p3195_p11)
}
 0x48e   :  { %2820 = dma.vmem_to_hbm [thread:$0]  %s2815_s6, 2048, %s4088_s7, [#allocation4], %s3221_s11, %s3221_s11, %s3222_s12  }
 0x48f   :  { %3215 = dma.done.wait [#allocation4], 2048  }
 0x490   :  { %3216 = vsyncadd [#allocation4], 4294965248 }
 0x491   :  { %2824 = vsyncpa [#allocation3], 1 }
 0x492   :  { %2825 = vsyncpa [#allocation6], 1 }
 0x493   :  { %2826 = vsyncpa [#allocation9], 1 }
 0x494   :  { %2827 = vsyncpa [#allocation12], 1 }
 0x495   :  { %2828 = vsyncpa [#allocation4], 1 }

</bundles_post_ra>
